<compile_context>
chip_gen: v5e
topology: v5e:2x2
jax: 0.10.0
libtpu: 0.0.40
codegen_flags: <defaults>
</compile_context>

<pallas_src>
import functools

import jax
import jax.numpy as jnp
from jax.experimental import pallas as pl
from jax.experimental.pallas import tpu as pltpu


# Logical layer sizes (PyTorch Net) and their lane-padded counterparts.
D_IN, D1, D2, D3, D4, D_OUT = 784, 512, 256, 128, 64, 10
K_PAD = 896     # 7 * 128: padded input feature dim
H4_PAD = 128    # padded layer-4 width (64 -> 128)
OUT_PAD = 128   # padded final output width (10 -> 128)


def mlp_kernel(x_ref,
               w1_ref, b1_ref,
               w2_ref, b2_ref,
               w3_ref, b3_ref,
               w4_ref, b4_ref,
               w5_ref, b5_ref,
               o_ref):
    # x tile and weights are bf16 (MXU inputs); accumulate in f32,
    # do bias + ReLU in f32, cast back to bf16 only for the next matmul.
    x = x_ref[...]                                              # (TM, 896) bf16

    h = jnp.dot(x, w1_ref[...], preferred_element_type=jnp.float32) + b1_ref[...]
    h = jnp.maximum(h, 0.0).astype(jnp.bfloat16)                # (TM, 512)

    h = jnp.dot(h, w2_ref[...], preferred_element_type=jnp.float32) + b2_ref[...]
    h = jnp.maximum(h, 0.0).astype(jnp.bfloat16)                # (TM, 256)

    h = jnp.dot(h, w3_ref[...], preferred_element_type=jnp.float32) + b3_ref[...]
    h = jnp.maximum(h, 0.0).astype(jnp.bfloat16)                # (TM, 128)

    h = jnp.dot(h, w4_ref[...], preferred_element_type=jnp.float32) + b4_ref[...]
    h = jnp.maximum(h, 0.0).astype(jnp.bfloat16)                # (TM, 128) (64 real + 64 zero lanes)

    # Final linear layer (no ReLU); output padded to 128 lanes, stored f32.
    o_ref[...] = jnp.dot(h, w5_ref[...], preferred_element_type=jnp.float32) + b5_ref[...]


def init_params(key):
    """Deterministic init mirroring torch.nn.Linear default U(-1/sqrt(in), 1/sqrt(in)).

    Weights are stored as [in, out] (transposed vs torch's [out, in]); biases as [1, out].
    """
    dims = [D_IN, D1, D2, D3, D4, D_OUT]
    params = []
    for i in range(5):
        fan_in, fan_out = dims[i], dims[i + 1]
        key, kw, kb = jax.random.split(key, 3)
        bound = 1.0 / (fan_in ** 0.5)
        w = jax.random.uniform(kw, (fan_in, fan_out), jnp.float32, -bound, bound)
        b = jax.random.uniform(kb, (1, fan_out), jnp.float32, -bound, bound)
        params.append((w, b))
    return params


@functools.partial(jax.jit, static_argnames=("tm",))
def net_forward(x_nchw, params, *, tm=128):
    """Forward pass of Net. x_nchw: [B, 1, 28, 28] float32. Returns [B, 10] float32."""
    B = x_nchw.shape[0]
    x = x_nchw.reshape(B, -1).astype(jnp.float32)               # x.view(x.size(0), -1)

    (w1, b1), (w2, b2), (w3, b3), (w4, b4), (w5, b5) = params

    # ---- lane-dense zero padding (exact for Linear + ReLU) ----
    w1p = jnp.zeros((K_PAD, D1), jnp.float32).at[:D_IN, :].set(w1)
    w4p = jnp.zeros((D3, H4_PAD), jnp.float32).at[:, :D4].set(w4)
    b4p = jnp.zeros((1, H4_PAD), jnp.float32).at[:, :D4].set(b4)
    w5p = jnp.zeros((H4_PAD, OUT_PAD), jnp.float32).at[:D4, :D_OUT].set(w5)
    b5p = jnp.zeros((1, OUT_PAD), jnp.float32).at[:, :D_OUT].set(b5)

    # bf16 MXU inputs (f32 accumulation inside the kernel); biases stay f32.
    weights = [w1p.astype(jnp.bfloat16), w2.astype(jnp.bfloat16),
               w3.astype(jnp.bfloat16), w4p.astype(jnp.bfloat16),
               w5p.astype(jnp.bfloat16)]
    biases = [b1, b2, b3, b4p, b5p]

    # ---- pad batch to a multiple of the row tile, pad features to 896 ----
    tm = max(8, tm)
    n_tiles = pl.cdiv(B, tm)
    B_pad = n_tiles * tm
    x_p = jnp.zeros((B_pad, K_PAD), jnp.bfloat16)
    x_p = x_p.at[:B, :D_IN].set(x.astype(jnp.bfloat16))

    # ---- specs: x/out tiles move with the grid, weights/biases stay resident ----
    x_spec = pl.BlockSpec((tm, K_PAD), lambda i: (i, 0))
    out_spec = pl.BlockSpec((tm, OUT_PAD), lambda i: (i, 0))
    const_specs = [pl.BlockSpec(a.shape, lambda i: (0, 0))
                   for pair in zip(weights, biases) for a in pair]

    flat_wb = [a for pair in zip(weights, biases) for a in pair]

    flops = 2 * B_pad * (K_PAD * D1 + D1 * D2 + D2 * D3 + D3 * H4_PAD + H4_PAD * OUT_PAD)
    bytes_accessed = (x_p.size * 2
                      + sum(w.size * 2 for w in weights)
                      + sum(b.size * 4 for b in biases)
                      + B_pad * OUT_PAD * 4)
    cost = pl.CostEstimate(flops=flops, transcendentals=0, bytes_accessed=bytes_accessed)

    out_padded = pl.pallas_call(
        mlp_kernel,
        out_shape=jax.ShapeDtypeStruct((B_pad, OUT_PAD), jnp.float32),
        grid=(n_tiles,),
        in_specs=[x_spec] + const_specs,
        out_specs=out_spec,
        compiler_params=pltpu.CompilerParams(
            dimension_semantics=("parallel",)),
        cost_estimate=cost,
    )(x_p, *flat_wb)

    return out_padded[:B, :D_OUT]


def net_forward_ref(x_nchw, params):
    """Pure-JAX f32 reference for correctness check."""
    x = x_nchw.reshape(x_nchw.shape[0], -1).astype(jnp.float32)
    (w1, b1), (w2, b2), (w3, b3), (w4, b4), (w5, b5) = params
    h = jnp.maximum(x @ w1 + b1, 0.0)
    h = jnp.maximum(h @ w2 + b2, 0.0)
    h = jnp.maximum(h @ w3 + b3, 0.0)
    h = jnp.maximum(h @ w4 + b4, 0.0)
    return h @ w5 + b5


if __name__ == "__main__":
    key = jax.random.PRNGKey(0)
    key, kx = jax.random.split(key)

    # Modest batch that still exercises a 2-step grid with TM=128 row tiles.
    B = 256
    x = jax.random.normal(kx, (B, 1, 28, 28), jnp.float32)  # MNIST-shaped NCHW input

    params = init_params(key)

    out = net_forward(x, params, tm=128)
    out = jax.block_until_ready(out)

    ref = net_forward_ref(x, params)
    assert out.shape == (B, 10), out.shape
    # bf16 matmul inputs with f32 accumulation -> loosened tolerance vs f32 reference.
    assert jnp.allclose(out, ref, atol=3e-2, rtol=3e-2), (
        f"mismatch vs reference, max abs err = {jnp.max(jnp.abs(out - ref))}")

    print("KERNEL_OK")
</pallas_src>

<mosaic_0001>
module attributes {stable_mosaic.version = 11 : i64} {
  func.func @mlp_kernel(%arg0: i32, %arg1: memref<128x896xbf16, #tpu.memory_space<vmem>>, %arg2: memref<896x512xbf16, #tpu.memory_space<vmem>>, %arg3: memref<1x512xf32, #tpu.memory_space<vmem>>, %arg4: memref<512x256xbf16, #tpu.memory_space<vmem>>, %arg5: memref<1x256xf32, #tpu.memory_space<vmem>>, %arg6: memref<256x128xbf16, #tpu.memory_space<vmem>>, %arg7: memref<1x128xf32, #tpu.memory_space<vmem>>, %arg8: memref<128x128xbf16, #tpu.memory_space<vmem>>, %arg9: memref<1x128xf32, #tpu.memory_space<vmem>>, %arg10: memref<128x128xbf16, #tpu.memory_space<vmem>>, %arg11: memref<1x128xf32, #tpu.memory_space<vmem>>, %arg12: memref<128x128xf32, #tpu.memory_space<vmem>>) attributes {dimension_semantics = [#tpu.dimension_semantics<parallel>], iteration_bounds = array<i64: 2>, scalar_prefetch = 0 : i64, scratch_operands = 0 : i64, tpu.core_type = #tpu.core_type<tc>, window_params = [{transform_indices = @transform_0, window_bounds = array<i64: 128, 896>}, {pipeline_mode = #tpu.pipeline_mode<synchronous>, transform_indices = @transform_1, window_bounds = array<i64: 896, 512>}, {pipeline_mode = #tpu.pipeline_mode<synchronous>, transform_indices = @transform_2, window_bounds = array<i64: 1, 512>}, {pipeline_mode = #tpu.pipeline_mode<synchronous>, transform_indices = @transform_3, window_bounds = array<i64: 512, 256>}, {pipeline_mode = #tpu.pipeline_mode<synchronous>, transform_indices = @transform_4, window_bounds = array<i64: 1, 256>}, {pipeline_mode = #tpu.pipeline_mode<synchronous>, transform_indices = @transform_5, window_bounds = array<i64: 256, 128>}, {pipeline_mode = #tpu.pipeline_mode<synchronous>, transform_indices = @transform_6, window_bounds = array<i64: 1, 128>}, {pipeline_mode = #tpu.pipeline_mode<synchronous>, transform_indices = @transform_7, window_bounds = array<i64: 128, 128>}, {pipeline_mode = #tpu.pipeline_mode<synchronous>, transform_indices = @transform_8, window_bounds = array<i64: 1, 128>}, {pipeline_mode = #tpu.pipeline_mode<synchronous>, transform_indices = @transform_9, window_bounds = array<i64: 128, 128>}, {pipeline_mode = #tpu.pipeline_mode<synchronous>, transform_indices = @transform_10, window_bounds = array<i64: 1, 128>}, {transform_indices = @transform_11, window_bounds = array<i64: 128, 128>}]} {
    %c0 = arith.constant 0 : index
    %c0_0 = arith.constant 0 : index
    %0 = vector.load %arg1[%c0, %c0_0] : memref<128x896xbf16, #tpu.memory_space<vmem>>, vector<128x896xbf16>
    %c0_1 = arith.constant 0 : index
    %c0_2 = arith.constant 0 : index
    %1 = vector.load %arg2[%c0_1, %c0_2] : memref<896x512xbf16, #tpu.memory_space<vmem>>, vector<896x512xbf16>
    %cst = arith.constant dense<0.000000e+00> : vector<128x512xf32>
    %2 = tpu.matmul %0, %1, %cst {dimension_numbers = #tpu.dot_dimension_numbers<[1], [0], [0], [1], [0, 0, 1, 1], [], []>} : vector<128x896xbf16>, vector<896x512xbf16>, vector<128x512xf32> -> vector<128x512xf32>
    %c0_3 = arith.constant 0 : index
    %c0_4 = arith.constant 0 : index
    %3 = vector.load %arg3[%c0_3, %c0_4] : memref<1x512xf32, #tpu.memory_space<vmem>>, vector<1x512xf32>
    %4 = vector.broadcast %3 : vector<1x512xf32> to vector<128x512xf32>
    %5 = arith.addf %2, %4 : vector<128x512xf32>
    %cst_5 = arith.constant 0.000000e+00 : f32
    %6 = vector.broadcast %cst_5 : f32 to vector<128x512xf32>
    %7 = arith.maximumf %5, %6 : vector<128x512xf32>
    %8 = arith.truncf %7 : vector<128x512xf32> to vector<128x512xbf16>
    %c0_6 = arith.constant 0 : index
    %c0_7 = arith.constant 0 : index
    %9 = vector.load %arg4[%c0_6, %c0_7] : memref<512x256xbf16, #tpu.memory_space<vmem>>, vector<512x256xbf16>
    %cst_8 = arith.constant dense<0.000000e+00> : vector<128x256xf32>
    %10 = tpu.matmul %8, %9, %cst_8 {dimension_numbers = #tpu.dot_dimension_numbers<[1], [0], [0], [1], [0, 0, 1, 1], [], []>} : vector<128x512xbf16>, vector<512x256xbf16>, vector<128x256xf32> -> vector<128x256xf32>
    %c0_9 = arith.constant 0 : index
    %c0_10 = arith.constant 0 : index
    %11 = vector.load %arg5[%c0_9, %c0_10] : memref<1x256xf32, #tpu.memory_space<vmem>>, vector<1x256xf32>
    %12 = vector.broadcast %11 : vector<1x256xf32> to vector<128x256xf32>
    %13 = arith.addf %10, %12 : vector<128x256xf32>
    %cst_11 = arith.constant 0.000000e+00 : f32
    %14 = vector.broadcast %cst_11 : f32 to vector<128x256xf32>
    %15 = arith.maximumf %13, %14 : vector<128x256xf32>
    %16 = arith.truncf %15 : vector<128x256xf32> to vector<128x256xbf16>
    %c0_12 = arith.constant 0 : index
    %c0_13 = arith.constant 0 : index
    %17 = vector.load %arg6[%c0_12, %c0_13] : memref<256x128xbf16, #tpu.memory_space<vmem>>, vector<256x128xbf16>
    %cst_14 = arith.constant dense<0.000000e+00> : vector<128x128xf32>
    %18 = tpu.matmul %16, %17, %cst_14 {dimension_numbers = #tpu.dot_dimension_numbers<[1], [0], [0], [1], [0, 0, 1, 1], [], []>} : vector<128x256xbf16>, vector<256x128xbf16>, vector<128x128xf32> -> vector<128x128xf32>
    %c0_15 = arith.constant 0 : index
    %c0_16 = arith.constant 0 : index
    %19 = vector.load %arg7[%c0_15, %c0_16] : memref<1x128xf32, #tpu.memory_space<vmem>>, vector<1x128xf32>
    %20 = vector.broadcast %19 : vector<1x128xf32> to vector<128x128xf32>
    %21 = arith.addf %18, %20 : vector<128x128xf32>
    %cst_17 = arith.constant 0.000000e+00 : f32
    %22 = vector.broadcast %cst_17 : f32 to vector<128x128xf32>
    %23 = arith.maximumf %21, %22 : vector<128x128xf32>
    %24 = arith.truncf %23 : vector<128x128xf32> to vector<128x128xbf16>
    %c0_18 = arith.constant 0 : index
    %c0_19 = arith.constant 0 : index
    %25 = vector.load %arg8[%c0_18, %c0_19] : memref<128x128xbf16, #tpu.memory_space<vmem>>, vector<128x128xbf16>
    %cst_20 = arith.constant dense<0.000000e+00> : vector<128x128xf32>
    %26 = tpu.matmul %24, %25, %cst_20 {dimension_numbers = #tpu.dot_dimension_numbers<[1], [0], [0], [1], [0, 0, 1, 1], [], []>} : vector<128x128xbf16>, vector<128x128xbf16>, vector<128x128xf32> -> vector<128x128xf32>
    %c0_21 = arith.constant 0 : index
    %c0_22 = arith.constant 0 : index
    %27 = vector.load %arg9[%c0_21, %c0_22] : memref<1x128xf32, #tpu.memory_space<vmem>>, vector<1x128xf32>
    %28 = vector.broadcast %27 : vector<1x128xf32> to vector<128x128xf32>
    %29 = arith.addf %26, %28 : vector<128x128xf32>
    %cst_23 = arith.constant 0.000000e+00 : f32
    %30 = vector.broadcast %cst_23 : f32 to vector<128x128xf32>
    %31 = arith.maximumf %29, %30 : vector<128x128xf32>
    %32 = arith.truncf %31 : vector<128x128xf32> to vector<128x128xbf16>
    %c0_24 = arith.constant 0 : index
    %c0_25 = arith.constant 0 : index
    %33 = vector.load %arg10[%c0_24, %c0_25] : memref<128x128xbf16, #tpu.memory_space<vmem>>, vector<128x128xbf16>
    %cst_26 = arith.constant dense<0.000000e+00> : vector<128x128xf32>
    %34 = tpu.matmul %32, %33, %cst_26 {dimension_numbers = #tpu.dot_dimension_numbers<[1], [0], [0], [1], [0, 0, 1, 1], [], []>} : vector<128x128xbf16>, vector<128x128xbf16>, vector<128x128xf32> -> vector<128x128xf32>
    %c0_27 = arith.constant 0 : index
    %c0_28 = arith.constant 0 : index
    %35 = vector.load %arg11[%c0_27, %c0_28] : memref<1x128xf32, #tpu.memory_space<vmem>>, vector<1x128xf32>
    %36 = vector.broadcast %35 : vector<1x128xf32> to vector<128x128xf32>
    %37 = arith.addf %34, %36 : vector<128x128xf32>
    %c0_29 = arith.constant 0 : index
    %c0_30 = arith.constant 0 : index
    %38 = vector.load %arg12[%c0_29, %c0_30] : memref<128x128xf32, #tpu.memory_space<vmem>>, vector<128x128xf32>
    tpu.vector_store %arg12[%c0_29, %c0_30], %37 {strides = array<i32>} : memref<128x128xf32, #tpu.memory_space<vmem>>, vector<128x128xf32>,
    return
  }
  func.func @transform_0(%arg0: i32) -> (i32, i32) {
    %c0_i32 = arith.constant 0 : i32
    %c0_i32_0 = arith.constant 0 : i32
    return %arg0, %c0_i32 : i32, i32
  }
  func.func @transform_1(%arg0: i32) -> (i32, i32) {
    %c0_i32 = arith.constant 0 : i32
    %c0_i32_0 = arith.constant 0 : i32
    %c0_i32_1 = arith.constant 0 : i32
    return %c0_i32, %c0_i32_0 : i32, i32
  }
  func.func @transform_2(%arg0: i32) -> (i32, i32) {
    %c0_i32 = arith.constant 0 : i32
    %c0_i32_0 = arith.constant 0 : i32
    %c0_i32_1 = arith.constant 0 : i32
    return %c0_i32, %c0_i32_0 : i32, i32
  }
  func.func @transform_3(%arg0: i32) -> (i32, i32) {
    %c0_i32 = arith.constant 0 : i32
    %c0_i32_0 = arith.constant 0 : i32
    %c0_i32_1 = arith.constant 0 : i32
    return %c0_i32, %c0_i32_0 : i32, i32
  }
  func.func @transform_4(%arg0: i32) -> (i32, i32) {
    %c0_i32 = arith.constant 0 : i32
    %c0_i32_0 = arith.constant 0 : i32
    %c0_i32_1 = arith.constant 0 : i32
    return %c0_i32, %c0_i32_0 : i32, i32
  }
  func.func @transform_5(%arg0: i32) -> (i32, i32) {
    %c0_i32 = arith.constant 0 : i32
    %c0_i32_0 = arith.constant 0 : i32
    %c0_i32_1 = arith.constant 0 : i32
    return %c0_i32, %c0_i32_0 : i32, i32
  }
  func.func @transform_6(%arg0: i32) -> (i32, i32) {
    %c0_i32 = arith.constant 0 : i32
    %c0_i32_0 = arith.constant 0 : i32
    %c0_i32_1 = arith.constant 0 : i32
    return %c0_i32, %c0_i32_0 : i32, i32
  }
  func.func @transform_7(%arg0: i32) -> (i32, i32) {
    %c0_i32 = arith.constant 0 : i32
    %c0_i32_0 = arith.constant 0 : i32
    %c0_i32_1 = arith.constant 0 : i32
    return %c0_i32, %c0_i32_0 : i32, i32
  }
  func.func @transform_8(%arg0: i32) -> (i32, i32) {
    %c0_i32 = arith.constant 0 : i32
    %c0_i32_0 = arith.constant 0 : i32
    %c0_i32_1 = arith.constant 0 : i32
    return %c0_i32, %c0_i32_0 : i32, i32
  }
  func.func @transform_9(%arg0: i32) -> (i32, i32) {
    %c0_i32 = arith.constant 0 : i32
    %c0_i32_0 = arith.constant 0 : i32
    %c0_i32_1 = arith.constant 0 : i32
    return %c0_i32, %c0_i32_0 : i32, i32
  }
  func.func @transform_10(%arg0: i32) -> (i32, i32) {
    %c0_i32 = arith.constant 0 : i32
    %c0_i32_0 = arith.constant 0 : i32
    %c0_i32_1 = arith.constant 0 : i32
    return %c0_i32, %c0_i32_0 : i32, i32
  }
  func.func @transform_11(%arg0: i32) -> (i32, i32) {
    %c0_i32 = arith.constant 0 : i32
    %c0_i32_0 = arith.constant 0 : i32
    return %arg0, %c0_i32 : i32, i32
  }
}

</mosaic_0001>

<bundles_post_ra>
// kernel: net_forward.1
= control target key start
LH: loop header
LB: loop body
LE: loop exit
PB: predicated region body
PF: predicated region fallthrough
CT: control target
= control target key end

     0   :  { %s6954_s17 = smov 0   ;;  %s9876_s0 = inlined_call_operand.vmem [shape: bf16[256,896], index: 0, kind: input, shape index: {}]   ;;  %s9877_s1 = inlined_call_operand.vmem [shape: bf16[896,512], index: 1, kind: input, shape index: {}]   ;;  %s9878_s2 = inlined_call_operand.vmem [shape: f32[1,512], index: 2, kind: input, shape index: {}]   ;;  %s9879_s3 = inlined_call_operand.vmem [shape: bf16[512,256], index: 3, kind: input, shape index: {}]   ;;  %s9880_s4 = inlined_call_operand.vmem [shape: f32[1,256], index: 4, kind: input, shape index: {}]   ;;  %s9881_s5 = inlined_call_operand.vmem [shape: bf16[256,128], index: 5, kind: input, shape index: {}]   ;;  %s9882_s6 = inlined_call_operand.vmem [shape: f32[1,128], index: 6, kind: input, shape index: {}]   ;;  %s9883_s7 = inlined_call_operand.vmem [shape: bf16[128,128], index: 7, kind: input, shape index: {}]   ;;  %s9884_s8 = inlined_call_operand.vmem [shape: f32[1,128], index: 8, kind: input, shape index: {}]   ;;  %s9885_s9 = inlined_call_operand.vmem [shape: bf16[128,128], index: 9, kind: input, shape index: {}]   ;;  %s9886_s10 = inlined_call_operand.vmem [shape: f32[1,128], index: 10, kind: input, shape index: {}]   ;;  %s9887_s11 = inlined_call_operand.vmem [shape: f32[256,128], index: 11, kind: output, shape index: {}]  }
   0x1 LB: > { %s4981_s18 = sadd.s32 4294967295, %s6892_s17   ;;  %p4985_p0 = scmp.ge.s32.totalorder %s6892_s17, 1  ;;  %s6892_s17 = sphi %s6954_s17, %s21_s17  }
   0x2   : > { %p339_p1 = scmp.lt.s32.totalorder %s6892_s17, 3 }
   0x4   : > { %p340_p2 = pnand %p4985_p0, %p339_p1 }
   0x6   : > { %343 = sbr.rel (%p340_p2) target bundleno = 1779 (0x6f3), region = 64 }
   0xb   : > { %v5328_v0 = vld [vmem:[%s9877_s1 + $0xe0] sm:$0xf]  ;;  %v6582_v1 = vld [vmem:[%s9877_s1 + $0xec] sm:$0xf0]  ;;  %s4986_s25 = sshll.u32 %s4981_s18, 4 }
   0xc   : > { %v5456_v2 = vld [vmem:[%s9877_s1 + $0x1e0] sm:$0xf]  ;;  %v5329_v3 = vor.u32 %v6582_v1, %v5328_v0  ;;  %v6614_v4 = vld [vmem:[%s9877_s1 + $0x1ec] sm:$0xf0]  ;;  %p381_p3 = scmp.lt.s32.totalorder %s4986_s25, 31 }
   0xd   : > { %v5584_v5 = vld [vmem:[%s9877_s1 + $0x2e0] sm:$0xf]  ;;  %v6646_v6 = vld [vmem:[%s9877_s1 + $0x2ec] sm:$0xf0]  ;;  %v5457_v7 = vor.u32 %v6614_v4, %v5456_v2 }
   0xe   : > { %v5585_v8 = vor.u32 %v6646_v6, %v5584_v5  ;;  %v5712_v9 = vld [vmem:[%s9877_s1 + $0x3e0] sm:$0xf]  ;;  %v6678_v10 = vld [vmem:[%s9877_s1 + $0x3ec] sm:$0xf0]  ;;  %2099 = vmatpush.bf16.msra.mxu0 %v5329_v3  ;;  %s10093_s25 = smov (!%p381_p3, %s4986_s25), 31 }
   0xf   : > { %v5312_v11 = vld [vmem:[%s9877_s1 + $0xc0] sm:$0xf]  ;;  %v5713_v12 = vor.u32 %v6678_v10, %v5712_v9  ;;  %v6578_v13 = vld [vmem:[%s9877_s1 + $0xcc] sm:$0xf0]  ;;  %2148 = vmatpush.bf16.msra.mxu1 %v5457_v7  ;;  %s6872_s29 = smul.u32 28, %s10093_s25  ;;  %s4989_s26 = sshll.u32 %s10093_s25, 3 }
  0x10   : > { %v5440_v14 = vld [vmem:[%s9877_s1 + $0x1c0] sm:$0xf]  ;;  %v6610_v15 = vld [vmem:[%s9877_s1 + $0x1cc] sm:$0xf0]  ;;  %2197 = vmatpush.bf16.msra.mxu2 %v5585_v8  ;;  %v5313_v16 = vor.u32 %v6578_v13, %v5312_v11  ;;  %s9855_s14 = scalar_lea.vmem %s9887_s11, %s4989_s26 }
  0x11   : > { %v5441_v17 = vor.u32 %v6610_v15, %v5440_v14  ;;  %v5568_v18 = vld [vmem:[%s9877_s1 + $0x2c0] sm:$0xf]  ;;  %v6642_v19 = vld [vmem:[%s9877_s1 + $0x2cc] sm:$0xf0]  ;;  %2246 = vmatpush.bf16.msra.mxu3 %v5713_v12  ;;  %s7180_s27 = scalar_lea.vmem %s9876_s0, %s6872_s29 }
  0x12   : > { %v5696_v20 = vld [vmem:[%s9877_s1 + $0x3c0] sm:$0xf]  ;;  %v5569_v21 = vor.u32 %v6642_v19, %v5568_v18  ;;  %v6674_v22 = vld [vmem:[%s9877_s1 + $0x3cc] sm:$0xf0]  ;;  %2100 = vmatpush.bf16.msra.mxu0 %v5313_v16 }
  0x13   : > { %v5296_v23 = vld [vmem:[%s9877_s1 + $0xa0] sm:$0xf]  ;;  %v6574_v24 = vld [vmem:[%s9877_s1 + $0xac] sm:$0xf0]  ;;  %v5697_v25 = vor.u32 %v6674_v22, %v5696_v20  ;;  %2149 = vmatpush.bf16.msra.mxu1 %v5441_v17 }
  0x14   : > { %v5424_v26 = vld [vmem:[%s9877_s1 + $0x1a0] sm:$0xf]  ;;  %v6606_v27 = vld [vmem:[%s9877_s1 + $0x1ac] sm:$0xf0]  ;;  %v5297_v29 = vor.u32 %v6574_v24, %v5296_v23  ;;  %2198 = vmatpush.bf16.msra.mxu2 %v5569_v21 }
  0x15   : > { %v5552_v28 = vld [vmem:[%s9877_s1 + $0x2a0] sm:$0xf]  ;;  %v6638_v30 = vld [vmem:[%s9877_s1 + $0x2ac] sm:$0xf0]  ;;  %v5425_v33 = vor.u32 %v6606_v27, %v5424_v26  ;;  %2247 = vmatpush.bf16.msra.mxu3 %v5697_v25 }
  0x16   : > { %v5680_v31 = vld [vmem:[%s9877_s1 + $0x3a0] sm:$0xf]  ;;  %v6670_v32 = vld [vmem:[%s9877_s1 + $0x3ac] sm:$0xf0]  ;;  %v5553_v34 = vor.u32 %v6638_v30, %v5552_v28  ;;  %2101 = vmatpush.bf16.msra.mxu0 %v5297_v29 }
  0x17   : > { %v5280_v35 = vld [vmem:[%s9877_s1 + $0x80] sm:$0xf]  ;;  %v6570_v36 = vld [vmem:[%s9877_s1 + $0x8c] sm:$0xf0]  ;;  %v5681_v38 = vor.u32 %v6670_v32, %v5680_v31  ;;  %2150 = vmatpush.bf16.msra.mxu1 %v5425_v33  ;;  %v6580_v33 = vld [vmem:[%s9877_s1 + $0xe4] sm:$0xf] }
  0x18   : > { %v5408_v37 = vld [vmem:[%s9877_s1 + $0x180] sm:$0xf]  ;;  %v6602_v39 = vld [vmem:[%s9877_s1 + $0x18c] sm:$0xf0]  ;;  %v5281_v44 = vor.u32 %v6570_v36, %v5280_v35  ;;  %2199 = vmatpush.bf16.msra.mxu2 %v5553_v34  ;;  %v5330_v34 = vld [vmem:[%s9877_s1 + $0xf0] sm:$0xf0] }
  0x19   : > { %v5536_v40 = vld [vmem:[%s9877_s1 + $0x280] sm:$0xf]  ;;  %v6634_v41 = vld [vmem:[%s9877_s1 + $0x28c] sm:$0xf0]  ;;  %v5409_v45 = vor.u32 %v6602_v39, %v5408_v37  ;;  %2248 = vmatpush.bf16.msra.mxu3 %v5681_v38 }
  0x1a   : > { %v5664_v42 = vld [vmem:[%s9877_s1 + $0x380] sm:$0xf]  ;;  %v6666_v43 = vld [vmem:[%s9877_s1 + $0x38c] sm:$0xf0]  ;;  %v5537_v46 = vor.u32 %v6634_v41, %v5536_v40  ;;  %2102 = vmatpush.bf16.msra.mxu0 %v5281_v44  ;;  %v6496_v44 = vld [vmem:[%s7180_s27 + $0x4] sm:$0xf] }
  0x1b   : > { %v5264_v47 = vld [vmem:[%s9877_s1 + $0x60] sm:$0xf]  ;;  %v6566_v48 = vld [vmem:[%s9877_s1 + $0x6c] sm:$0xf0]  ;;  %v5665_v50 = vor.u32 %v6666_v43, %v5664_v42  ;;  %2151 = vmatpush.bf16.msra.mxu1 %v5409_v45  ;;  %v6499_v43 = vld [vmem:[%s7180_s27 + $0x18] sm:$0xf0] }
  0x1c   : > { %v5392_v49 = vld [vmem:[%s9877_s1 + $0x160] sm:$0xf]  ;;  %v6598_v51 = vld [vmem:[%s9877_s1 + $0x16c] sm:$0xf0]  ;;  %v5265_v56 = vor.u32 %v6566_v48, %v5264_v47  ;;  %2200 = vmatpush.bf16.msra.mxu2 %v5537_v46  ;;  %v6576_v46 = vld [vmem:[%s9877_s1 + $0xc4] sm:$0xf] }
  0x1d   : > { %v5520_v52 = vld [vmem:[%s9877_s1 + $0x260] sm:$0xf]  ;;  %v6630_v53 = vld [vmem:[%s9877_s1 + $0x26c] sm:$0xf0]  ;;  %v5393_v57 = vor.u32 %v6598_v51, %v5392_v49  ;;  %2249 = vmatpush.bf16.msra.mxu3 %v5665_v50  ;;  %v5000_v49 = vld [vmem:[%s7180_s27 + $0x8] sm:$0xf]  ;;  %v5333_v51 = vor.u32 %v6580_v33, %v5330_v34 }
  0x1e   : > { %v5648_v54 = vld [vmem:[%s9877_s1 + $0x360] sm:$0xf]  ;;  %v6662_v55 = vld [vmem:[%s9877_s1 + $0x36c] sm:$0xf0]  ;;  %v5521_v58 = vor.u32 %v6630_v53, %v5520_v52  ;;  %2103 = vmatpush.bf16.msra.mxu0 %v5265_v56  ;;  %v6500_v50 = vld [vmem:[%s7180_s27 + $0x20] sm:$0xf0] }
  0x1f   : > { %v5248_v59 = vld [vmem:[%s9877_s1 + $0x40] sm:$0xf]  ;;  %v6562_v60 = vld [vmem:[%s9877_s1 + $0x4c] sm:$0xf0]  ;;  %v5649_v62 = vor.u32 %v6662_v55, %v5648_v54  ;;  %2152 = vmatpush.bf16.msra.mxu1 %v5393_v57  ;;  %v7207_v53 = vor.u32 %v6500_v50, %v5000_v49  ;;  %v6497_v54 = vld [vmem:[%s7180_s27 + $0xc] sm:$0xf] }
  0x20   : > { %v5376_v61 = vld [vmem:[%s9877_s1 + $0x140] sm:$0xf]  ;;  %v6594_v63 = vld [vmem:[%s9877_s1 + $0x14c] sm:$0xf0]  ;;  %v5249_v4 = vor.u32 %v6562_v60, %v5248_v59  ;;  %2201 = vmatpush.bf16.msra.mxu2 %v5521_v58  ;;  %v5002_v55 = vld [vmem:[%s7180_s27 + $0x24] sm:$0xf0] }
  0x21   : > { %v5504_v0 = vld [vmem:[%s9877_s1 + $0x240] sm:$0xf]  ;;  %v6626_v1 = vld [vmem:[%s9877_s1 + $0x24c] sm:$0xf0]  ;;  %v5377_v6 = vor.u32 %v6594_v63, %v5376_v61  ;;  %2250 = vmatpush.bf16.msra.mxu3 %v5649_v62  ;;  %v5314_v56 = vld [vmem:[%s9877_s1 + $0xd0] sm:$0xf0]  ;;  %v7214_v57 = vor.u32 %v6497_v54, %v5002_v55 }
  0x22   : > { %v5632_v2 = vld [vmem:[%s9877_s1 + $0x340] sm:$0xf]  ;;  %v6658_v3 = vld [vmem:[%s9877_s1 + $0x34c] sm:$0xf0]  ;;  %v5505_v7 = vor.u32 %v6626_v1, %v5504_v0  ;;  %2104 = vmatpush.bf16.msra.mxu0 %v5249_v4  ;;  %v5317_v63 = vor.u32 %v6576_v46, %v5314_v56  ;;  %v6568_v33 = vld [vmem:[%s9877_s1 + $0x84] sm:$0xf] }
  0x23   : > { %v5232_v5 = vld [vmem:[%s9877_s1 + $0x20] sm:$0xf]  ;;  %v6558_v8 = vld [vmem:[%s9877_s1 + $0x2c] sm:$0xf0]  ;;  %v5633_v11 = vor.u32 %v6658_v3, %v5632_v2  ;;  %2153 = vmatpush.bf16.msra.mxu1 %v5377_v6  ;;  %v5282_v34 = vld [vmem:[%s9877_s1 + $0x90] sm:$0xf0] }
  0x24   : > { %v5360_v9 = vld [vmem:[%s9877_s1 + $0x120] sm:$0xf]  ;;  %v6590_v10 = vld [vmem:[%s9877_s1 + $0x12c] sm:$0xf0]  ;;  %v5233_v16 = vor.u32 %v6558_v8, %v5232_v5  ;;  %2202 = vmatpush.bf16.msra.mxu2 %v5505_v7  ;;  %v6511_v46 = vld [vmem:[%s7180_s27 + $0x7c] sm:$0xf] }
  0x25   : > { %v5488_v12 = vld [vmem:[%s9877_s1 + $0x220] sm:$0xf]  ;;  %v6622_v13 = vld [vmem:[%s9877_s1 + $0x22c] sm:$0xf0]  ;;  %v5361_v20 = vor.u32 %v6590_v10, %v5360_v9  ;;  %2251 = vmatpush.bf16.msra.mxu3 %v5633_v11  ;;  %v6572_v9 = vld [vmem:[%s9877_s1 + $0xa4] sm:$0xf] }
  0x26   : > { %v5616_v14 = vld [vmem:[%s9877_s1 + $0x320] sm:$0xf]  ;;  %v6654_v15 = vld [vmem:[%s9877_s1 + $0x32c] sm:$0xf0]  ;;  %v5489_v21 = vor.u32 %v6622_v13, %v5488_v12  ;;  %2105 = vmatpush.bf16.msra.mxu0 %v5233_v16  ;;  %v5298_v10 = vld [vmem:[%s9877_s1 + $0xb0] sm:$0xf0] }
  0x27   : > { %v5216_v17 = vld [vmem:[%s9877_s1] sm:$0xf]  ;;  %v6554_v18 = vld [vmem:[%s9877_s1 + $0xc] sm:$0xf0]  ;;  %v5617_v24 = vor.u32 %v6654_v15, %v5616_v14  ;;  %2154 = vmatpush.bf16.msra.mxu1 %v5361_v20  ;;  %v5301_v11 = vor.u32 %v6572_v9, %v5298_v10  ;;  %v5020_v16 = vld [vmem:[%s7180_s27 + $0x38] sm:$0xf] }
  0x28   : > { %v5344_v19 = vld [vmem:[%s9877_s1 + $0x100] sm:$0xf]  ;;  %v6586_v22 = vld [vmem:[%s9877_s1 + $0x10c] sm:$0xf0]  ;;  %v5217_v30 = vor.u32 %v6554_v18, %v5216_v17  ;;  %2203 = vmatpush.bf16.msra.mxu2 %v5489_v21  ;;  %v6506_v17 = vld [vmem:[%s7180_s27 + $0x50] sm:$0xf0] }
  0x29   : > { %v5472_v23 = vld [vmem:[%s9877_s1 + $0x200] sm:$0xf]  ;;  %v6618_v25 = vld [vmem:[%s9877_s1 + $0x20c] sm:$0xf0]  ;;  %v5345_v35 = vor.u32 %v6586_v22, %v5344_v19  ;;  %2252 = vmatpush.bf16.msra.mxu3 %v5617_v24  ;;  %v6503_v18 = vld [vmem:[%s7180_s27 + $0x3c] sm:$0xf]  ;;  %v7264_v24 = vor.u32 %v6506_v17, %v5020_v16 }
  0x2a   : > { %v5600_v26 = vld [vmem:[%s9877_s1 + $0x300] sm:$0xf]  ;;  %v6650_v27 = vld [vmem:[%s9877_s1 + $0x30c] sm:$0xf0]  ;;  %v5473_v36 = vor.u32 %v6618_v25, %v5472_v23  ;;  %2106 = vmatpush.bf16.msra.mxu0 %v5217_v30  ;;  %v5022_v19 = vld [vmem:[%s7180_s27 + $0x54] sm:$0xf0] }
  0x2b   : > { %v6096_v28 = vld [vmem:[%s9877_s1 + $0x6e0] sm:$0xf]  ;;  %v6774_v29 = vld [vmem:[%s9877_s1 + $0x6ec] sm:$0xf0]  ;;  %v5601_v41 = vor.u32 %v6650_v27, %v5600_v26  ;;  %2155 = vmatpush.bf16.msra.mxu1 %v5345_v35  ;;  %v6507_v21 = vld [vmem:[%s7180_s27 + $0x58] sm:$0xf0]  ;;  %v7266_v25 = vor.u32 %v6503_v18, %v5022_v19 }
  0x2c   : > { %v5840_v31 = vld [vmem:[%s9877_s1 + $0x4e0] sm:$0xf]  ;;  %v6710_v32 = vld [vmem:[%s9877_s1 + $0x4ec] sm:$0xf0]  ;;  %v6097_v45 = vor.u32 %v6774_v29, %v6096_v28  ;;  %2204 = vmatpush.bf16.msra.mxu2 %v5473_v36  ;;  %v6504_v22 = vld [vmem:[%s7180_s27 + $0x44] sm:$0xf]  ;;  %v5285_v36 = vor.u32 %v6568_v33, %v5282_v34 }
  0x2d   : > { %v5968_v37 = vld [vmem:[%s9877_s1 + $0x5e0] sm:$0xf]  ;;  %v6742_v38 = vld [vmem:[%s9877_s1 + $0x5ec] sm:$0xf0]  ;;  %v5841_v58 = vor.u32 %v6710_v32, %v5840_v31  ;;  %2253 = vmatpush.bf16.msra.mxu3 %v5601_v41  ;;  %9972 = vst [vmem:[#allocation4_spill] sm:$0xff] %v7264_v24 }
  0x2e   : > { %v6080_v39 = vld [vmem:[%s9877_s1 + $0x6c0] sm:$0xf]  ;;  %v6770_v40 = vld [vmem:[%s9877_s1 + $0x6cc] sm:$0xf0]  ;;  %v5969_v59 = vor.u32 %v6742_v38, %v5968_v37  ;;  %9973 = vst [vmem:[#allocation5_spill] sm:$0xff] %v7266_v25 }
  0x2f   : > { %v4992_v42 = vld [vmem:[%s7180_s27] sm:$0xf]  ;;  %v6081_v60 = vor.u32 %v6770_v40, %v6080_v39  ;;  %v6706_v62 = vld [vmem:[%s9877_s1 + $0x4cc] sm:$0xf0]  ;;  %2205 = vmatmul.bf16.vlgmr.msra.gmra.mxu2 %v7207_v53  ;;  %2295 = vmatpush.bf16.msrb.mxu0 %v5841_v58  ;;  %v6513_v41 = vld [vmem:[%s7180_s27 + $0x88] sm:$0xf0] }
  0x30   : > { %v7200_v47 = vor.u32 %v6499_v43, %v4992_v42  ;;  %v4994_v48 = vld [vmem:[%s7180_s27 + $0x1c] sm:$0xf0]  ;;  %2393 = vmatpush.bf16.msrb.mxu2 %v6097_v45  ;;  %v6738_v1 = vld [vmem:[%s9877_s1 + $0x5cc] sm:$0xf0]  ;;  %2254 = vmatmul.bf16.vlgmr.msra.gmra.mxu3 %v7214_v57  ;;  %v6510_v42 = vld [vmem:[%s7180_s27 + $0x74] sm:$0xf] }
  0x31   : > { %v7205_v52 = vor.u32 %v6496_v44, %v4994_v48  ;;  %v5824_v61 = vld [vmem:[%s9877_s1 + $0x4c0] sm:$0xf]  ;;  %2442 = vmatpush.bf16.msrb.mxu3 %v5333_v51  ;;  %2344 = vmatpush.bf16.msrb.mxu1 %v5969_v59  ;;  %v6766_v5 = vld [vmem:[%s9877_s1 + $0x6ac] sm:$0xf0]  ;;  %v5056_v44 = vld [vmem:[%s7180_s27 + $0x78] sm:$0xf] }
  0x32   : > { %9970 = vst [vmem:[#allocation2_spill] sm:$0xff] %v7200_v47  ;;  %2107 = vmatmul.bf16.vlgmr.msra.gmra.mxu0 %v7200_v47  ;;  %v5952_v0 = vld [vmem:[%s9877_s1 + $0x5c0] sm:$0xf]  ;;  %v5825_v2 = vor.u32 %v6706_v62, %v5824_v61  ;;  %v6702_v8 = vld [vmem:[%s9877_s1 + $0x4ac] sm:$0xf0] }
  0x33   : > { %9971 = vst [vmem:[#allocation3_spill] sm:$0xff] %v7205_v52  ;;  %2156 = vmatmul.bf16.vlgmr.msra.gmra.mxu1 %v7205_v52  ;;  %v5953_v3 = vor.u32 %v6738_v1, %v5952_v0  ;;  %v6064_v4 = vld [vmem:[%s9877_s1 + $0x6a0] sm:$0xf]  ;;  %v6734_v13 = vld [vmem:[%s9877_s1 + $0x5ac] sm:$0xf0] }
  0x34   : > { %2394 = vmatpush.bf16.msrb.mxu2 %v6081_v60  ;;  %v5808_v6 = vld [vmem:[%s9877_s1 + $0x4a0] sm:$0xf]  ;;  %v6065_v7 = vor.u32 %v6766_v5, %v6064_v4  ;;  %2296 = vmatpush.bf16.msrb.mxu0 %v5825_v2  ;;  %v6762_v29 = vld [vmem:[%s9877_s1 + $0x68c] sm:$0xf0]  ;;  %v6514_v45 = vld [vmem:[%s7180_s27 + $0x90] sm:$0xf0] }
  0x35   : > { %2443 = vmatpush.bf16.msrb.mxu3 %v5317_v63  ;;  %v5936_v12 = vld [vmem:[%s9877_s1 + $0x5a0] sm:$0xf]  ;;  %v5809_v14 = vor.u32 %v6702_v8, %v5808_v6  ;;  %2345 = vmatpush.bf16.msrb.mxu1 %v5953_v3  ;;  %v6698_v32 = vld [vmem:[%s9877_s1 + $0x48c] sm:$0xf0]  ;;  %v5058_v48 = vld [vmem:[%s7180_s27 + $0x94] sm:$0xf0]  ;;  %v7312_v51 = vor.u32 %v6514_v45, %v5056_v44 }
  0x36   : > { %v5937_v15 = vor.u32 %v6734_v13, %v5936_v12  ;;  %v5028_v20 = vld [vmem:[%s7180_s27 + $0x40] sm:$0xf]  ;;  %v6730_v38 = vld [vmem:[%s9877_s1 + $0x58c] sm:$0xf0]  ;;  %v7314_v54 = vor.u32 %v6511_v46, %v5058_v48  ;;  %v6564_v61 = vld [vmem:[%s9877_s1 + $0x64] sm:$0xf] }
  0x37   : > { %v5030_v23 = vld [vmem:[%s7180_s27 + $0x5c] sm:$0xf0]  ;;  %v7268_v26 = vor.u32 %v6507_v21, %v5028_v20  ;;  %v5048_v40 = vld [vmem:[%s7180_s27 + $0x70] sm:$0xf]  ;;  %v5266_v62 = vld [vmem:[%s9877_s1 + $0x70] sm:$0xf0] }
  0x38   : > { %2395 = vmatpush.bf16.msrb.mxu2 %v6065_v7  ;;  %2297 = vmatpush.bf16.msrb.mxu0 %v5809_v14  ;;  %v7270_v27 = vor.u32 %v6504_v22, %v5030_v23  ;;  %v6048_v28 = vld [vmem:[%s9877_s1 + $0x680] sm:$0xf]  ;;  %v5050_v43 = vld [vmem:[%s7180_s27 + $0x8c] sm:$0xf0]  ;;  %v7308_v49 = vor.u32 %v6513_v41, %v5048_v40  ;;  %v5269_v0 = vor.u32 %v6564_v61, %v5266_v62  ;;  %v5076_v4 = vld [vmem:[%s7180_s27 + $0xa8] sm:$0xf] }
  0x39   : > { %2444 = vmatpush.bf16.msrb.mxu3 %v5301_v11  ;;  %2346 = vmatpush.bf16.msrb.mxu1 %v5937_v15  ;;  %v5792_v30 = vld [vmem:[%s9877_s1 + $0x480] sm:$0xf]  ;;  %v6049_v31 = vor.u32 %v6762_v29, %v6048_v28  ;;  %v7310_v50 = vor.u32 %v6510_v42, %v5050_v43  ;;  %v6758_v56 = vld [vmem:[%s9877_s1 + $0x66c] sm:$0xf0]  ;;  %v6520_v5 = vld [vmem:[%s7180_s27 + $0xc0] sm:$0xf0] }
  0x3a   : > { %v5793_v35 = vor.u32 %v6698_v32, %v5792_v30  ;;  %v5920_v37 = vld [vmem:[%s9877_s1 + $0x580] sm:$0xf]  ;;  %9974 = vst [vmem:[#allocation6_spill] sm:$0xff] %v7308_v49  ;;  %v6694_v60 = vld [vmem:[%s9877_s1 + $0x46c] sm:$0xf0]  ;;  %v7352_v12 = vor.u32 %v6520_v5, %v5076_v4 }
  0x3b   : > { %v5921_v39 = vor.u32 %v6730_v38, %v5920_v37  ;;  %9975 = vst [vmem:[#allocation7_spill] sm:$0xff] %v7310_v50  ;;  %v6032_v55 = vld [vmem:[%s9877_s1 + $0x660] sm:$0xf]  ;;  %v6726_v2 = vld [vmem:[%s9877_s1 + $0x56c] sm:$0xf0] }
  0x3c   : > { %2396 = vmatpush.bf16.msrb.mxu2 %v6049_v31  ;;  %2298 = vmatpush.bf16.msrb.mxu0 %v5793_v35  ;;  %v5776_v58 = vld [vmem:[%s9877_s1 + $0x460] sm:$0xf]  ;;  %v6033_v59 = vor.u32 %v6758_v56, %v6032_v55  ;;  %v6517_v6 = vld [vmem:[%s7180_s27 + $0xac] sm:$0xf]  ;;  %v5078_v7 = vld [vmem:[%s7180_s27 + $0xc4] sm:$0xf0] }
  0x3d   : > { %2445 = vmatpush.bf16.msrb.mxu3 %v5285_v36  ;;  %2347 = vmatpush.bf16.msrb.mxu1 %v5921_v39  ;;  %v5777_v63 = vor.u32 %v6694_v60, %v5776_v58  ;;  %v5904_v1 = vld [vmem:[%s9877_s1 + $0x560] sm:$0xf]  ;;  %v5084_v8 = vld [vmem:[%s7180_s27 + $0xb0] sm:$0xf]  ;;  %v6521_v9 = vld [vmem:[%s7180_s27 + $0xc8] sm:$0xf0]  ;;  %v7354_v13 = vor.u32 %v6517_v6, %v5078_v7 }
  0x3e   : > { %v5905_v3 = vor.u32 %v6726_v2, %v5904_v1  ;;  %v6518_v10 = vld [vmem:[%s7180_s27 + $0xb4] sm:$0xf]  ;;  %v5086_v11 = vld [vmem:[%s7180_s27 + $0xcc] sm:$0xf0]  ;;  %9976 = vst [vmem:[#allocation8_spill] sm:$0xff] %v7352_v12  ;;  %v7356_v14 = vor.u32 %v6521_v9, %v5084_v8 }
  0x3f   : > { %2210 = vmatmul.bf16.gmra.mxu2 %v7268_v26  ;;  %9977 = vst [vmem:[#allocation9_spill] sm:$0xff] %v7354_v13  ;;  %v7358_v15 = vor.u32 %v6518_v10, %v5086_v11  ;;  %v6016_v16 = vld [vmem:[%s9877_s1 + $0x640] sm:$0xf]  ;;  %v6754_v17 = vld [vmem:[%s9877_s1 + $0x64c] sm:$0xf0] }
  0x40   : > { %2259 = vmatmul.bf16.gmra.mxu3 %v7270_v27  ;;  %2397 = vmatpush.bf16.msrb.mxu2 %v6033_v59  ;;  %v5760_v18 = vld [vmem:[%s9877_s1 + $0x440] sm:$0xf]  ;;  %v6017_v19 = vor.u32 %v6754_v17, %v6016_v16  ;;  %v6690_v20 = vld [vmem:[%s9877_s1 + $0x44c] sm:$0xf0]  ;;  %v6560_v21 = vld [vmem:[%s9877_s1 + $0x44] sm:$0xf] }
  0x41   : > { %2299 = vmatpush.bf16.msrb.mxu0 %v5777_v63  ;;  %2446 = vmatpush.bf16.msrb.mxu3 %v5269_v0  ;;  %v5250_v22 = vld [vmem:[%s9877_s1 + $0x50] sm:$0xf0]  ;;  %v5761_v23 = vor.u32 %v6690_v20, %v5760_v18  ;;  %v5888_v29 = vld [vmem:[%s9877_s1 + $0x540] sm:$0xf]  ;;  %v6722_v30 = vld [vmem:[%s9877_s1 + $0x54c] sm:$0xf0] }
  0x42   : > { %2112 = vmatmul.bf16.gmra.mxu0 %v7264_v24  ;;  %2348 = vmatpush.bf16.msrb.mxu1 %v5905_v3  ;;  %v5253_v28 = vor.u32 %v6560_v21, %v5250_v22  ;;  %v5889_v31 = vor.u32 %v6722_v30, %v5888_v29  ;;  %v5104_v32 = vld [vmem:[%s7180_s27 + $0xe0] sm:$0xf]  ;;  %v6527_v33 = vld [vmem:[%s7180_s27 + $0xf8] sm:$0xf0]  ;;  %v6524_v34 = vld [vmem:[%s7180_s27 + $0xe4] sm:$0xf] }
  0x43   : > { %2161 = vmatmul.bf16.gmra.mxu1 %v7266_v25  ;;  %v5106_v35 = vld [vmem:[%s7180_s27 + $0xfc] sm:$0xf0]  ;;  %v5112_v36 = vld [vmem:[%s7180_s27 + $0xe8] sm:$0xf]  ;;  %v6528_v37 = vld [vmem:[%s7180_s27 + $0x100] sm:$0xf0]  ;;  %v7396_v40 = vor.u32 %v6527_v33, %v5104_v32 }
  0x44   : > { %2398 = vmatpush.bf16.msrb.mxu2 %v6017_v19  ;;  %v6525_v38 = vld [vmem:[%s7180_s27 + $0xec] sm:$0xf]  ;;  %v5114_v39 = vld [vmem:[%s7180_s27 + $0x104] sm:$0xf0]  ;;  %v7398_v41 = vor.u32 %v6524_v34, %v5106_v35  ;;  %v7400_v42 = vor.u32 %v6528_v37, %v5112_v36  ;;  %v6000_v44 = vld [vmem:[%s9877_s1 + $0x620] sm:$0xf] }
  0x45   : > { %2300 = vmatpush.bf16.msrb.mxu0 %v5761_v23  ;;  %2447 = vmatpush.bf16.msrb.mxu3 %v5253_v28  ;;  %9978 = vst [vmem:[#allocation10_spill] sm:$0xff] %v7396_v40  ;;  %v7402_v43 = vor.u32 %v6525_v38, %v5114_v39  ;;  %v6750_v45 = vld [vmem:[%s9877_s1 + $0x62c] sm:$0xf0]  ;;  %v5744_v46 = vld [vmem:[%s9877_s1 + $0x420] sm:$0xf] }
  0x46   : > { %2349 = vmatpush.bf16.msrb.mxu1 %v5889_v31  ;;  %9979 = vst [vmem:[#allocation11_spill] sm:$0xff] %v7398_v41  ;;  %v6001_v48 = vor.u32 %v6750_v45, %v6000_v44  ;;  %v6686_v55 = vld [vmem:[%s9877_s1 + $0x42c] sm:$0xf0]  ;;  %v6556_v56 = vld [vmem:[%s9877_s1 + $0x24] sm:$0xf] }
  0x47   : > { %v5234_v58 = vld [vmem:[%s9877_s1 + $0x30] sm:$0xf0]  ;;  %v5745_v59 = vor.u32 %v6686_v55, %v5744_v46  ;;  %v5872_v61 = vld [vmem:[%s9877_s1 + $0x520] sm:$0xf]  ;;  %v6718_v62 = vld [vmem:[%s9877_s1 + $0x52c] sm:$0xf0] }
  0x48   : > { %v5237_v60 = vor.u32 %v6556_v56, %v5234_v58  ;;  %2399 = vmatpush.bf16.msrb.mxu2 %v6001_v48  ;;  %v5873_v63 = vor.u32 %v6718_v62, %v5872_v61  ;;  %v5132_v0 = vld [vmem:[%s7180_s27 + $0x118] sm:$0xf]  ;;  %v6534_v1 = vld [vmem:[%s7180_s27 + $0x130] sm:$0xf0]  ;;  %v6531_v2 = vld [vmem:[%s7180_s27 + $0x11c] sm:$0xf] }
  0x49   : > { %2301 = vmatpush.bf16.msrb.mxu0 %v5745_v59  ;;  %v5134_v3 = vld [vmem:[%s7180_s27 + $0x134] sm:$0xf0]  ;;  %v5140_v4 = vld [vmem:[%s7180_s27 + $0x120] sm:$0xf]  ;;  %v6535_v5 = vld [vmem:[%s7180_s27 + $0x138] sm:$0xf0]  ;;  %v7440_v8 = vor.u32 %v6534_v1, %v5132_v0 }
  0x4a   : > { %2448 = vmatpush.bf16.msrb.mxu3 %v5237_v60  ;;  %2350 = vmatpush.bf16.msrb.mxu1 %v5873_v63  ;;  %v6532_v6 = vld [vmem:[%s7180_s27 + $0x124] sm:$0xf]  ;;  %v5142_v7 = vld [vmem:[%s7180_s27 + $0x13c] sm:$0xf0]  ;;  %v7442_v9 = vor.u32 %v6531_v2, %v5134_v3  ;;  %v7444_v10 = vor.u32 %v6535_v5, %v5140_v4  ;;  %v6746_v17 = vld [vmem:[%s9877_s1 + $0x60c] sm:$0xf0] }
  0x4b   : > { %9980 = vst [vmem:[#allocation12_spill] sm:$0xff] %v7440_v8  ;;  %v7446_v11 = vor.u32 %v6532_v6, %v5142_v7  ;;  %v5984_v16 = vld [vmem:[%s9877_s1 + $0x600] sm:$0xf]  ;;  %v6682_v20 = vld [vmem:[%s9877_s1 + $0x40c] sm:$0xf0] }
  0x4c   : > { %9981 = vst [vmem:[#allocation13_spill] sm:$0xff] %v7442_v9  ;;  %v5728_v18 = vld [vmem:[%s9877_s1 + $0x400] sm:$0xf]  ;;  %v5985_v19 = vor.u32 %v6746_v17, %v5984_v16  ;;  %v6552_v21 = vld [vmem:[%s9877_s1 + $0x4] sm:$0xf] }
  0x4d   : > { %v5218_v22 = vld [vmem:[%s9877_s1 + $0x10] sm:$0xf0]  ;;  %v5729_v23 = vor.u32 %v6682_v20, %v5728_v18  ;;  %v5856_v29 = vld [vmem:[%s9877_s1 + $0x500] sm:$0xf]  ;;  %v6714_v30 = vld [vmem:[%s9877_s1 + $0x50c] sm:$0xf0] }
  0x4e   : > { %v5221_v28 = vor.u32 %v6552_v21, %v5218_v22  ;;  %2400 = vmatpush.bf16.msrb.mxu2 %v5985_v19  ;;  %v5857_v31 = vor.u32 %v6714_v30, %v5856_v29  ;;  %v5160_v32 = vld [vmem:[%s7180_s27 + $0x150] sm:$0xf]  ;;  %v6541_v33 = vld [vmem:[%s7180_s27 + $0x168] sm:$0xf0]  ;;  %v6538_v34 = vld [vmem:[%s7180_s27 + $0x154] sm:$0xf] }
  0x4f   : > { %2215 = vmatmul.bf16.gmra.mxu2 %v7312_v51  ;;  %2302 = vmatpush.bf16.msrb.mxu0 %v5729_v23  ;;  %v5162_v35 = vld [vmem:[%s7180_s27 + $0x16c] sm:$0xf0]  ;;  %v5168_v36 = vld [vmem:[%s7180_s27 + $0x158] sm:$0xf]  ;;  %v6542_v37 = vld [vmem:[%s7180_s27 + $0x170] sm:$0xf0]  ;;  %v7484_v44 = vor.u32 %v6541_v33, %v5160_v32 }
  0x50   : > { %2264 = vmatmul.bf16.gmra.mxu3 %v7314_v54  ;;  %2351 = vmatpush.bf16.msrb.mxu1 %v5857_v31  ;;  %v6539_v38 = vld [vmem:[%s7180_s27 + $0x15c] sm:$0xf]  ;;  %v5170_v39 = vld [vmem:[%s7180_s27 + $0x174] sm:$0xf0]  ;;  %v7486_v45 = vor.u32 %v6538_v34, %v5162_v35  ;;  %v7488_v46 = vor.u32 %v6542_v37, %v5168_v36  ;;  %v6676_v55 = vld [vmem:[%s9877_s1 + $0x3e4] sm:$0xf] }
  0x51   : > { %2449 = vmatpush.bf16.msrb.mxu3 %v5221_v28  ;;  %9982 = vst [vmem:[#allocation14_spill] sm:$0xff] %v7484_v44  ;;  %v7490_v48 = vor.u32 %v6539_v38, %v5170_v39  ;;  %v5714_v56 = vld [vmem:[%s9877_s1 + $0x3f0] sm:$0xf0]  ;;  %v6612_v58 = vld [vmem:[%s9877_s1 + $0x1e4] sm:$0xf] }
  0x52   : > { %2117 = vmatmul.bf16.gmra.mxu0 %v7308_v49  ;;  %9983 = vst [vmem:[#allocation15_spill] sm:$0xff] %v7486_v45  ;;  %v5717_v59 = vor.u32 %v6676_v55, %v5714_v56  ;;  %v5458_v60 = vld [vmem:[%s9877_s1 + $0x1f0] sm:$0xf0]  ;;  %v6708_v61 = vld [vmem:[%s9877_s1 + $0x4e4] sm:$0xf] }
  0x53   : > { %2166 = vmatmul.bf16.gmra.mxu1 %v7310_v50  ;;  %9984 = vst [vmem:[#allocation16_spill] sm:$0xff] %v7490_v48  ;;  %v5842_v62 = vld [vmem:[%s9877_s1 + $0x4f0] sm:$0xf0]  ;;  %v5461_v63 = vor.u32 %v6612_v58, %v5458_v60  ;;  %v6644_v1 = vld [vmem:[%s9877_s1 + $0x2e4] sm:$0xf] }
  0x54   : > { %v5845_v0 = vor.u32 %v6708_v61, %v5842_v62  ;;  %2589 = vmatpush.bf16.msra.mxu2 %v5717_v59  ;;  %v5586_v2 = vld [vmem:[%s9877_s1 + $0x2f0] sm:$0xf0]  ;;  %v5188_v4 = vld [vmem:[%s7180_s27 + $0x188] sm:$0xf]  ;;  %v6548_v5 = vld [vmem:[%s7180_s27 + $0x1a0] sm:$0xf0] }
  0x55   : > { %2491 = vmatpush.bf16.msra.mxu0 %v5461_v63  ;;  %v5589_v3 = vor.u32 %v6644_v1, %v5586_v2  ;;  %v6545_v6 = vld [vmem:[%s7180_s27 + $0x18c] sm:$0xf]  ;;  %v5190_v7 = vld [vmem:[%s7180_s27 + $0x1a4] sm:$0xf0]  ;;  %v5196_v16 = vld [vmem:[%s7180_s27 + $0x190] sm:$0xf]  ;;  %v7528_v20 = vor.u32 %v6548_v5, %v5188_v4 }
  0x56   : > { %2638 = vmatpush.bf16.msra.mxu3 %v5845_v0  ;;  %v6549_v17 = vld [vmem:[%s7180_s27 + $0x1a8] sm:$0xf0]  ;;  %v6546_v18 = vld [vmem:[%s7180_s27 + $0x194] sm:$0xf]  ;;  %v5198_v19 = vld [vmem:[%s7180_s27 + $0x1ac] sm:$0xf0]  ;;  %v7530_v21 = vor.u32 %v6545_v6, %v5190_v7 }
  0x57   : > { %2540 = vmatpush.bf16.msra.mxu1 %v5589_v3  ;;  %9985 = vst [vmem:[#allocation17_spill] sm:$0xff] %v7528_v20  ;;  %v7532_v22 = vor.u32 %v6549_v17, %v5196_v16  ;;  %v7534_v23 = vor.u32 %v6546_v18, %v5198_v19  ;;  %v6672_v28 = vld [vmem:[%s9877_s1 + $0x3c4] sm:$0xf]  ;;  %v5698_v29 = vld [vmem:[%s9877_s1 + $0x3d0] sm:$0xf0] }
  0x58   : > { %9986 = vst [vmem:[#allocation18_spill] sm:$0xff] %v7530_v21  ;;  %v6608_v30 = vld [vmem:[%s9877_s1 + $0x1c4] sm:$0xf]  ;;  %v5701_v31 = vor.u32 %v6672_v28, %v5698_v29  ;;  %v5442_v32 = vld [vmem:[%s9877_s1 + $0x1d0] sm:$0xf0] }
  0x59   : > { %9987 = vst [vmem:[#allocation19_spill] sm:$0xff] %v7532_v22  ;;  %v6704_v33 = vld [vmem:[%s9877_s1 + $0x4c4] sm:$0xf]  ;;  %v5826_v34 = vld [vmem:[%s9877_s1 + $0x4d0] sm:$0xf0]  ;;  %v5445_v35 = vor.u32 %v6608_v30, %v5442_v32 }
  0x5a   : > { %9988 = vst [vmem:[#allocation20_spill] sm:$0xff] %v7534_v23  ;;  %v5829_v36 = vor.u32 %v6704_v33, %v5826_v34  ;;  %v681_v37 = vld [vmem:[%s9878_s2] sm:$0xf]  ;;  %2590 = vmatpush.bf16.msra.mxu2 %v5701_v31  ;;  %v6640_v38 = vld [vmem:[%s9877_s1 + $0x2c4] sm:$0xf] }
  0x5b   : > { %2492 = vmatpush.bf16.msra.mxu0 %v5445_v35  ;;  %v5570_v39 = vld [vmem:[%s9877_s1 + $0x2d0] sm:$0xf0]  ;;  %v7567_v55 = vperm.slane %v681_v37, 0  ;;  %v5008_v58 = vld [vmem:[%s7180_s27 + $0x10] sm:$0xf] }
  0x5c   : > { %2639 = vmatpush.bf16.msra.mxu3 %v5829_v36  ;;  %v5573_v56 = vor.u32 %v6640_v38, %v5570_v39  ;;  %v6501_v59 = vld [vmem:[%s7180_s27 + $0x28] sm:$0xf0]  ;;  %v6498_v60 = vld [vmem:[%s7180_s27 + $0x14] sm:$0xf]  ;;  %v5010_v61 = vld [vmem:[%s7180_s27 + $0x2c] sm:$0xf0] }
  0x5d   : > { %v5016_v62 = vld [vmem:[%s7180_s27 + $0x18] sm:$0xf]  ;;  %v6502_v63 = vld [vmem:[%s7180_s27 + $0x30] sm:$0xf0]  ;;  %v7575_v0 = vor.u32 %v6501_v59, %v5008_v58  ;;  %v7577_v2 = vor.u32 %v6498_v60, %v5010_v61  ;;  %v6668_v7 = vld [vmem:[%s9877_s1 + $0x3a4] sm:$0xf] }
  0x5e   : > { %2541 = vmatpush.bf16.msra.mxu1 %v5573_v56  ;;  %v7579_v3 = vor.u32 %v6502_v63, %v5016_v62  ;;  %v5682_v16 = vld [vmem:[%s9877_s1 + $0x3b0] sm:$0xf0]  ;;  %v6604_v17 = vld [vmem:[%s9877_s1 + $0x1a4] sm:$0xf]  ;;  %v5036_v60 = vld [vmem:[%s7180_s27 + $0x48] sm:$0xf] }
  0x5f   : > { %2220 = vmatmul.bf16.gmra.mxu2 %v7356_v14  ;;  %9989 = vst [vmem:[#allocation21_spill] sm:$0xff] %v7575_v0  ;;  %v5685_v18 = vor.u32 %v6668_v7, %v5682_v16  ;;  %v5426_v19 = vld [vmem:[%s9877_s1 + $0x1b0] sm:$0xf0]  ;;  %v6700_v28 = vld [vmem:[%s9877_s1 + $0x4a4] sm:$0xf] }
  0x60   : > { %2269 = vmatmul.bf16.gmra.mxu3 %v7358_v15  ;;  %9990 = vst [vmem:[#allocation22_spill] sm:$0xff] %v7577_v2  ;;  %v5810_v29 = vld [vmem:[%s9877_s1 + $0x4b0] sm:$0xf0]  ;;  %v5429_v31 = vor.u32 %v6604_v17, %v5426_v19  ;;  %v6636_v39 = vld [vmem:[%s9877_s1 + $0x2a4] sm:$0xf] }
  0x61   : > { %9991 = vst [vmem:[#allocation23_spill] sm:$0xff] %v7579_v3  ;;  %v5813_v32 = vor.u32 %v6700_v28, %v5810_v29  ;;  %2591 = vmatpush.bf16.msra.mxu2 %v5685_v18  ;;  %v5554_v56 = vld [vmem:[%s9877_s1 + $0x2b0] sm:$0xf0]  ;;  %v6508_v61 = vld [vmem:[%s7180_s27 + $0x60] sm:$0xf0] }
  0x62   : > { %2122 = vmatmul.bf16.gmra.mxu0 %v7352_v12  ;;  %v5557_v59 = vor.u32 %v6636_v39, %v5554_v56  ;;  %v6505_v62 = vld [vmem:[%s7180_s27 + $0x4c] sm:$0xf]  ;;  %v5038_v63 = vld [vmem:[%s7180_s27 + $0x64] sm:$0xf0]  ;;  %v5794_v39 = vld [vmem:[%s9877_s1 + $0x490] sm:$0xf0] }
  0x63   : > { %2171 = vmatmul.bf16.gmra.mxu1 %v7354_v13  ;;  %2493 = vmatpush.bf16.msra.mxu0 %v5429_v31  ;;  %v7621_v18 = vor.u32 %v6505_v62, %v5038_v63 }
  0x64   : > { %2640 = vmatpush.bf16.msra.mxu3 %v5813_v32  ;;  %2542 = vmatpush.bf16.msra.mxu1 %v5557_v59  ;;  %v6664_v32 = vld [vmem:[%s9877_s1 + $0x384] sm:$0xf] }
  0x65   : > { %9992 = vst [vmem:[#allocation24_spill] sm:$0xff] %v7621_v18 }
  0x6f   : > { %2225 = vmatmul.bf16.gmra.mxu2 %v7400_v42 }
  0x70   : > { %2274 = vmatmul.bf16.gmra.mxu3 %v7402_v43 }
  0x72   : > { %2127 = vmatmul.bf16.gmra.mxu0 %v7396_v40 }
  0x73   : > { %2176 = vmatmul.bf16.gmra.mxu1 %v7398_v41 }
  0x7f   : > { %2230 = vmatmul.bf16.gmra.mxu2 %v7444_v10 }
  0x80   : > { %2279 = vmatmul.bf16.gmra.mxu3 %v7446_v11 }
  0x82   : > { %2132 = vmatmul.bf16.gmra.mxu0 %v7440_v8 }
  0x83   : > { %2181 = vmatmul.bf16.gmra.mxu1 %v7442_v9 }
  0x8f   : > { %2235 = vmatmul.bf16.gmra.mxu2 %v7488_v46 }
  0x90   : > { %2284 = vmatmul.bf16.gmra.mxu3 %v7490_v48 }
  0x92   : > { %2137 = vmatmul.bf16.gmra.mxu0 %v7484_v44 }
  0x93   : > { %2186 = vmatmul.bf16.gmra.mxu1 %v7486_v45 }
  0x9f   : > { %2240 = vmatmul.bf16.gmra.mxu2 %v7532_v22 }
  0xa0   : > { %2289 = vmatmul.bf16.gmra.mxu3 %v7534_v23 }
  0xa2   : > { %2142 = vmatmul.bf16.gmra.mxu0 %v7528_v20 }
  0xa3   : > { %2191 = vmatmul.bf16.gmra.mxu1 %v7530_v21 }
  0xaf   : > { %v2108_v1 = vpop.f32.mrf.mxu0  ;;  %2401 = vmatmul.bf16.vlgmr.msrb.gmra.mxu2 %v7579_v3 }
  0xb0   : > { %v2109_v4 = vadd.f32 %v2108_v1, %v7567_v55  ;;  %v2157_v5 = vpop.f32.mrf.mxu1  ;;  %2450 = vmatmul.bf16.vlgmr.msrb.gmra.mxu3 %v7200_v47  ;;  %v5044_v1 = vld [vmem:[%s7180_s27 + $0x50] sm:$0xf] }
  0xb2   : > { %v2158_v6 = vadd.f32 %v2157_v5, %v2109_v4  ;;  %2303 = vmatmul.bf16.vlgmr.msrb.gmra.mxu0 %v7575_v0  ;;  %v2206_v30 = vpop.f32.mrf.mxu2  ;;  %v6509_v4 = vld [vmem:[%s7180_s27 + $0x68] sm:$0xf0] }
  0xb3   : > { %2352 = vmatmul.bf16.vlgmr.msrb.gmra.mxu1 %v7577_v2  ;;  %v2255_v34 = vpop.f32.mrf.mxu3  ;;  %v7623_v19 = vor.u32 %v6509_v4, %v5044_v1 }
  0xb4   : > { %v2207_v33 = vadd.f32 %v2206_v30, %v2158_v6  ;;  %v7619_v6 = vor.u32 %v6508_v61, %v5036_v60 }
  0xb5   : > { %9993 = vst [vmem:[#allocation25_spill] sm:$0xff] %v7623_v19 }
  0xb6   : > { %v7605_v38 = vadd.f32 %v2255_v34, %v2207_v33  ;;  %v5666_v33 = vld [vmem:[%s9877_s1 + $0x390] sm:$0xf0]  ;;  %v6600_v34 = vld [vmem:[%s9877_s1 + $0x184] sm:$0xf] }
  0xb7   : > { %v2110_v35 = vpop.f32.mrf.mxu0 }
  0xb8   : > { %v2111_v36 = vadd.f32 %v2110_v35, %v7567_v55  ;;  %v2159_v37 = vpop.f32.mrf.mxu1  ;;  %v5669_v35 = vor.u32 %v6664_v32, %v5666_v33  ;;  %v5066_v32 = vld [vmem:[%s7180_s27 + $0x9c] sm:$0xf0]  ;;  %v5072_v33 = vld [vmem:[%s7180_s27 + $0x88] sm:$0xf] }
  0xba   : > { %v2160_v58 = vadd.f32 %v2159_v37, %v2111_v36  ;;  %v2208_v5 = vpop.f32.mrf.mxu2  ;;  %v5410_v36 = vld [vmem:[%s9877_s1 + $0x190] sm:$0xf0]  ;;  %v6696_v37 = vld [vmem:[%s9877_s1 + $0x484] sm:$0xf]  ;;  %2592 = vmatpush.bf16.msra.mxu2 %v5669_v35 }
  0xbb   : > { %v2257_v16 = vpop.f32.mrf.mxu3  ;;  %v5797_v59 = vor.u32 %v6696_v37, %v5794_v39 }
  0xbc   : > { %v2209_v7 = vadd.f32 %v2208_v5, %v2160_v58  ;;  %v5413_v58 = vor.u32 %v6600_v34, %v5410_v36  ;;  %v6632_v5 = vld [vmem:[%s9877_s1 + $0x284] sm:$0xf] }
  0xbd   : > { %2641 = vmatpush.bf16.msra.mxu3 %v5797_v59  ;;  %v6516_v34 = vld [vmem:[%s7180_s27 + $0xa0] sm:$0xf0] }
  0xbe   : > { %v7626_v30 = vadd.f32 %v2257_v16, %v2209_v7  ;;  %2494 = vmatpush.bf16.msra.mxu0 %v5413_v58  ;;  %v5538_v7 = vld [vmem:[%s9877_s1 + $0x290] sm:$0xf0]  ;;  %v7669_v59 = vor.u32 %v6516_v34, %v5072_v33 }
  0xbf   : > { %v2113_v17 = vpop.f32.mrf.mxu0  ;;  %2406 = vmatmul.bf16.gmra.mxu2 %v7623_v19 }
  0xc0   : > { %v2114_v28 = vadd.f32 %v2113_v17, %v7567_v55  ;;  %v2162_v29 = vpop.f32.mrf.mxu1  ;;  %2455 = vmatmul.bf16.gmra.mxu3 %v7264_v24  ;;  %v5541_v17 = vor.u32 %v6632_v5, %v5538_v7  ;;  %9995 = vst [vmem:[#allocation27_spill] sm:$0xff] %v7669_v59  ;;  %v5650_v5 = vld [vmem:[%s9877_s1 + $0x370] sm:$0xf0]  ;;  %v6596_v7 = vld [vmem:[%s9877_s1 + $0x164] sm:$0xf] }
  0xc2   : > { %v2163_v31 = vadd.f32 %v2162_v29, %v2114_v28  ;;  %2308 = vmatmul.bf16.gmra.mxu0 %v7619_v6  ;;  %v2211_v56 = vpop.f32.mrf.mxu2  ;;  %v5064_v28 = vld [vmem:[%s7180_s27 + $0x80] sm:$0xf]  ;;  %v6515_v29 = vld [vmem:[%s7180_s27 + $0x98] sm:$0xf0]  ;;  %2543 = vmatpush.bf16.msra.mxu1 %v5541_v17  ;;  %v5394_v17 = vld [vmem:[%s9877_s1 + $0x170] sm:$0xf0] }
  0xc3   : > { %2357 = vmatmul.bf16.gmra.mxu1 %v7621_v18  ;;  %v2260_v61 = vpop.f32.mrf.mxu3  ;;  %v7665_v36 = vor.u32 %v6515_v29, %v5064_v28  ;;  %v6692_v28 = vld [vmem:[%s9877_s1 + $0x464] sm:$0xf]  ;;  %v5778_v29 = vld [vmem:[%s9877_s1 + $0x470] sm:$0xf0] }
  0xc4   : > { %v2212_v60 = vadd.f32 %v2211_v56, %v2163_v31  ;;  %v6512_v31 = vld [vmem:[%s7180_s27 + $0x84] sm:$0xf]  ;;  %v5781_v33 = vor.u32 %v6692_v28, %v5778_v29  ;;  %v5094_v28 = vld [vmem:[%s7180_s27 + $0xd4] sm:$0xf0]  ;;  %v5100_v29 = vld [vmem:[%s7180_s27 + $0xc0] sm:$0xf] }
  0xc5   : > { %v7667_v58 = vor.u32 %v6512_v31, %v5066_v32  ;;  %v5397_v32 = vor.u32 %v6596_v7, %v5394_v17  ;;  %v5092_v7 = vld [vmem:[%s7180_s27 + $0xb8] sm:$0xf]  ;;  %v6522_v17 = vld [vmem:[%s7180_s27 + $0xd0] sm:$0xf0] }
  0xc6   : > { %v7651_v4 = vadd.f32 %v2260_v61, %v2212_v60  ;;  %2642 = vmatpush.bf16.msra.mxu3 %v5781_v33  ;;  %v7711_v33 = vor.u32 %v6522_v17, %v5092_v7  ;;  %v6592_v7 = vld [vmem:[%s9877_s1 + $0x144] sm:$0xf] }
  0xc7   : > { %v2115_v62 = vpop.f32.mrf.mxu0  ;;  %9994 = vst [vmem:[#allocation26_spill] sm:$0xff] %v7667_v58  ;;  %2495 = vmatpush.bf16.msra.mxu0 %v5397_v32 }
  0xc8   : > { %v2116_v63 = vadd.f32 %v2115_v62, %v7567_v55  ;;  %v2164_v1 = vpop.f32.mrf.mxu1 }
  0xca   : > { %v2165_v16 = vadd.f32 %v2164_v1, %v2116_v63  ;;  %v2213_v35 = vpop.f32.mrf.mxu2  ;;  %v6660_v1 = vld [vmem:[%s9877_s1 + $0x364] sm:$0xf] }
  0xcb   : > { %v2262_v39 = vpop.f32.mrf.mxu3 }
  0xcc   : > { %v2214_v37 = vadd.f32 %v2213_v35, %v2165_v16  ;;  %v5653_v16 = vor.u32 %v6660_v1, %v5650_v5 }
  0xce   : > { %v7672_v62 = vadd.f32 %v2262_v39, %v2214_v37  ;;  %2593 = vmatpush.bf16.msra.mxu2 %v5653_v16  ;;  %v6519_v16 = vld [vmem:[%s7180_s27 + $0xbc] sm:$0xf] }
  0xcf   : > { %v2118_v56 = vpop.f32.mrf.mxu0  ;;  %2411 = vmatmul.bf16.gmra.mxu2 %v7669_v59 }
  0xd0   : > { %v2119_v60 = vadd.f32 %v2118_v56, %v7567_v55  ;;  %v2167_v61 = vpop.f32.mrf.mxu1  ;;  %2460 = vmatmul.bf16.gmra.mxu3 %v7308_v49  ;;  %v7713_v49 = vor.u32 %v6519_v16, %v5094_v28  ;;  %v5378_v16 = vld [vmem:[%s9877_s1 + $0x150] sm:$0xf0]  ;;  %v6688_v28 = vld [vmem:[%s9877_s1 + $0x444] sm:$0xf] }
  0xd2   : > { %v2168_v63 = vadd.f32 %v2167_v61, %v2119_v60  ;;  %2313 = vmatmul.bf16.gmra.mxu0 %v7665_v36  ;;  %v2216_v31 = vpop.f32.mrf.mxu2  ;;  %v6628_v61 = vld [vmem:[%s9877_s1 + $0x264] sm:$0xf]  ;;  %9996 = vst [vmem:[#allocation28_spill] sm:$0xff] %v7713_v49 }
  0xd3   : > { %2362 = vmatmul.bf16.gmra.mxu1 %v7667_v58  ;;  %v2265_v35 = vpop.f32.mrf.mxu3 }
  0xd4   : > { %v2217_v34 = vadd.f32 %v2216_v31, %v2168_v63  ;;  %v5522_v63 = vld [vmem:[%s9877_s1 + $0x270] sm:$0xf0]  ;;  %v6523_v31 = vld [vmem:[%s7180_s27 + $0xd8] sm:$0xf0] }
  0xd5   : > { %v5525_v5 = vor.u32 %v6628_v61, %v5522_v63  ;;  %v7715_v59 = vor.u32 %v6523_v31, %v5100_v29  ;;  %v5762_v29 = vld [vmem:[%s9877_s1 + $0x450] sm:$0xf0] }
  0xd6   : > { %v7697_v60 = vadd.f32 %v2265_v35, %v2217_v34 }
  0xd7   : > { %v2120_v37 = vpop.f32.mrf.mxu0  ;;  %2544 = vmatpush.bf16.msra.mxu1 %v5525_v5  ;;  %9997 = vst [vmem:[#allocation29_spill] sm:$0xff] %v7715_v59  ;;  %v5634_v5 = vld [vmem:[%s9877_s1 + $0x350] sm:$0xf0] }
  0xd8   : > { %v2121_v39 = vadd.f32 %v2120_v37, %v7567_v55  ;;  %v2169_v56 = vpop.f32.mrf.mxu1 }
  0xda   : > { %v2170_v1 = vadd.f32 %v2169_v56, %v2121_v39  ;;  %v2218_v32 = vpop.f32.mrf.mxu2 }
  0xdb   : > { %v2267_v35 = vpop.f32.mrf.mxu3 }
  0xdc   : > { %v2219_v34 = vadd.f32 %v2218_v32, %v2170_v1  ;;  %v6656_v1 = vld [vmem:[%s9877_s1 + $0x344] sm:$0xf]  ;;  %v5381_v32 = vor.u32 %v6592_v7, %v5378_v16 }
  0xdd   : > { %v5637_v17 = vor.u32 %v6656_v1, %v5634_v5  ;;  %v6624_v7 = vld [vmem:[%s9877_s1 + $0x244] sm:$0xf] }
  0xde   : > { %v7718_v61 = vadd.f32 %v2267_v35, %v2219_v34  ;;  %v5765_v34 = vor.u32 %v6688_v28, %v5762_v29  ;;  %2496 = vmatpush.bf16.msra.mxu0 %v5381_v32  ;;  %v5120_v29 = vld [vmem:[%s7180_s27 + $0xf0] sm:$0xf] }
  0xdf   : > { %v2123_v37 = vpop.f32.mrf.mxu0  ;;  %2416 = vmatmul.bf16.gmra.mxu2 %v7715_v59  ;;  %v6530_v59 = vld [vmem:[%s7180_s27 + $0x110] sm:$0xf0] }
  0xe0   : > { %v2124_v39 = vadd.f32 %v2123_v37, %v7567_v55  ;;  %v2172_v56 = vpop.f32.mrf.mxu1  ;;  %2465 = vmatmul.bf16.gmra.mxu3 %v7352_v12  ;;  %2594 = vmatpush.bf16.msra.mxu2 %v5637_v17  ;;  %v6526_v17 = vld [vmem:[%s7180_s27 + $0xf4] sm:$0xf]  ;;  %v5122_v12 = vld [vmem:[%s7180_s27 + $0x10c] sm:$0xf0] }
  0xe1   : > { %2643 = vmatpush.bf16.msra.mxu3 %v5765_v34  ;;  %v7759_v58 = vor.u32 %v6526_v17, %v5122_v12  ;;  %v6652_v12 = vld [vmem:[%s9877_s1 + $0x324] sm:$0xf] }
  0xe2   : > { %v2173_v63 = vadd.f32 %v2172_v56, %v2124_v39  ;;  %2318 = vmatmul.bf16.gmra.mxu0 %v7711_v33  ;;  %v2221_v31 = vpop.f32.mrf.mxu2 }
  0xe3   : > { %2367 = vmatmul.bf16.gmra.mxu1 %v7713_v49  ;;  %v2270_v37 = vpop.f32.mrf.mxu3  ;;  %9998 = vst [vmem:[#allocation30_spill] sm:$0xff] %v7759_v58 }
  0xe4   : > { %v2222_v35 = vadd.f32 %v2221_v31, %v2173_v63  ;;  %v5506_v63 = vld [vmem:[%s9877_s1 + $0x250] sm:$0xf0]  ;;  %v6529_v31 = vld [vmem:[%s7180_s27 + $0x108] sm:$0xf0] }
  0xe5   : > { %v5509_v28 = vor.u32 %v6624_v7, %v5506_v63  ;;  %v7757_v34 = vor.u32 %v6529_v31, %v5120_v29  ;;  %v6684_v29 = vld [vmem:[%s9877_s1 + $0x424] sm:$0xf]  ;;  %v5746_v31 = vld [vmem:[%s9877_s1 + $0x430] sm:$0xf0] }
  0xe6   : > { %v7743_v5 = vadd.f32 %v2270_v37, %v2222_v35 }
  0xe7   : > { %v2125_v39 = vpop.f32.mrf.mxu0  ;;  %2545 = vmatpush.bf16.msra.mxu1 %v5509_v28  ;;  %v5362_v28 = vld [vmem:[%s9877_s1 + $0x130] sm:$0xf0] }
  0xe8   : > { %v2126_v56 = vadd.f32 %v2125_v39, %v7567_v55  ;;  %v2174_v1 = vpop.f32.mrf.mxu1  ;;  %v5128_v39 = vld [vmem:[%s7180_s27 + $0xf8] sm:$0xf] }
  0xe9   : > { %v7761_v24 = vor.u32 %v6530_v59, %v5128_v39  ;;  %v6588_v59 = vld [vmem:[%s9877_s1 + $0x124] sm:$0xf] }
  0xea   : > { %v2175_v16 = vadd.f32 %v2174_v1, %v2126_v56  ;;  %v2223_v32 = vpop.f32.mrf.mxu2  ;;  %v5365_v39 = vor.u32 %v6588_v59, %v5362_v28  ;;  %v6620_v59 = vld [vmem:[%s9877_s1 + $0x224] sm:$0xf] }
  0xeb   : > { %v2272_v37 = vpop.f32.mrf.mxu3  ;;  %9999 = vst [vmem:[#allocation31_spill] sm:$0xff] %v7761_v24 }
  0xec   : > { %v2224_v35 = vadd.f32 %v2223_v32, %v2175_v16  ;;  %v5749_v32 = vor.u32 %v6684_v29, %v5746_v31  ;;  %2497 = vmatpush.bf16.msra.mxu0 %v5365_v39  ;;  %v5148_v31 = vld [vmem:[%s7180_s27 + $0x128] sm:$0xf] }
  0xee   : > { %v7764_v7 = vadd.f32 %v2272_v37, %v2224_v35  ;;  %2644 = vmatpush.bf16.msra.mxu3 %v5749_v32 }
  0xef   : > { %v2128_v49 = vpop.f32.mrf.mxu0  ;;  %2421 = vmatmul.bf16.gmra.mxu2 %v7761_v24  ;;  %v6537_v24 = vld [vmem:[%s7180_s27 + $0x148] sm:$0xf0] }
  0xf0   : > { %v2129_v56 = vadd.f32 %v2128_v49, %v7567_v55  ;;  %v2177_v1 = vpop.f32.mrf.mxu1  ;;  %2470 = vmatmul.bf16.gmra.mxu3 %v7396_v40  ;;  %v5618_v49 = vld [vmem:[%s9877_s1 + $0x330] sm:$0xf0]  ;;  %v5150_v40 = vld [vmem:[%s7180_s27 + $0x144] sm:$0xf0] }
  0xf1   : > { %v5621_v16 = vor.u32 %v6652_v12, %v5618_v49 }
  0xf2   : > { %v2178_v63 = vadd.f32 %v2177_v1, %v2129_v56  ;;  %2323 = vmatmul.bf16.gmra.mxu0 %v7757_v34  ;;  %v2226_v17 = vpop.f32.mrf.mxu2 }
  0xf3   : > { %2372 = vmatmul.bf16.gmra.mxu1 %v7759_v58  ;;  %v2275_v37 = vpop.f32.mrf.mxu3  ;;  %2595 = vmatpush.bf16.msra.mxu2 %v5621_v16  ;;  %v6533_v16 = vld [vmem:[%s7180_s27 + $0x12c] sm:$0xf] }
  0xf4   : > { %v2227_v35 = vadd.f32 %v2226_v17, %v2178_v63  ;;  %v5490_v63 = vld [vmem:[%s9877_s1 + $0x230] sm:$0xf0]  ;;  %v6536_v17 = vld [vmem:[%s7180_s27 + $0x140] sm:$0xf0]  ;;  %v7805_v19 = vor.u32 %v6533_v16, %v5150_v40 }
  0xf5   : > { %v5493_v29 = vor.u32 %v6620_v59, %v5490_v63  ;;  %v7803_v32 = vor.u32 %v6536_v17, %v5148_v31  ;;  %v6648_v40 = vld [vmem:[%s9877_s1 + $0x304] sm:$0xf]  ;;  %v5730_v17 = vld [vmem:[%s9877_s1 + $0x410] sm:$0xf0] }
  0xf6   : > { %v7789_v49 = vadd.f32 %v2275_v37, %v2227_v35  ;;  %10000 = vst [vmem:[#allocation32_spill] sm:$0xff] %v7805_v19  ;;  %v6680_v31 = vld [vmem:[%s9877_s1 + $0x404] sm:$0xf] }
  0xf7   : > { %v2130_v56 = vpop.f32.mrf.mxu0  ;;  %2546 = vmatpush.bf16.msra.mxu1 %v5493_v29  ;;  %v5346_v29 = vld [vmem:[%s9877_s1 + $0x110] sm:$0xf0] }
  0xf8   : > { %v2131_v1 = vadd.f32 %v2130_v56, %v7567_v55  ;;  %v2179_v12 = vpop.f32.mrf.mxu1  ;;  %v5156_v56 = vld [vmem:[%s7180_s27 + $0x130] sm:$0xf] }
  0xf9   : > { %v7807_v18 = vor.u32 %v6537_v24, %v5156_v56  ;;  %v5602_v24 = vld [vmem:[%s9877_s1 + $0x310] sm:$0xf0] }
  0xfa   : > { %v2180_v28 = vadd.f32 %v2179_v12, %v2131_v1  ;;  %v2228_v39 = vpop.f32.mrf.mxu2 }
  0xfb   : > { %v2277_v37 = vpop.f32.mrf.mxu3  ;;  %10001 = vst [vmem:[#allocation33_spill] sm:$0xff] %v7807_v18 }
  0xfc   : > { %v2229_v35 = vadd.f32 %v2228_v39, %v2180_v28  ;;  %v5605_v28 = vor.u32 %v6648_v40, %v5602_v24  ;;  %v5733_v39 = vor.u32 %v6680_v31, %v5730_v17  ;;  %v5176_v17 = vld [vmem:[%s7180_s27 + $0x160] sm:$0xf] }
  0xfe   : > { %v7810_v59 = vadd.f32 %v2277_v37, %v2229_v35  ;;  %2596 = vmatpush.bf16.msra.mxu2 %v5605_v28  ;;  %2645 = vmatpush.bf16.msra.mxu3 %v5733_v39  ;;  %v6540_v28 = vld [vmem:[%s7180_s27 + $0x164] sm:$0xf] }
  0xff   : > { %v2133_v58 = vpop.f32.mrf.mxu0  ;;  %2426 = vmatmul.bf16.gmra.mxu2 %v7807_v18  ;;  %v6544_v18 = vld [vmem:[%s7180_s27 + $0x180] sm:$0xf0] }
 0x100   : > { %v2134_v1 = vadd.f32 %v2133_v58, %v7567_v55  ;;  %v2182_v12 = vpop.f32.mrf.mxu1  ;;  %2475 = vmatmul.bf16.gmra.mxu3 %v7440_v8  ;;  %v6584_v58 = vld [vmem:[%s9877_s1 + $0x104] sm:$0xf]  ;;  %v5178_v8 = vld [vmem:[%s7180_s27 + $0x17c] sm:$0xf0] }
 0x101   : > { %v5349_v56 = vor.u32 %v6584_v58, %v5346_v29  ;;  %v6616_v58 = vld [vmem:[%s9877_s1 + $0x204] sm:$0xf]  ;;  %v7851_v47 = vor.u32 %v6540_v28, %v5178_v8  ;;  %v5336_v8 = vld [vmem:[%s9877_s1 + $0xe8] sm:$0xf] }
 0x102   : > { %v2183_v63 = vadd.f32 %v2182_v12, %v2134_v1  ;;  %2328 = vmatmul.bf16.gmra.mxu0 %v7803_v32  ;;  %v2231_v16 = vpop.f32.mrf.mxu2 }
 0x103   : > { %2377 = vmatmul.bf16.gmra.mxu1 %v7805_v19  ;;  %v2280_v37 = vpop.f32.mrf.mxu3  ;;  %2498 = vmatpush.bf16.msra.mxu0 %v5349_v56  ;;  %10003 = vst [vmem:[#allocation35_spill] sm:$0xff] %v7851_v47 }
 0x104   : > { %v2232_v35 = vadd.f32 %v2231_v16, %v2183_v63  ;;  %v5474_v63 = vld [vmem:[%s9877_s1 + $0x210] sm:$0xf0]  ;;  %v6543_v16 = vld [vmem:[%s7180_s27 + $0x178] sm:$0xf0] }
 0x105   : > { %v5477_v31 = vor.u32 %v6616_v58, %v5474_v63  ;;  %v7849_v39 = vor.u32 %v6543_v16, %v5176_v17  ;;  %v5464_v17 = vld [vmem:[%s9877_s1 + $0x1e8] sm:$0xf]  ;;  %v6615_v16 = vld [vmem:[%s9877_s1 + $0x1f4] sm:$0xf0] }
 0x106   : > { %v7835_v24 = vadd.f32 %v2280_v37, %v2232_v35 }
 0x107   : > { %v2135_v1 = vpop.f32.mrf.mxu0  ;;  %2547 = vmatpush.bf16.msra.mxu1 %v5477_v31  ;;  %10002 = vst [vmem:[#allocation34_spill] sm:$0xff] %v7849_v39  ;;  %v5970_v31 = vld [vmem:[%s9877_s1 + $0x5f0] sm:$0xf0] }
 0x108   : > { %v2136_v12 = vadd.f32 %v2135_v1, %v7567_v55  ;;  %v2184_v40 = vpop.f32.mrf.mxu1  ;;  %v5184_v1 = vld [vmem:[%s7180_s27 + $0x168] sm:$0xf] }
 0x109   : > { %v7853_v3 = vor.u32 %v6544_v18, %v5184_v1  ;;  %v6583_v18 = vld [vmem:[%s9877_s1 + $0xf4] sm:$0xf0] }
 0x10a   : > { %v2185_v29 = vadd.f32 %v2184_v40, %v2136_v12  ;;  %v2233_v56 = vpop.f32.mrf.mxu2 }
 0x10b   : > { %v2282_v37 = vpop.f32.mrf.mxu3  ;;  %10004 = vst [vmem:[#allocation36_spill] sm:$0xff] %v7853_v3 }
 0x10c   : > { %v2234_v35 = vadd.f32 %v2233_v56, %v2185_v29  ;;  %v5337_v29 = vor.u32 %v6583_v18, %v5336_v8  ;;  %v5465_v56 = vor.u32 %v6615_v16, %v5464_v17  ;;  %v5204_v16 = vld [vmem:[%s7180_s27 + $0x198] sm:$0xf] }
 0x10e   : > { %v7856_v58 = vadd.f32 %v2282_v37, %v2234_v35  ;;  %2785 = vmatpush.bf16.msrb.mxu2 %v5337_v29  ;;  %2834 = vmatpush.bf16.msrb.mxu3 %v5465_v56  ;;  %v6547_v29 = vld [vmem:[%s7180_s27 + $0x19c] sm:$0xf] }
 0x10f   : > { %v2138_v19 = vpop.f32.mrf.mxu0  ;;  %2431 = vmatmul.bf16.gmra.mxu2 %v7853_v3  ;;  %v6551_v3 = vld [vmem:[%s7180_s27 + $0x1b8] sm:$0xf0] }
 0x110   : > { %v2139_v12 = vadd.f32 %v2138_v19, %v7567_v55  ;;  %v2187_v40 = vpop.f32.mrf.mxu1  ;;  %2480 = vmatmul.bf16.gmra.mxu3 %v7484_v44  ;;  %v6740_v19 = vld [vmem:[%s9877_s1 + $0x5e4] sm:$0xf]  ;;  %v5206_v44 = vld [vmem:[%s7180_s27 + $0x1b4] sm:$0xf0] }
 0x111   : > { %v5973_v1 = vor.u32 %v6740_v19, %v5970_v31  ;;  %v6772_v19 = vld [vmem:[%s9877_s1 + $0x6e4] sm:$0xf]  ;;  %v7897_v2 = vor.u32 %v6547_v29, %v5206_v44  ;;  %v5320_v44 = vld [vmem:[%s9877_s1 + $0xc8] sm:$0xf] }
 0x112   : > { %v2188_v63 = vadd.f32 %v2187_v40, %v2139_v12  ;;  %2333 = vmatmul.bf16.gmra.mxu0 %v7849_v39  ;;  %v2236_v28 = vpop.f32.mrf.mxu2 }
 0x113   : > { %2382 = vmatmul.bf16.gmra.mxu1 %v7851_v47  ;;  %v2285_v37 = vpop.f32.mrf.mxu3  ;;  %2687 = vmatpush.bf16.msrb.mxu0 %v5973_v1  ;;  %10006 = vst [vmem:[#allocation38_spill] sm:$0xff] %v7897_v2 }
 0x114   : > { %v2237_v35 = vadd.f32 %v2236_v28, %v2188_v63  ;;  %v6098_v63 = vld [vmem:[%s9877_s1 + $0x6f0] sm:$0xf0] }
 0x115   : > { %v6101_v17 = vor.u32 %v6772_v19, %v6098_v63  ;;  %v6550_v28 = vld [vmem:[%s7180_s27 + $0x1b0] sm:$0xf0] }
 0x116   : > { %v7881_v18 = vadd.f32 %v2285_v37, %v2237_v35  ;;  %v7895_v56 = vor.u32 %v6550_v28, %v5204_v16  ;;  %v5448_v16 = vld [vmem:[%s9877_s1 + $0x1c8] sm:$0xf]  ;;  %v6611_v28 = vld [vmem:[%s9877_s1 + $0x1d4] sm:$0xf0] }
 0x117   : > { %v2140_v12 = vpop.f32.mrf.mxu0  ;;  %2736 = vmatpush.bf16.msrb.mxu1 %v6101_v17  ;;  %v5954_v17 = vld [vmem:[%s9877_s1 + $0x5d0] sm:$0xf0] }
 0x118   : > { %v2141_v40 = vadd.f32 %v2140_v12, %v7567_v55  ;;  %v2189_v8 = vpop.f32.mrf.mxu1  ;;  %v5212_v12 = vld [vmem:[%s7180_s27 + $0x1a0] sm:$0xf]  ;;  %10005 = vst [vmem:[#allocation37_spill] sm:$0xff] %v7895_v56 }
 0x119   : > { %v7899_v23 = vor.u32 %v6551_v3, %v5212_v12  ;;  %v6736_v3 = vld [vmem:[%s9877_s1 + $0x5c4] sm:$0xf] }
 0x11a   : > { %v2190_v31 = vadd.f32 %v2189_v8, %v2141_v40  ;;  %v2238_v1 = vpop.f32.mrf.mxu2  ;;  %v5957_v12 = vor.u32 %v6736_v3, %v5954_v17  ;;  %v6082_v3 = vld [vmem:[%s9877_s1 + $0x6d0] sm:$0xf0] }
 0x11b   : > { %v2287_v37 = vpop.f32.mrf.mxu3 }
 0x11c   : > { %v2239_v35 = vadd.f32 %v2238_v1, %v2190_v31  ;;  %v5449_v1 = vor.u32 %v6611_v28, %v5448_v16  ;;  %2688 = vmatpush.bf16.msrb.mxu0 %v5957_v12 }
 0x11e   : > { %v7902_v19 = vadd.f32 %v2287_v37, %v2239_v35  ;;  %2835 = vmatpush.bf16.msrb.mxu3 %v5449_v1 }
 0x11f   : > { %v2143_v47 = vpop.f32.mrf.mxu0  ;;  %2436 = vmatmul.bf16.gmra.mxu2 %v7899_v23 }
 0x120   : > { %v2144_v40 = vadd.f32 %v2143_v47, %v7567_v55  ;;  %v2192_v8 = vpop.f32.mrf.mxu1  ;;  %2485 = vmatmul.bf16.gmra.mxu3 %v7528_v20  ;;  %v6579_v47 = vld [vmem:[%s9877_s1 + $0xd4] sm:$0xf0]  ;;  %v6768_v20 = vld [vmem:[%s9877_s1 + $0x6c4] sm:$0xf] }
 0x121   : > { %v5321_v31 = vor.u32 %v6579_v47, %v5320_v44 }
 0x122   : > { %v2193_v63 = vadd.f32 %v2192_v8, %v2144_v40  ;;  %2338 = vmatmul.bf16.gmra.mxu0 %v7895_v56  ;;  %v2241_v29 = vpop.f32.mrf.mxu2 }
 0x123   : > { %2387 = vmatmul.bf16.gmra.mxu1 %v7897_v2  ;;  %v2290_v37 = vpop.f32.mrf.mxu3  ;;  %2786 = vmatpush.bf16.msrb.mxu2 %v5321_v31 }
 0x124   : > { %v2242_v35 = vadd.f32 %v2241_v29, %v2193_v63  ;;  %v6085_v63 = vor.u32 %v6768_v20, %v6082_v3  ;;  %v5304_v20 = vld [vmem:[%s9877_s1 + $0xa8] sm:$0xf]  ;;  %v6607_v3 = vld [vmem:[%s9877_s1 + $0x1b4] sm:$0xf0] }
 0x126   : > { %v7927_v47 = vadd.f32 %v2290_v37, %v2242_v35  ;;  %2737 = vmatpush.bf16.msrb.mxu1 %v6085_v63  ;;  %v6732_v37 = vld [vmem:[%s9877_s1 + $0x5a4] sm:$0xf] }
 0x127   : > { %v2145_v40 = vpop.f32.mrf.mxu0 }
 0x128   : > { %v2146_v8 = vadd.f32 %v2145_v40, %v7567_v55  ;;  %v2194_v44 = vpop.f32.mrf.mxu1 }
 0x12a   : > { %v2195_v17 = vadd.f32 %v2194_v44, %v2146_v8  ;;  %v2243_v16 = vpop.f32.mrf.mxu2  ;;  %v5938_v8 = vld [vmem:[%s9877_s1 + $0x5b0] sm:$0xf0]  ;;  %v5432_v44 = vld [vmem:[%s9877_s1 + $0x1a8] sm:$0xf] }
 0x12b   : > { %v2292_v28 = vpop.f32.mrf.mxu3  ;;  %v5941_v63 = vor.u32 %v6732_v37, %v5938_v8 }
 0x12c   : > { %v2244_v31 = vadd.f32 %v2243_v16, %v2195_v17  ;;  %v5433_v16 = vor.u32 %v6607_v3, %v5432_v44 }
 0x12d   : > { %2689 = vmatpush.bf16.msrb.mxu0 %v5941_v63 }
 0x12e   : > { %v7936_v1 = vadd.f32 %v2292_v28, %v2244_v31  ;;  %2836 = vmatpush.bf16.msrb.mxu3 %v5433_v16 }
 0x12f   : > { %v2304_v55 = vpop.f32.mrf.mxu0  ;;  %2597 = vmatmul.bf16.vlgmr.msra.gmra.mxu2 %v7214_v57 }
 0x130   : > { %v2305_v29 = vadd.f32 %v2304_v55, %v7605_v38  ;;  %v2353_v12 = vpop.f32.mrf.mxu1  ;;  %2646 = vmatmul.bf16.vlgmr.msra.gmra.mxu3 %v7575_v0  ;;  %v6575_v38 = vld [vmem:[%s9877_s1 + $0xb4] sm:$0xf0] }
 0x131   : > { %v5305_v40 = vor.u32 %v6575_v38, %v5304_v20  ;;  %v6764_v20 = vld [vmem:[%s9877_s1 + $0x6a4] sm:$0xf]  ;;  %v6066_v38 = vld [vmem:[%s9877_s1 + $0x6b0] sm:$0xf0] }
 0x132   : > { %v2354_v35 = vadd.f32 %v2353_v12, %v2305_v29  ;;  %2499 = vmatmul.bf16.vlgmr.msra.gmra.mxu0 %v7205_v52  ;;  %v2402_v17 = vpop.f32.mrf.mxu2  ;;  %v6069_v8 = vor.u32 %v6764_v20, %v6066_v38  ;;  %v5922_v20 = vld [vmem:[%s9877_s1 + $0x590] sm:$0xf0]  ;;  %v5416_v38 = vld [vmem:[%s9877_s1 + $0x188] sm:$0xf] }
 0x133   : > { %2548 = vmatmul.bf16.vlgmr.msra.gmra.mxu1 %v7207_v53  ;;  %v7960_v28 = vpop.f32.mrf.mxu3  ;;  %2787 = vmatpush.bf16.msrb.mxu2 %v5305_v40 }
 0x134   : > { %v2403_v31 = vadd.f32 %v2402_v17, %v2354_v35  ;;  %2738 = vmatpush.bf16.msrb.mxu1 %v6069_v8 }
 0x136   : > { %v3471_v63 = vmax.f32 %v2403_v31, 0.0  ;;  %v6728_v31 = vld [vmem:[%s9877_s1 + $0x584] sm:$0xf] }
 0x137   : > { %v2306_v55 = vpop.f32.mrf.mxu0 }
 0x138   : > { %v2307_v29 = vadd.f32 %v2306_v55, %v7626_v30  ;;  %v2355_v12 = vpop.f32.mrf.mxu1 }
 0x13a   : > { %v2356_v37 = vadd.f32 %v2355_v12, %v2307_v29  ;;  %v2404_v35 = vpop.f32.mrf.mxu2  ;;  %v5288_v29 = vld [vmem:[%s9877_s1 + $0x88] sm:$0xf] }
 0x13b   : > { %v7969_v3 = vpop.f32.mrf.mxu3 }
 0x13c   : > { %v2405_v44 = vadd.f32 %v2404_v35, %v2356_v37  ;;  %v6603_v37 = vld [vmem:[%s9877_s1 + $0x194] sm:$0xf0]  ;;  %v5925_v35 = vor.u32 %v6728_v31, %v5922_v20 }
 0x13e   : > { %v3475_v16 = vmax.f32 %v2405_v44, 0.0  ;;  %v5417_v44 = vor.u32 %v6603_v37, %v5416_v38  ;;  %2690 = vmatpush.bf16.msrb.mxu0 %v5925_v35 }
 0x13f   : > { %v2309_v40 = vpop.f32.mrf.mxu0  ;;  %2602 = vmatmul.bf16.gmra.mxu2 %v7270_v27 }
 0x140   : > { %v2310_v30 = vadd.f32 %v2309_v40, %v7651_v4  ;;  %v2358_v17 = vpop.f32.mrf.mxu1  ;;  %v7973_v0 = vpack.c.bf16 %v3475_v16, %v3471_v63  ;;  %2651 = vmatmul.bf16.gmra.mxu3 %v7619_v6  ;;  %v6571_v4 = vld [vmem:[%s9877_s1 + $0x94] sm:$0xf0] }
 0x141   : > { %v5289_v12 = vor.u32 %v6571_v4, %v5288_v29  ;;  %2837 = vmatpush.bf16.msrb.mxu3 %v5417_v44  ;;  %v6760_v29 = vld [vmem:[%s9877_s1 + $0x684] sm:$0xf]  ;;  %v6050_v4 = vld [vmem:[%s9877_s1 + $0x690] sm:$0xf0] }
 0x142   : > { %v2359_v55 = vadd.f32 %v2358_v17, %v2310_v30  ;;  %2504 = vmatmul.bf16.gmra.mxu0 %v7266_v25  ;;  %10007 = vst [vmem:[#allocation39_spill] sm:$0xff] %v7973_v0  ;;  %v2407_v8 = vpop.f32.mrf.mxu2  ;;  %v6053_v20 = vor.u32 %v6760_v29, %v6050_v4  ;;  %v5906_v4 = vld [vmem:[%s9877_s1 + $0x570] sm:$0xf0] }
 0x143   : > { %2553 = vmatmul.bf16.gmra.mxu1 %v7268_v26  ;;  %v7996_v30 = vpop.f32.mrf.mxu3  ;;  %2788 = vmatpush.bf16.msrb.mxu2 %v5289_v12  ;;  %v10013_v0 = vld [vmem:[#allocation20_spill] sm:$0xff] }
 0x144   : > { %v2408_v40 = vadd.f32 %v2407_v8, %v2359_v55  ;;  %2739 = vmatpush.bf16.msrb.mxu1 %v6053_v20  ;;  %v6599_v20 = vld [vmem:[%s9877_s1 + $0x174] sm:$0xf0] }
 0x146   : > { %v3479_v35 = vmax.f32 %v2408_v40, 0.0  ;;  %v6724_v40 = vld [vmem:[%s9877_s1 + $0x564] sm:$0xf] }
 0x147   : > { %v2311_v17 = vpop.f32.mrf.mxu0 }
 0x148   : > { %v2312_v63 = vadd.f32 %v2311_v17, %v7672_v62  ;;  %v2360_v16 = vpop.f32.mrf.mxu1 }
 0x14a   : > { %v2361_v31 = vadd.f32 %v2360_v16, %v2312_v63  ;;  %v2409_v55 = vpop.f32.mrf.mxu2  ;;  %v5272_v16 = vld [vmem:[%s9877_s1 + $0x68] sm:$0xf] }
 0x14b   : > { %v8005_v37 = vpop.f32.mrf.mxu3 }
 0x14c   : > { %v2410_v38 = vadd.f32 %v2409_v55, %v2361_v31  ;;  %v5400_v31 = vld [vmem:[%s9877_s1 + $0x168] sm:$0xf] }
 0x14e   : > { %v3483_v44 = vmax.f32 %v2410_v38, 0.0  ;;  %v5909_v38 = vor.u32 %v6724_v40, %v5906_v4 }
 0x14f   : > { %v2314_v12 = vpop.f32.mrf.mxu0  ;;  %2607 = vmatmul.bf16.gmra.mxu2 %v7314_v54 }
 0x150   : > { %v2315_v62 = vadd.f32 %v2314_v12, %v7697_v60  ;;  %v2363_v8 = vpop.f32.mrf.mxu1  ;;  %v8011_v63 = vpack.c.bf16 %v3483_v44, %v3479_v35  ;;  %2656 = vmatmul.bf16.gmra.mxu3 %v7665_v36  ;;  %v6567_v60 = vld [vmem:[%s9877_s1 + $0x74] sm:$0xf0]  ;;  %v5401_v12 = vor.u32 %v6599_v20, %v5400_v31  ;;  %2691 = vmatpush.bf16.msrb.mxu0 %v5909_v38 }
 0x151   : > { %v5273_v29 = vor.u32 %v6567_v60, %v5272_v16  ;;  %v6756_v60 = vld [vmem:[%s9877_s1 + $0x664] sm:$0xf] }
 0x152   : > { %v2364_v17 = vadd.f32 %v2363_v8, %v2315_v62  ;;  %2509 = vmatmul.bf16.gmra.mxu0 %v7310_v50  ;;  %10008 = vst [vmem:[#allocation40_spill] sm:$0xff] %v8011_v63  ;;  %v2412_v55 = vpop.f32.mrf.mxu2  ;;  %2838 = vmatpush.bf16.msrb.mxu3 %v5401_v12  ;;  %v6034_v63 = vld [vmem:[%s9877_s1 + $0x670] sm:$0xf0] }
 0x153   : > { %2558 = vmatmul.bf16.gmra.mxu1 %v7312_v51  ;;  %v8032_v8 = vpop.f32.mrf.mxu3  ;;  %2789 = vmatpush.bf16.msrb.mxu2 %v5273_v29  ;;  %v6037_v4 = vor.u32 %v6756_v60, %v6034_v63  ;;  %v5256_v63 = vld [vmem:[%s9877_s1 + $0x48] sm:$0xf]  ;;  %v5890_v60 = vld [vmem:[%s9877_s1 + $0x550] sm:$0xf0] }
 0x154   : > { %v2413_v62 = vadd.f32 %v2412_v55, %v2364_v17 }
 0x155   : > { %2740 = vmatpush.bf16.msrb.mxu1 %v6037_v4  ;;  %v6595_v4 = vld [vmem:[%s9877_s1 + $0x154] sm:$0xf0] }
 0x156   : > { %v3487_v38 = vmax.f32 %v2413_v62, 0.0  ;;  %v6720_v62 = vld [vmem:[%s9877_s1 + $0x544] sm:$0xf] }
 0x157   : > { %v2316_v35 = vpop.f32.mrf.mxu0 }
 0x158   : > { %v2317_v44 = vadd.f32 %v2316_v35, %v7718_v61  ;;  %v2365_v16 = vpop.f32.mrf.mxu1 }
 0x15a   : > { %v2366_v40 = vadd.f32 %v2365_v16, %v2317_v44  ;;  %v2414_v17 = vpop.f32.mrf.mxu2 }
 0x15b   : > { %v8041_v20 = vpop.f32.mrf.mxu3 }
 0x15c   : > { %v2415_v31 = vadd.f32 %v2414_v17, %v2366_v40  ;;  %v5384_v40 = vld [vmem:[%s9877_s1 + $0x148] sm:$0xf] }
 0x15e   : > { %v3491_v12 = vmax.f32 %v2415_v31, 0.0  ;;  %v5893_v31 = vor.u32 %v6720_v62, %v5890_v60 }
 0x15f   : > { %v2319_v29 = vpop.f32.mrf.mxu0  ;;  %2612 = vmatmul.bf16.gmra.mxu2 %v7358_v15 }
 0x160   : > { %v2320_v61 = vadd.f32 %v2319_v29, %v7743_v5  ;;  %v2368_v55 = vpop.f32.mrf.mxu1  ;;  %v8047_v44 = vpack.c.bf16 %v3491_v12, %v3487_v38  ;;  %2661 = vmatmul.bf16.gmra.mxu3 %v7711_v33  ;;  %v6563_v5 = vld [vmem:[%s9877_s1 + $0x54] sm:$0xf0]  ;;  %v5385_v29 = vor.u32 %v6595_v4, %v5384_v40  ;;  %2692 = vmatpush.bf16.msrb.mxu0 %v5893_v31 }
 0x161   : > { %v5257_v16 = vor.u32 %v6563_v5, %v5256_v63  ;;  %v6752_v5 = vld [vmem:[%s9877_s1 + $0x644] sm:$0xf] }
 0x162   : > { %v2369_v35 = vadd.f32 %v2368_v55, %v2320_v61  ;;  %2514 = vmatmul.bf16.gmra.mxu0 %v7354_v13  ;;  %10009 = vst [vmem:[#allocation41_spill] sm:$0xff] %v8047_v44  ;;  %v2417_v17 = vpop.f32.mrf.mxu2  ;;  %2839 = vmatpush.bf16.msrb.mxu3 %v5385_v29  ;;  %v6018_v44 = vld [vmem:[%s9877_s1 + $0x650] sm:$0xf0] }
 0x163   : > { %2563 = vmatmul.bf16.gmra.mxu1 %v7356_v14  ;;  %v8068_v55 = vpop.f32.mrf.mxu3  ;;  %2790 = vmatpush.bf16.msrb.mxu2 %v5257_v16  ;;  %v6021_v60 = vor.u32 %v6752_v5, %v6018_v44  ;;  %v5240_v44 = vld [vmem:[%s9877_s1 + $0x28] sm:$0xf]  ;;  %v5874_v5 = vld [vmem:[%s9877_s1 + $0x530] sm:$0xf0] }
 0x164   : > { %v2418_v61 = vadd.f32 %v2417_v17, %v2369_v35 }
 0x165   : > { %2741 = vmatpush.bf16.msrb.mxu1 %v6021_v60  ;;  %v6591_v60 = vld [vmem:[%s9877_s1 + $0x134] sm:$0xf0] }
 0x166   : > { %v3495_v31 = vmax.f32 %v2418_v61, 0.0  ;;  %v6716_v61 = vld [vmem:[%s9877_s1 + $0x524] sm:$0xf] }
 0x167   : > { %v2321_v38 = vpop.f32.mrf.mxu0 }
 0x168   : > { %v2322_v12 = vadd.f32 %v2321_v38, %v7764_v7  ;;  %v2370_v63 = vpop.f32.mrf.mxu1 }
 0x16a   : > { %v2371_v62 = vadd.f32 %v2370_v63, %v2322_v12  ;;  %v2419_v35 = vpop.f32.mrf.mxu2 }
 0x16b   : > { %v8077_v4 = vpop.f32.mrf.mxu3 }
 0x16c   : > { %v2420_v40 = vadd.f32 %v2419_v35, %v2371_v62  ;;  %v5368_v62 = vld [vmem:[%s9877_s1 + $0x128] sm:$0xf] }
 0x16e   : > { %v3499_v29 = vmax.f32 %v2420_v40, 0.0  ;;  %v5877_v40 = vor.u32 %v6716_v61, %v5874_v5 }
 0x16f   : > { %v2324_v16 = vpop.f32.mrf.mxu0  ;;  %2617 = vmatmul.bf16.gmra.mxu2 %v7402_v43 }
 0x170   : > { %v2325_v7 = vadd.f32 %v2324_v16, %v7789_v49  ;;  %v2373_v17 = vpop.f32.mrf.mxu1  ;;  %v8083_v12 = vpack.c.bf16 %v3499_v29, %v3495_v31  ;;  %2666 = vmatmul.bf16.gmra.mxu3 %v7757_v34  ;;  %v6559_v49 = vld [vmem:[%s9877_s1 + $0x34] sm:$0xf0]  ;;  %v5369_v16 = vor.u32 %v6591_v60, %v5368_v62  ;;  %2693 = vmatpush.bf16.msrb.mxu0 %v5877_v40 }
 0x171   : > { %v5241_v63 = vor.u32 %v6559_v49, %v5240_v44  ;;  %v6748_v49 = vld [vmem:[%s9877_s1 + $0x624] sm:$0xf] }
 0x172   : > { %v2374_v38 = vadd.f32 %v2373_v17, %v2325_v7  ;;  %2519 = vmatmul.bf16.gmra.mxu0 %v7398_v41  ;;  %10010 = vst [vmem:[#allocation42_spill] sm:$0xff] %v8083_v12  ;;  %v2422_v35 = vpop.f32.mrf.mxu2  ;;  %2840 = vmatpush.bf16.msrb.mxu3 %v5369_v16  ;;  %v6002_v12 = vld [vmem:[%s9877_s1 + $0x630] sm:$0xf0] }
 0x173   : > { %2568 = vmatmul.bf16.gmra.mxu1 %v7400_v42  ;;  %v8104_v17 = vpop.f32.mrf.mxu3  ;;  %2791 = vmatpush.bf16.msrb.mxu2 %v5241_v63  ;;  %v6005_v5 = vor.u32 %v6748_v49, %v6002_v12  ;;  %v5224_v12 = vld [vmem:[%s9877_s1 + $0x8] sm:$0xf]  ;;  %v5858_v49 = vld [vmem:[%s9877_s1 + $0x510] sm:$0xf0] }
 0x174   : > { %v2423_v7 = vadd.f32 %v2422_v35, %v2374_v38 }
 0x175   : > { %2742 = vmatpush.bf16.msrb.mxu1 %v6005_v5  ;;  %v6587_v5 = vld [vmem:[%s9877_s1 + $0x114] sm:$0xf0] }
 0x176   : > { %v3503_v40 = vmax.f32 %v2423_v7, 0.0  ;;  %v6712_v7 = vld [vmem:[%s9877_s1 + $0x504] sm:$0xf] }
 0x177   : > { %v2326_v31 = vpop.f32.mrf.mxu0 }
 0x178   : > { %v2327_v29 = vadd.f32 %v2326_v31, %v7810_v59  ;;  %v2375_v44 = vpop.f32.mrf.mxu1 }
 0x17a   : > { %v2376_v61 = vadd.f32 %v2375_v44, %v2327_v29  ;;  %v2424_v38 = vpop.f32.mrf.mxu2 }
 0x17b   : > { %v8113_v60 = vpop.f32.mrf.mxu3 }
 0x17c   : > { %v2425_v62 = vadd.f32 %v2424_v38, %v2376_v61  ;;  %v5352_v61 = vld [vmem:[%s9877_s1 + $0x108] sm:$0xf] }
 0x17e   : > { %v3507_v16 = vmax.f32 %v2425_v62, 0.0  ;;  %v5861_v62 = vor.u32 %v6712_v7, %v5858_v49 }
 0x17f   : > { %v2329_v63 = vpop.f32.mrf.mxu0  ;;  %2622 = vmatmul.bf16.gmra.mxu2 %v7446_v11 }
 0x180   : > { %v2330_v59 = vadd.f32 %v2329_v63, %v7835_v24  ;;  %v2378_v35 = vpop.f32.mrf.mxu1  ;;  %v8119_v29 = vpack.c.bf16 %v3507_v16, %v3503_v40  ;;  %2671 = vmatmul.bf16.gmra.mxu3 %v7803_v32  ;;  %v6555_v24 = vld [vmem:[%s9877_s1 + $0x14] sm:$0xf0]  ;;  %v5353_v63 = vor.u32 %v6587_v5, %v5352_v61  ;;  %2694 = vmatpush.bf16.msrb.mxu0 %v5861_v62 }
 0x181   : > { %v5225_v44 = vor.u32 %v6555_v24, %v5224_v12  ;;  %v6744_v24 = vld [vmem:[%s9877_s1 + $0x604] sm:$0xf] }
 0x182   : > { %v2379_v31 = vadd.f32 %v2378_v35, %v2330_v59  ;;  %2524 = vmatmul.bf16.gmra.mxu0 %v7442_v9  ;;  %10011 = vst [vmem:[#allocation43_spill] sm:$0xff] %v8119_v29  ;;  %v2427_v38 = vpop.f32.mrf.mxu2  ;;  %2841 = vmatpush.bf16.msrb.mxu3 %v5353_v63  ;;  %v5986_v29 = vld [vmem:[%s9877_s1 + $0x610] sm:$0xf0] }
 0x183   : > { %2573 = vmatmul.bf16.gmra.mxu1 %v7444_v10  ;;  %v8140_v35 = vpop.f32.mrf.mxu3  ;;  %2792 = vmatpush.bf16.msrb.mxu2 %v5225_v44  ;;  %v5989_v49 = vor.u32 %v6744_v24, %v5986_v29  ;;  %v5848_v29 = vld [vmem:[%s9877_s1 + $0x4e8] sm:$0xf]  ;;  %v6647_v24 = vld [vmem:[%s9877_s1 + $0x2f4] sm:$0xf0] }
 0x184   : > { %v2428_v59 = vadd.f32 %v2427_v38, %v2379_v31 }
 0x185   : > { %2743 = vmatpush.bf16.msrb.mxu1 %v5989_v49  ;;  %v6743_v49 = vld [vmem:[%s9877_s1 + $0x5f4] sm:$0xf0] }
 0x186   : > { %v3511_v62 = vmax.f32 %v2428_v59, 0.0  ;;  %v5592_v59 = vld [vmem:[%s9877_s1 + $0x2e8] sm:$0xf] }
 0x187   : > { %v2331_v40 = vpop.f32.mrf.mxu0 }
 0x188   : > { %v2332_v16 = vadd.f32 %v2331_v40, %v7856_v58  ;;  %v2380_v12 = vpop.f32.mrf.mxu1 }
 0x18a   : > { %v2381_v7 = vadd.f32 %v2380_v12, %v2332_v16  ;;  %v2429_v31 = vpop.f32.mrf.mxu2 }
 0x18b   : > { %v8149_v5 = vpop.f32.mrf.mxu3 }
 0x18c   : > { %v2430_v61 = vadd.f32 %v2429_v31, %v2381_v7  ;;  %v5976_v7 = vld [vmem:[%s9877_s1 + $0x5e8] sm:$0xf] }
 0x18e   : > { %v3515_v63 = vmax.f32 %v2430_v61, 0.0  ;;  %v5593_v61 = vor.u32 %v6647_v24, %v5592_v59 }
 0x18f   : > { %v2334_v44 = vpop.f32.mrf.mxu0  ;;  %2627 = vmatmul.bf16.gmra.mxu2 %v7490_v48  ;;  %v10016_v48 = vld [vmem:[#allocation23_spill] sm:$0xff] }
 0x190   : > { %v2335_v58 = vadd.f32 %v2334_v44, %v7881_v18  ;;  %v2383_v38 = vpop.f32.mrf.mxu1  ;;  %v8155_v16 = vpack.c.bf16 %v3515_v63, %v3511_v62  ;;  %2676 = vmatmul.bf16.gmra.mxu3 %v7849_v39  ;;  %v6711_v18 = vld [vmem:[%s9877_s1 + $0x4f4] sm:$0xf0]  ;;  %v5977_v44 = vor.u32 %v6743_v49, %v5976_v7  ;;  %2883 = vmatpush.bf16.msra.mxu0 %v5593_v61  ;;  %v10015_v39 = vld [vmem:[#allocation22_spill] sm:$0xff] }
 0x191   : > { %v5849_v12 = vor.u32 %v6711_v18, %v5848_v29  ;;  %v5720_v18 = vld [vmem:[%s9877_s1 + $0x3e8] sm:$0xf] }
 0x192   : > { %v2384_v40 = vadd.f32 %v2383_v38, %v2335_v58  ;;  %2529 = vmatmul.bf16.gmra.mxu0 %v7486_v45  ;;  %10012 = vst [vmem:[#allocation44_spill] sm:$0xff] %v8155_v16  ;;  %v2432_v31 = vpop.f32.mrf.mxu2  ;;  %3030 = vmatpush.bf16.msra.mxu3 %v5977_v44  ;;  %v6679_v16 = vld [vmem:[%s9877_s1 + $0x3f4] sm:$0xf0] }
 0x193   : > { %2578 = vmatmul.bf16.gmra.mxu1 %v7488_v46  ;;  %v8176_v38 = vpop.f32.mrf.mxu3  ;;  %2981 = vmatpush.bf16.msra.mxu2 %v5849_v12  ;;  %v5721_v24 = vor.u32 %v6679_v16, %v5720_v18  ;;  %v5832_v16 = vld [vmem:[%s9877_s1 + $0x4c8] sm:$0xf]  ;;  %v6643_v18 = vld [vmem:[%s9877_s1 + $0x2d4] sm:$0xf0] }
 0x194   : > { %v2433_v58 = vadd.f32 %v2432_v31, %v2384_v40 }
 0x195   : > { %2932 = vmatpush.bf16.msra.mxu1 %v5721_v24  ;;  %v6739_v24 = vld [vmem:[%s9877_s1 + $0x5d4] sm:$0xf0] }
 0x196   : > { %v3519_v61 = vmax.f32 %v2433_v58, 0.0  ;;  %v5576_v58 = vld [vmem:[%s9877_s1 + $0x2c8] sm:$0xf] }
 0x197   : > { %v2336_v62 = vpop.f32.mrf.mxu0 }
 0x198   : > { %v2337_v63 = vadd.f32 %v2336_v62, %v7902_v19  ;;  %v2385_v29 = vpop.f32.mrf.mxu1 }
 0x19a   : > { %v2386_v59 = vadd.f32 %v2385_v29, %v2337_v63  ;;  %v2434_v40 = vpop.f32.mrf.mxu2 }
 0x19b   : > { %v8185_v49 = vpop.f32.mrf.mxu3 }
 0x19c   : > { %v2435_v7 = vadd.f32 %v2434_v40, %v2386_v59  ;;  %v5960_v59 = vld [vmem:[%s9877_s1 + $0x5c8] sm:$0xf] }
 0x19e   : > { %v3523_v44 = vmax.f32 %v2435_v7, 0.0  ;;  %v5577_v7 = vor.u32 %v6643_v18, %v5576_v58 }
 0x19f   : > { %v2339_v12 = vpop.f32.mrf.mxu0  ;;  %2632 = vmatmul.bf16.gmra.mxu2 %v10013_v0 }
 0x1a0   : > { %v2340_v19 = vadd.f32 %v2339_v12, %v7927_v47  ;;  %v2388_v31 = vpop.f32.mrf.mxu1  ;;  %v8191_v63 = vpack.c.bf16 %v3523_v44, %v3519_v61  ;;  %2681 = vmatmul.bf16.gmra.mxu3 %v7895_v56  ;;  %v6707_v47 = vld [vmem:[%s9877_s1 + $0x4d4] sm:$0xf0]  ;;  %v5961_v12 = vor.u32 %v6739_v24, %v5960_v59  ;;  %2884 = vmatpush.bf16.msra.mxu0 %v5577_v7 }
 0x1a1   : > { %v5833_v29 = vor.u32 %v6707_v47, %v5832_v16  ;;  %v5704_v47 = vld [vmem:[%s9877_s1 + $0x3c8] sm:$0xf] }
 0x1a2   : > { %v2389_v62 = vadd.f32 %v2388_v31, %v2340_v19  ;;  %2534 = vmatmul.bf16.gmra.mxu0 %v7530_v21  ;;  %10014 = vst [vmem:[#allocation45_spill] sm:$0xff] %v8191_v63  ;;  %v2437_v40 = vpop.f32.mrf.mxu2  ;;  %3031 = vmatpush.bf16.msra.mxu3 %v5961_v12  ;;  %v6675_v63 = vld [vmem:[%s9877_s1 + $0x3d4] sm:$0xf0] }
 0x1a3   : > { %2583 = vmatmul.bf16.gmra.mxu1 %v7532_v22  ;;  %v8212_v31 = vpop.f32.mrf.mxu3  ;;  %2982 = vmatpush.bf16.msra.mxu2 %v5833_v29  ;;  %v5705_v29 = vor.u32 %v6675_v63, %v5704_v47 }
 0x1a4   : > { %v2438_v19 = vadd.f32 %v2437_v40, %v2389_v62  ;;  %v8224_v62 = vld [vmem:[%s9878_s2] sm:$0xf] }
 0x1a5   : > { %v8227_v58 = vperm.slane %v8224_v62, 1  ;;  %2933 = vmatpush.bf16.msra.mxu1 %v5705_v29 }
 0x1a6   : > { %v3527_v56 = vmax.f32 %v2438_v19, 0.0  ;;  %v6703_v19 = vld [vmem:[%s9877_s1 + $0x4b4] sm:$0xf0] }
 0x1a7   : > { %v2341_v61 = vpop.f32.mrf.mxu0  ;;  %v2452_v18 = vadd.f32 %v7960_v28, %v8227_v58  ;;  %v5816_v28 = vld [vmem:[%s9877_s1 + $0x4a8] sm:$0xf]  ;;  %v2454_v29 = vadd.f32 %v7969_v3, %v8227_v58  ;;  %v6671_v3 = vld [vmem:[%s9877_s1 + $0x3b4] sm:$0xf0] }
 0x1a8   : > { %v2342_v44 = vadd.f32 %v2341_v61, %v7936_v1  ;;  %v2390_v16 = vpop.f32.mrf.mxu1  ;;  %v5817_v47 = vor.u32 %v6703_v19, %v5816_v28 }
 0x1aa   : > { %v2391_v1 = vadd.f32 %v2390_v16, %v2342_v44  ;;  %v2439_v59 = vpop.f32.mrf.mxu2  ;;  %v10017_v44 = vld [vmem:[#allocation2_spill] sm:$0xff]  ;;  %v5560_v16 = vld [vmem:[%s9877_s1 + $0x2a8] sm:$0xf]  ;;  %2983 = vmatpush.bf16.msra.mxu2 %v5817_v47 }
 0x1ab   : > { %v8231_v40 = vpop.f32.mrf.mxu3 }
 0x1ac   : > { %v2440_v24 = vadd.f32 %v2439_v59, %v2391_v1  ;;  %v6735_v1 = vld [vmem:[%s9877_s1 + $0x5b4] sm:$0xf0] }
 0x1ae   : > { %v3531_v0 = vmax.f32 %v2440_v24, 0.0 }
 0x1af   : > { %v2500_v7 = vpop.f32.mrf.mxu0  ;;  %2793 = vmatmul.bf16.vlgmr.msrb.gmra.mxu2 %v10017_v44  ;;  %v10021_v44 = vld [vmem:[#allocation4_spill] sm:$0xff] }
 0x1b0   : > { %v2501_v12 = vadd.f32 %v2500_v7, %v2452_v18  ;;  %v2549_v61 = vpop.f32.mrf.mxu1  ;;  %v8236_v63 = vpack.c.bf16 %v3531_v0, %v3527_v56  ;;  %2842 = vmatmul.bf16.vlgmr.msrb.gmra.mxu3 %v7205_v52  ;;  %v6639_v0 = vld [vmem:[%s9877_s1 + $0x2b4] sm:$0xf0]  ;;  %v5944_v56 = vld [vmem:[%s9877_s1 + $0x5a8] sm:$0xf] }
 0x1b1   : > { %v5561_v59 = vor.u32 %v6639_v0, %v5560_v16  ;;  %v5945_v24 = vor.u32 %v6735_v1, %v5944_v56  ;;  %v5688_v52 = vld [vmem:[%s9877_s1 + $0x3a8] sm:$0xf] }
 0x1b2   : > { %v2550_v22 = vadd.f32 %v2549_v61, %v2501_v12  ;;  %2695 = vmatmul.bf16.vlgmr.msrb.gmra.mxu0 %v10015_v39  ;;  %10018 = vst [vmem:[#allocation23_spill] sm:$0xff] %v8236_v63  ;;  %v2598_v18 = vpop.f32.mrf.mxu2  ;;  %v5689_v0 = vor.u32 %v6671_v3, %v5688_v52  ;;  %v5800_v52 = vld [vmem:[%s9877_s1 + $0x488] sm:$0xf]  ;;  %v6635_v3 = vld [vmem:[%s9877_s1 + $0x294] sm:$0xf0] }
 0x1b3   : > { %2744 = vmatmul.bf16.vlgmr.msrb.gmra.mxu1 %v10016_v48  ;;  %v2647_v12 = vpop.f32.mrf.mxu3  ;;  %2885 = vmatpush.bf16.msra.mxu0 %v5561_v59 }
 0x1b4   : > { %v2599_v7 = vadd.f32 %v2598_v18, %v2550_v22  ;;  %3032 = vmatpush.bf16.msra.mxu3 %v5945_v24  ;;  %2934 = vmatpush.bf16.msra.mxu1 %v5689_v0  ;;  %v2457_v22 = vadd.f32 %v7996_v30, %v8227_v58  ;;  %v6699_v30 = vld [vmem:[%s9877_s1 + $0x494] sm:$0xf0] }
 0x1b5   : > { %v6731_v0 = vld [vmem:[%s9877_s1 + $0x594] sm:$0xf0] }
 0x1b6   : > { %v8259_v63 = vadd.f32 %v2647_v12, %v2599_v7  ;;  %v10019_v12 = vld [vmem:[#allocation24_spill] sm:$0xff] }
 0x1b7   : > { %v2502_v61 = vpop.f32.mrf.mxu0 }
 0x1b8   : > { %v2503_v28 = vadd.f32 %v2502_v61, %v2454_v29  ;;  %v2551_v19 = vpop.f32.mrf.mxu1  ;;  %v10020_v61 = vld [vmem:[#allocation25_spill] sm:$0xff] }
 0x1ba   : > { %v2552_v16 = vadd.f32 %v2551_v19, %v2503_v28  ;;  %v2600_v47 = vpop.f32.mrf.mxu2  ;;  %v5544_v28 = vld [vmem:[%s9877_s1 + $0x288] sm:$0xf]  ;;  %v5801_v19 = vor.u32 %v6699_v30, %v5800_v52 }
 0x1bb   : > { %v2649_v1 = vpop.f32.mrf.mxu3 }
 0x1bc   : > { %v2601_v56 = vadd.f32 %v2600_v47, %v2552_v16  ;;  %v5928_v16 = vld [vmem:[%s9877_s1 + $0x588] sm:$0xf]  ;;  %2984 = vmatpush.bf16.msra.mxu2 %v5801_v19 }
 0x1be   : > { %v8269_v24 = vadd.f32 %v2649_v1, %v2601_v56  ;;  %v5545_v56 = vor.u32 %v6635_v3, %v5544_v28  ;;  %v5929_v1 = vor.u32 %v6731_v0, %v5928_v16 }
 0x1bf   : > { %v2505_v29 = vpop.f32.mrf.mxu0  ;;  %2798 = vmatmul.bf16.gmra.mxu2 %v10021_v44  ;;  %v5672_v44 = vld [vmem:[%s9877_s1 + $0x388] sm:$0xf] }
 0x1c0   : > { %v2506_v18 = vadd.f32 %v2505_v29, %v2457_v22  ;;  %v2554_v59 = vpop.f32.mrf.mxu1  ;;  %2847 = vmatmul.bf16.gmra.mxu3 %v7266_v25  ;;  %v2459_v22 = vadd.f32 %v8005_v37, %v8227_v58  ;;  %2886 = vmatpush.bf16.msra.mxu0 %v5545_v56  ;;  %v6667_v37 = vld [vmem:[%s9877_s1 + $0x394] sm:$0xf0] }
 0x1c1   : > { %3033 = vmatpush.bf16.msra.mxu3 %v5929_v1  ;;  %v5673_v3 = vor.u32 %v6667_v37, %v5672_v44  ;;  %v6695_v44 = vld [vmem:[%s9877_s1 + $0x474] sm:$0xf0] }
 0x1c2   : > { %v2555_v7 = vadd.f32 %v2554_v59, %v2506_v18  ;;  %2700 = vmatmul.bf16.gmra.mxu0 %v10019_v12  ;;  %v2603_v47 = vpop.f32.mrf.mxu2  ;;  %v6631_v37 = vld [vmem:[%s9877_s1 + $0x274] sm:$0xf0] }
 0x1c3   : > { %2749 = vmatmul.bf16.gmra.mxu1 %v10020_v61  ;;  %v2652_v18 = vpop.f32.mrf.mxu3  ;;  %v10024_v61 = vld [vmem:[#allocation6_spill] sm:$0xff] }
 0x1c4   : > { %v2604_v29 = vadd.f32 %v2603_v47, %v2555_v7  ;;  %2935 = vmatpush.bf16.msra.mxu1 %v5673_v3  ;;  %v2462_v7 = vadd.f32 %v8032_v8, %v8227_v58  ;;  %v5784_v8 = vld [vmem:[%s9877_s1 + $0x468] sm:$0xf]  ;;  %v6727_v3 = vld [vmem:[%s9877_s1 + $0x574] sm:$0xf0] }
 0x1c6   : > { %v8295_v25 = vadd.f32 %v2652_v18, %v2604_v29  ;;  %v10022_v18 = vld [vmem:[#allocation26_spill] sm:$0xff] }
 0x1c7   : > { %v2507_v59 = vpop.f32.mrf.mxu0 }
 0x1c8   : > { %v2508_v52 = vadd.f32 %v2507_v59, %v2459_v22  ;;  %v2556_v30 = vpop.f32.mrf.mxu1  ;;  %v10023_v59 = vld [vmem:[#allocation27_spill] sm:$0xff] }
 0x1ca   : > { %v2557_v28 = vadd.f32 %v2556_v30, %v2508_v52  ;;  %v2605_v19 = vpop.f32.mrf.mxu2  ;;  %v5528_v52 = vld [vmem:[%s9877_s1 + $0x268] sm:$0xf]  ;;  %v5785_v30 = vor.u32 %v6695_v44, %v5784_v8 }
 0x1cb   : > { %v2654_v0 = vpop.f32.mrf.mxu3 }
 0x1cc   : > { %v2606_v16 = vadd.f32 %v2605_v19, %v2557_v28  ;;  %v5912_v28 = vld [vmem:[%s9877_s1 + $0x568] sm:$0xf]  ;;  %2985 = vmatpush.bf16.msra.mxu2 %v5785_v30 }
 0x1ce   : > { %v8305_v1 = vadd.f32 %v2654_v0, %v2606_v16  ;;  %v5529_v16 = vor.u32 %v6631_v37, %v5528_v52  ;;  %v5913_v0 = vor.u32 %v6727_v3, %v5912_v28 }
 0x1cf   : > { %v2510_v22 = vpop.f32.mrf.mxu0  ;;  %2803 = vmatmul.bf16.gmra.mxu2 %v10024_v61  ;;  %v5656_v61 = vld [vmem:[%s9877_s1 + $0x368] sm:$0xf] }
 0x1d0   : > { %v2511_v47 = vadd.f32 %v2510_v22, %v2462_v7  ;;  %v2559_v56 = vpop.f32.mrf.mxu1  ;;  %2852 = vmatmul.bf16.gmra.mxu3 %v7310_v50  ;;  %v2464_v7 = vadd.f32 %v8041_v20, %v8227_v58  ;;  %2887 = vmatpush.bf16.msra.mxu0 %v5529_v16  ;;  %v6663_v20 = vld [vmem:[%s9877_s1 + $0x374] sm:$0xf0] }
 0x1d1   : > { %3034 = vmatpush.bf16.msra.mxu3 %v5913_v0  ;;  %v5657_v37 = vor.u32 %v6663_v20, %v5656_v61  ;;  %v6691_v61 = vld [vmem:[%s9877_s1 + $0x454] sm:$0xf0] }
 0x1d2   : > { %v2560_v29 = vadd.f32 %v2559_v56, %v2511_v47  ;;  %2705 = vmatmul.bf16.gmra.mxu0 %v10022_v18  ;;  %v2608_v19 = vpop.f32.mrf.mxu2  ;;  %v6627_v20 = vld [vmem:[%s9877_s1 + $0x254] sm:$0xf0] }
 0x1d3   : > { %2754 = vmatmul.bf16.gmra.mxu1 %v10023_v59  ;;  %v2657_v47 = vpop.f32.mrf.mxu3  ;;  %v10027_v59 = vld [vmem:[#allocation8_spill] sm:$0xff] }
 0x1d4   : > { %v2609_v22 = vadd.f32 %v2608_v19, %v2560_v29  ;;  %2936 = vmatpush.bf16.msra.mxu1 %v5657_v37  ;;  %v2467_v29 = vadd.f32 %v8068_v55, %v8227_v58  ;;  %v5768_v55 = vld [vmem:[%s9877_s1 + $0x448] sm:$0xf]  ;;  %v6723_v37 = vld [vmem:[%s9877_s1 + $0x554] sm:$0xf0] }
 0x1d6   : > { %v8331_v50 = vadd.f32 %v2657_v47, %v2609_v22  ;;  %v10025_v47 = vld [vmem:[#allocation28_spill] sm:$0xff] }
 0x1d7   : > { %v2512_v56 = vpop.f32.mrf.mxu0 }
 0x1d8   : > { %v2513_v8 = vadd.f32 %v2512_v56, %v2464_v7  ;;  %v2561_v44 = vpop.f32.mrf.mxu1  ;;  %v10026_v56 = vld [vmem:[#allocation29_spill] sm:$0xff] }
 0x1da   : > { %v2562_v52 = vadd.f32 %v2561_v44, %v2513_v8  ;;  %v2610_v30 = vpop.f32.mrf.mxu2  ;;  %v5512_v8 = vld [vmem:[%s9877_s1 + $0x248] sm:$0xf]  ;;  %v5769_v44 = vor.u32 %v6691_v61, %v5768_v55 }
 0x1db   : > { %v2659_v3 = vpop.f32.mrf.mxu3 }
 0x1dc   : > { %v2611_v28 = vadd.f32 %v2610_v30, %v2562_v52  ;;  %v5896_v52 = vld [vmem:[%s9877_s1 + $0x548] sm:$0xf]  ;;  %2986 = vmatpush.bf16.msra.mxu2 %v5769_v44 }
 0x1de   : > { %v8341_v0 = vadd.f32 %v2659_v3, %v2611_v28  ;;  %v5513_v28 = vor.u32 %v6627_v20, %v5512_v8  ;;  %v5897_v3 = vor.u32 %v6723_v37, %v5896_v52 }
 0x1df   : > { %v2515_v7 = vpop.f32.mrf.mxu0  ;;  %2808 = vmatmul.bf16.gmra.mxu2 %v10027_v59  ;;  %v5640_v59 = vld [vmem:[%s9877_s1 + $0x348] sm:$0xf] }
 0x1e0   : > { %v2516_v19 = vadd.f32 %v2515_v7, %v2467_v29  ;;  %v2564_v16 = vpop.f32.mrf.mxu1  ;;  %2857 = vmatmul.bf16.gmra.mxu3 %v7354_v13  ;;  %v2469_v29 = vadd.f32 %v8077_v4, %v8227_v58  ;;  %2888 = vmatpush.bf16.msra.mxu0 %v5513_v28  ;;  %v6659_v4 = vld [vmem:[%s9877_s1 + $0x354] sm:$0xf0] }
 0x1e1   : > { %3035 = vmatpush.bf16.msra.mxu3 %v5897_v3  ;;  %v5641_v20 = vor.u32 %v6659_v4, %v5640_v59  ;;  %v6687_v59 = vld [vmem:[%s9877_s1 + $0x434] sm:$0xf0] }
 0x1e2   : > { %v2565_v22 = vadd.f32 %v2564_v16, %v2516_v19  ;;  %2710 = vmatmul.bf16.gmra.mxu0 %v10025_v47  ;;  %v2613_v30 = vpop.f32.mrf.mxu2  ;;  %v6623_v4 = vld [vmem:[%s9877_s1 + $0x234] sm:$0xf0] }
 0x1e3   : > { %2759 = vmatmul.bf16.gmra.mxu1 %v10026_v56  ;;  %v2662_v19 = vpop.f32.mrf.mxu3  ;;  %v10030_v56 = vld [vmem:[#allocation10_spill] sm:$0xff] }
 0x1e4   : > { %v2614_v7 = vadd.f32 %v2613_v30, %v2565_v22  ;;  %2937 = vmatpush.bf16.msra.mxu1 %v5641_v20  ;;  %v2472_v22 = vadd.f32 %v8104_v17, %v8227_v58  ;;  %v5752_v17 = vld [vmem:[%s9877_s1 + $0x428] sm:$0xf]  ;;  %v6719_v20 = vld [vmem:[%s9877_s1 + $0x534] sm:$0xf0] }
 0x1e6   : > { %v8367_v13 = vadd.f32 %v2662_v19, %v2614_v7  ;;  %v10028_v19 = vld [vmem:[#allocation30_spill] sm:$0xff] }
 0x1e7   : > { %v2517_v16 = vpop.f32.mrf.mxu0 }
 0x1e8   : > { %v2518_v55 = vadd.f32 %v2517_v16, %v2469_v29  ;;  %v2566_v61 = vpop.f32.mrf.mxu1  ;;  %v10029_v16 = vld [vmem:[#allocation31_spill] sm:$0xff] }
 0x1ea   : > { %v2567_v8 = vadd.f32 %v2566_v61, %v2518_v55  ;;  %v2615_v44 = vpop.f32.mrf.mxu2  ;;  %v5496_v55 = vld [vmem:[%s9877_s1 + $0x228] sm:$0xf]  ;;  %v5753_v61 = vor.u32 %v6687_v59, %v5752_v17 }
 0x1eb   : > { %v2664_v37 = vpop.f32.mrf.mxu3 }
 0x1ec   : > { %v2616_v52 = vadd.f32 %v2615_v44, %v2567_v8  ;;  %v5880_v8 = vld [vmem:[%s9877_s1 + $0x528] sm:$0xf]  ;;  %2987 = vmatpush.bf16.msra.mxu2 %v5753_v61 }
 0x1ee   : > { %v8377_v3 = vadd.f32 %v2664_v37, %v2616_v52  ;;  %v5497_v52 = vor.u32 %v6623_v4, %v5496_v55  ;;  %v5881_v37 = vor.u32 %v6719_v20, %v5880_v8 }
 0x1ef   : > { %v2520_v29 = vpop.f32.mrf.mxu0  ;;  %2813 = vmatmul.bf16.gmra.mxu2 %v10030_v56  ;;  %v5624_v56 = vld [vmem:[%s9877_s1 + $0x328] sm:$0xf] }
 0x1f0   : > { %v2521_v30 = vadd.f32 %v2520_v29, %v2472_v22  ;;  %v2569_v28 = vpop.f32.mrf.mxu1  ;;  %2862 = vmatmul.bf16.gmra.mxu3 %v7398_v41  ;;  %v2474_v22 = vadd.f32 %v8113_v60, %v8227_v58  ;;  %2889 = vmatpush.bf16.msra.mxu0 %v5497_v52  ;;  %v6655_v60 = vld [vmem:[%s9877_s1 + $0x334] sm:$0xf0] }
 0x1f1   : > { %3036 = vmatpush.bf16.msra.mxu3 %v5881_v37  ;;  %v5625_v4 = vor.u32 %v6655_v60, %v5624_v56  ;;  %v6683_v56 = vld [vmem:[%s9877_s1 + $0x414] sm:$0xf0] }
 0x1f2   : > { %v2570_v7 = vadd.f32 %v2569_v28, %v2521_v30  ;;  %2715 = vmatmul.bf16.gmra.mxu0 %v10028_v19  ;;  %v2618_v44 = vpop.f32.mrf.mxu2  ;;  %v6619_v60 = vld [vmem:[%s9877_s1 + $0x214] sm:$0xf0] }
 0x1f3   : > { %2764 = vmatmul.bf16.gmra.mxu1 %v10029_v16  ;;  %v2667_v30 = vpop.f32.mrf.mxu3  ;;  %v10033_v16 = vld [vmem:[#allocation12_spill] sm:$0xff] }
 0x1f4   : > { %v2619_v29 = vadd.f32 %v2618_v44, %v2570_v7  ;;  %2938 = vmatpush.bf16.msra.mxu1 %v5625_v4  ;;  %v2477_v7 = vadd.f32 %v8140_v35, %v8227_v58  ;;  %v5736_v35 = vld [vmem:[%s9877_s1 + $0x408] sm:$0xf]  ;;  %v6715_v4 = vld [vmem:[%s9877_s1 + $0x514] sm:$0xf0] }
 0x1f6   : > { %v8403_v41 = vadd.f32 %v2667_v30, %v2619_v29  ;;  %v10031_v30 = vld [vmem:[#allocation32_spill] sm:$0xff] }
 0x1f7   : > { %v2522_v28 = vpop.f32.mrf.mxu0 }
 0x1f8   : > { %v2523_v17 = vadd.f32 %v2522_v28, %v2474_v22  ;;  %v2571_v59 = vpop.f32.mrf.mxu1  ;;  %v10032_v28 = vld [vmem:[#allocation33_spill] sm:$0xff] }
 0x1fa   : > { %v2572_v55 = vadd.f32 %v2571_v59, %v2523_v17  ;;  %v2620_v61 = vpop.f32.mrf.mxu2  ;;  %v5480_v17 = vld [vmem:[%s9877_s1 + $0x208] sm:$0xf]  ;;  %v5737_v59 = vor.u32 %v6683_v56, %v5736_v35 }
 0x1fb   : > { %v2669_v20 = vpop.f32.mrf.mxu3 }
 0x1fc   : > { %v2621_v8 = vadd.f32 %v2620_v61, %v2572_v55  ;;  %v5864_v55 = vld [vmem:[%s9877_s1 + $0x508] sm:$0xf]  ;;  %2988 = vmatpush.bf16.msra.mxu2 %v5737_v59 }
 0x1fe   : > { %v8413_v37 = vadd.f32 %v2669_v20, %v2621_v8  ;;  %v5481_v8 = vor.u32 %v6619_v60, %v5480_v17  ;;  %v5865_v20 = vor.u32 %v6715_v4, %v5864_v55 }
 0x1ff   : > { %v2525_v22 = vpop.f32.mrf.mxu0  ;;  %2818 = vmatmul.bf16.gmra.mxu2 %v10033_v16  ;;  %v5608_v16 = vld [vmem:[%s9877_s1 + $0x308] sm:$0xf] }
 0x200   : > { %v2526_v44 = vadd.f32 %v2525_v22, %v2477_v7  ;;  %v2574_v52 = vpop.f32.mrf.mxu1  ;;  %2867 = vmatmul.bf16.gmra.mxu3 %v7442_v9  ;;  %v2479_v7 = vadd.f32 %v8149_v5, %v8227_v58  ;;  %2890 = vmatpush.bf16.msra.mxu0 %v5481_v8  ;;  %v6651_v5 = vld [vmem:[%s9877_s1 + $0x314] sm:$0xf0] }
 0x201   : > { %3037 = vmatpush.bf16.msra.mxu3 %v5865_v20  ;;  %v5609_v60 = vor.u32 %v6651_v5, %v5608_v16  ;;  %v5466_v16 = vld [vmem:[%s9877_s1 + $0x1f8] sm:$0xf0]  ;;  %v6775_v5 = vld [vmem:[%s9877_s1 + $0x6f4] sm:$0xf0] }
 0x202   : > { %v2575_v29 = vadd.f32 %v2574_v52, %v2526_v44  ;;  %2720 = vmatmul.bf16.gmra.mxu0 %v10031_v30  ;;  %v2623_v61 = vpop.f32.mrf.mxu2 }
 0x203   : > { %2769 = vmatmul.bf16.gmra.mxu1 %v10032_v28  ;;  %v2672_v44 = vpop.f32.mrf.mxu3  ;;  %v10036_v28 = vld [vmem:[#allocation14_spill] sm:$0xff] }
 0x204   : > { %v2624_v22 = vadd.f32 %v2623_v61, %v2575_v29  ;;  %2939 = vmatpush.bf16.msra.mxu1 %v5609_v60  ;;  %v2482_v29 = vadd.f32 %v8176_v38, %v8227_v58  ;;  %v6613_v38 = vld [vmem:[%s9877_s1 + $0x1ec] sm:$0xf]  ;;  %v5594_v60 = vld [vmem:[%s9877_s1 + $0x2f8] sm:$0xf0] }
 0x206   : > { %v8439_v9 = vadd.f32 %v2672_v44, %v2624_v22  ;;  %v10034_v44 = vld [vmem:[#allocation35_spill] sm:$0xff] }
 0x207   : > { %v2527_v52 = vpop.f32.mrf.mxu0 }
 0x208   : > { %v2528_v35 = vadd.f32 %v2527_v52, %v2479_v7  ;;  %v2576_v56 = vpop.f32.mrf.mxu1  ;;  %v10035_v52 = vld [vmem:[#allocation36_spill] sm:$0xff] }
 0x20a   : > { %v2577_v17 = vadd.f32 %v2576_v56, %v2528_v35  ;;  %v2625_v59 = vpop.f32.mrf.mxu2  ;;  %v6104_v35 = vld [vmem:[%s9877_s1 + $0x6e8] sm:$0xf]  ;;  %v5469_v56 = vor.u32 %v6613_v38, %v5466_v16 }
 0x20b   : > { %v2674_v4 = vpop.f32.mrf.mxu3 }
 0x20c   : > { %v2626_v55 = vadd.f32 %v2625_v59, %v2577_v17  ;;  %v6645_v17 = vld [vmem:[%s9877_s1 + $0x2ec] sm:$0xf]  ;;  %3177 = vmatpush.bf16.msrb.mxu2 %v5469_v56 }
 0x20e   : > { %v8449_v20 = vadd.f32 %v2674_v4, %v2626_v55  ;;  %v6105_v55 = vor.u32 %v6775_v5, %v6104_v35  ;;  %v5597_v4 = vor.u32 %v6645_v17, %v5594_v60 }
 0x20f   : > { %v2530_v7 = vpop.f32.mrf.mxu0  ;;  %2823 = vmatmul.bf16.gmra.mxu2 %v10036_v28  ;;  %v6581_v28 = vld [vmem:[%s9877_s1 + $0xec] sm:$0xf] }
 0x210   : > { %v2531_v61 = vadd.f32 %v2530_v7, %v2482_v29  ;;  %v2579_v8 = vpop.f32.mrf.mxu1  ;;  %2872 = vmatmul.bf16.gmra.mxu3 %v7486_v45  ;;  %v2484_v29 = vadd.f32 %v8185_v49, %v8227_v58  ;;  %3079 = vmatpush.bf16.msrb.mxu0 %v6105_v55  ;;  %v5338_v49 = vld [vmem:[%s9877_s1 + $0xf8] sm:$0xf0] }
 0x211   : > { %3226 = vmatpush.bf16.msrb.mxu3 %v5597_v4  ;;  %v5341_v5 = vor.u32 %v6581_v28, %v5338_v49  ;;  %v5450_v28 = vld [vmem:[%s9877_s1 + $0x1d8] sm:$0xf0]  ;;  %v6641_v49 = vld [vmem:[%s9877_s1 + $0x2cc] sm:$0xf] }
 0x212   : > { %v2580_v22 = vadd.f32 %v2579_v8, %v2531_v61  ;;  %2725 = vmatmul.bf16.gmra.mxu0 %v10034_v44  ;;  %v2628_v59 = vpop.f32.mrf.mxu2 }
 0x213   : > { %2774 = vmatmul.bf16.gmra.mxu1 %v10035_v52  ;;  %v2677_v61 = vpop.f32.mrf.mxu3 }
 0x214   : > { %v2629_v7 = vadd.f32 %v2628_v59, %v2580_v22  ;;  %3128 = vmatpush.bf16.msrb.mxu1 %v5341_v5  ;;  %v2487_v22 = vadd.f32 %v8212_v31, %v8227_v58  ;;  %v6609_v31 = vld [vmem:[%s9877_s1 + $0x1cc] sm:$0xf]  ;;  %v2489_v5 = vadd.f32 %v8231_v40, %v8227_v58  ;;  %v5322_v58 = vld [vmem:[%s9877_s1 + $0xd8] sm:$0xf0] }
 0x216   : > { %v8475_v45 = vadd.f32 %v2677_v61, %v2629_v7  ;;  %v10037_v61 = vld [vmem:[#allocation17_spill] sm:$0xff] }
 0x217   : > { %v2532_v8 = vpop.f32.mrf.mxu0 }
 0x218   : > { %v2533_v38 = vadd.f32 %v2532_v8, %v2484_v29  ;;  %v2581_v16 = vpop.f32.mrf.mxu1  ;;  %v6088_v8 = vld [vmem:[%s9877_s1 + $0x6c8] sm:$0xf] }
 0x21a   : > { %v2582_v35 = vadd.f32 %v2581_v16, %v2533_v38  ;;  %v2630_v56 = vpop.f32.mrf.mxu2  ;;  %v5453_v38 = vor.u32 %v6609_v31, %v5450_v28  ;;  %v6771_v16 = vld [vmem:[%s9877_s1 + $0x6d4] sm:$0xf0] }
 0x21b   : > { %v2679_v60 = vpop.f32.mrf.mxu3 }
 0x21c   : > { %v2631_v17 = vadd.f32 %v2630_v56, %v2582_v35  ;;  %v5578_v35 = vld [vmem:[%s9877_s1 + $0x2d8] sm:$0xf0]  ;;  %v6089_v56 = vor.u32 %v6771_v16, %v6088_v8  ;;  %3178 = vmatpush.bf16.msrb.mxu2 %v5453_v38 }
 0x21e   : > { %v8485_v4 = vadd.f32 %v2679_v60, %v2631_v17  ;;  %v5581_v17 = vor.u32 %v6641_v49, %v5578_v35  ;;  %3080 = vmatpush.bf16.msrb.mxu0 %v6089_v56 }
 0x21f   : > { %v2535_v29 = vpop.f32.mrf.mxu0  ;;  %2828 = vmatmul.bf16.gmra.mxu2 %v10037_v61 }
 0x220   : > { %v2536_v59 = vadd.f32 %v2535_v29, %v2487_v22  ;;  %v2584_v55 = vpop.f32.mrf.mxu1  ;;  %2877 = vmatmul.bf16.gmra.mxu3 %v7530_v21  ;;  %v6577_v21 = vld [vmem:[%s9877_s1 + $0xcc] sm:$0xf] }
 0x221   : > { %3227 = vmatpush.bf16.msrb.mxu3 %v5581_v17  ;;  %v5325_v8 = vor.u32 %v6577_v21, %v5322_v58  ;;  %v10038_v17 = vld [vmem:[#allocation21_spill] sm:$0xff]  ;;  %v6605_v21 = vld [vmem:[%s9877_s1 + $0x1ac] sm:$0xf] }
 0x222   : > { %v2585_v7 = vadd.f32 %v2584_v55, %v2536_v59  ;;  %2730 = vmatmul.bf16.gmra.mxu0 %v7897_v2  ;;  %v2633_v22 = vpop.f32.mrf.mxu2 }
 0x223   : > { %2779 = vmatmul.bf16.gmra.mxu1 %v7899_v23  ;;  %v2682_v29 = vpop.f32.mrf.mxu3 }
 0x224   : > { %v2634_v60 = vadd.f32 %v2633_v22, %v2585_v7  ;;  %3129 = vmatpush.bf16.msrb.mxu1 %v5325_v8 }
 0x226   : > { %v8511_v28 = vadd.f32 %v2682_v29, %v2634_v60  ;;  %v8526_v60 = vperm.slane %v8224_v62, 2  ;;  %v6767_v62 = vld [vmem:[%s9877_s1 + $0x6b4] sm:$0xf0] }
 0x227   : > { %v2537_v59 = vpop.f32.mrf.mxu0 }
 0x228   : > { %v2538_v55 = vadd.f32 %v2537_v59, %v2489_v5  ;;  %v2586_v31 = vpop.f32.mrf.mxu1  ;;  %v6072_v59 = vld [vmem:[%s9877_s1 + $0x6a8] sm:$0xf] }
 0x229   : > { %v6073_v58 = vor.u32 %v6767_v62, %v6072_v59 }
 0x22a   : > { %v2587_v40 = vadd.f32 %v2586_v31, %v2538_v55  ;;  %v2635_v7 = vpop.f32.mrf.mxu2  ;;  %v6637_v55 = vld [vmem:[%s9877_s1 + $0x2ac] sm:$0xf] }
 0x22b   : > { %v2684_v38 = vpop.f32.mrf.mxu3  ;;  %3081 = vmatpush.bf16.msrb.mxu0 %v6073_v58 }
 0x22c   : > { %v2636_v16 = vadd.f32 %v2635_v7, %v2587_v40  ;;  %v5562_v40 = vld [vmem:[%s9877_s1 + $0x2b8] sm:$0xf0] }
 0x22e   : > { %v8520_v22 = vadd.f32 %v2684_v38, %v2636_v16  ;;  %v5565_v38 = vor.u32 %v6637_v55, %v5562_v40 }
 0x22f   : > { %v2696_v49 = vpop.f32.mrf.mxu0  ;;  %2989 = vmatmul.bf16.vlgmr.msra.gmra.mxu2 %v10038_v17 }
 0x230   : > { %v2697_v35 = vadd.f32 %v2696_v49, %v8259_v63  ;;  %v2745_v5 = vpop.f32.mrf.mxu1  ;;  %3038 = vmatmul.bf16.vlgmr.msra.gmra.mxu3 %v10015_v39  ;;  %v5434_v63 = vld [vmem:[%s9877_s1 + $0x1b8] sm:$0xf0] }
 0x231   : > { %v5437_v29 = vor.u32 %v6605_v21, %v5434_v63  ;;  %3228 = vmatpush.bf16.msrb.mxu3 %v5565_v38  ;;  %v6573_v21 = vld [vmem:[%s9877_s1 + $0xac] sm:$0xf]  ;;  %v5306_v63 = vld [vmem:[%s9877_s1 + $0xb8] sm:$0xf0] }
 0x232   : > { %v2746_v56 = vadd.f32 %v2745_v5, %v2697_v35  ;;  %2891 = vmatmul.bf16.vlgmr.msra.gmra.mxu0 %v7207_v53  ;;  %v2794_v31 = vpop.f32.mrf.mxu2  ;;  %v5309_v62 = vor.u32 %v6573_v21, %v5306_v63  ;;  %v6763_v21 = vld [vmem:[%s9877_s1 + $0x694] sm:$0xf0]  ;;  %v6633_v63 = vld [vmem:[%s9877_s1 + $0x28c] sm:$0xf] }
 0x233   : > { %2940 = vmatmul.bf16.vlgmr.msra.gmra.mxu1 %v7214_v57  ;;  %v2795_v8 = vadd.f32 %v2794_v31, %v8526_v60  ;;  %v2843_v7 = vpop.f32.mrf.mxu3  ;;  %3179 = vmatpush.bf16.msrb.mxu2 %v5437_v29 }
 0x234   : > { %v3472_v31 = vmax.f32 %v2746_v56, 0.0  ;;  %3130 = vmatpush.bf16.msrb.mxu1 %v5309_v62  ;;  %v6601_v56 = vld [vmem:[%s9877_s1 + $0x18c] sm:$0xf] }
 0x235   : > { %v8549_v5 = vadd.f32 %v2843_v7, %v2795_v8 }
 0x237   : > { %v2698_v16 = vpop.f32.mrf.mxu0 }
 0x238   : > { %v2699_v49 = vadd.f32 %v2698_v16, %v8269_v24  ;;  %v2747_v35 = vpop.f32.mrf.mxu1 }
 0x23a   : > { %v2748_v59 = vadd.f32 %v2747_v35, %v2699_v49  ;;  %v2796_v24 = vpop.f32.mrf.mxu2  ;;  %v6056_v35 = vld [vmem:[%s9877_s1 + $0x688] sm:$0xf] }
 0x23b   : > { %v2797_v58 = vadd.f32 %v2796_v24, %v8526_v60  ;;  %v2845_v40 = vpop.f32.mrf.mxu3  ;;  %v6057_v62 = vor.u32 %v6763_v21, %v6056_v35 }
 0x23c   : > { %v3476_v29 = vmax.f32 %v2748_v59, 0.0 }
 0x23d   : > { %v8561_v38 = vadd.f32 %v2845_v40, %v2797_v58  ;;  %3082 = vmatpush.bf16.msrb.mxu0 %v6057_v62 }
 0x23e   : > { %v8557_v55 = vpack.c.bf16 %v3476_v29, %v3472_v31  ;;  %v5546_v31 = vld [vmem:[%s9877_s1 + $0x298] sm:$0xf0] }
 0x23f   : > { %v2701_v8 = vpop.f32.mrf.mxu0  ;;  %2994 = vmatmul.bf16.gmra.mxu2 %v7619_v6  ;;  %v5549_v40 = vor.u32 %v6633_v63, %v5546_v31 }
 0x240   : > { %10039 = vst [vmem:[#allocation24_spill] sm:$0xff] %v8557_v55  ;;  %v2702_v7 = vadd.f32 %v2701_v8, %v8295_v25  ;;  %v2750_v16 = vpop.f32.mrf.mxu1  ;;  %3043 = vmatmul.bf16.gmra.mxu3 %v10019_v12  ;;  %v5418_v25 = vld [vmem:[%s9877_s1 + $0x198] sm:$0xf0] }
 0x241   : > { %v5421_v49 = vor.u32 %v6601_v56, %v5418_v25  ;;  %3229 = vmatpush.bf16.msrb.mxu3 %v5549_v40  ;;  %v6569_v56 = vld [vmem:[%s9877_s1 + $0x8c] sm:$0xf]  ;;  %v5290_v25 = vld [vmem:[%s9877_s1 + $0x98] sm:$0xf0] }
 0x242   : > { %v2751_v39 = vadd.f32 %v2750_v16, %v2702_v7  ;;  %2896 = vmatmul.bf16.gmra.mxu0 %v7268_v26  ;;  %v2799_v59 = vpop.f32.mrf.mxu2  ;;  %v5293_v21 = vor.u32 %v6569_v56, %v5290_v25  ;;  %v6759_v56 = vld [vmem:[%s9877_s1 + $0x674] sm:$0xf0]  ;;  %v6629_v25 = vld [vmem:[%s9877_s1 + $0x26c] sm:$0xf] }
 0x243   : > { %2945 = vmatmul.bf16.gmra.mxu1 %v7270_v27  ;;  %v2800_v29 = vadd.f32 %v2799_v59, %v8526_v60  ;;  %v2848_v24 = vpop.f32.mrf.mxu3  ;;  %3180 = vmatpush.bf16.msrb.mxu2 %v5421_v49 }
 0x244   : > { %v3480_v59 = vmax.f32 %v2751_v39, 0.0  ;;  %3131 = vmatpush.bf16.msrb.mxu1 %v5293_v21  ;;  %v6597_v39 = vld [vmem:[%s9877_s1 + $0x16c] sm:$0xf] }
 0x245   : > { %v8587_v16 = vadd.f32 %v2848_v24, %v2800_v29 }
 0x247   : > { %v2703_v58 = vpop.f32.mrf.mxu0 }
 0x248   : > { %v2704_v8 = vadd.f32 %v2703_v58, %v8305_v1  ;;  %v2752_v7 = vpop.f32.mrf.mxu1 }
 0x24a   : > { %v2753_v35 = vadd.f32 %v2752_v7, %v2704_v8  ;;  %v2801_v63 = vpop.f32.mrf.mxu2  ;;  %v6040_v7 = vld [vmem:[%s9877_s1 + $0x668] sm:$0xf] }
 0x24b   : > { %v2802_v62 = vadd.f32 %v2801_v63, %v8526_v60  ;;  %v2850_v31 = vpop.f32.mrf.mxu3  ;;  %v6041_v21 = vor.u32 %v6759_v56, %v6040_v7 }
 0x24c   : > { %v3484_v49 = vmax.f32 %v2753_v35, 0.0 }
 0x24d   : > { %v8599_v40 = vadd.f32 %v2850_v31, %v2802_v62  ;;  %3083 = vmatpush.bf16.msrb.mxu0 %v6041_v21 }
 0x24e   : > { %v8595_v1 = vpack.c.bf16 %v3484_v49, %v3480_v59  ;;  %v5530_v59 = vld [vmem:[%s9877_s1 + $0x278] sm:$0xf0] }
 0x24f   : > { %v2706_v29 = vpop.f32.mrf.mxu0  ;;  %2999 = vmatmul.bf16.gmra.mxu2 %v7665_v36  ;;  %v5533_v31 = vor.u32 %v6629_v25, %v5530_v59 }
 0x250   : > { %10040 = vst [vmem:[#allocation26_spill] sm:$0xff] %v8595_v1  ;;  %v2707_v24 = vadd.f32 %v2706_v29, %v8331_v50  ;;  %v2755_v58 = vpop.f32.mrf.mxu1  ;;  %3048 = vmatmul.bf16.gmra.mxu3 %v10022_v18  ;;  %v5402_v50 = vld [vmem:[%s9877_s1 + $0x178] sm:$0xf0] }
 0x251   : > { %v5405_v8 = vor.u32 %v6597_v39, %v5402_v50  ;;  %3230 = vmatpush.bf16.msrb.mxu3 %v5533_v31  ;;  %v6565_v39 = vld [vmem:[%s9877_s1 + $0x6c] sm:$0xf]  ;;  %v5274_v50 = vld [vmem:[%s9877_s1 + $0x78] sm:$0xf0] }
 0x252   : > { %v2756_v55 = vadd.f32 %v2755_v58, %v2707_v24  ;;  %2901 = vmatmul.bf16.gmra.mxu0 %v7312_v51  ;;  %v2804_v35 = vpop.f32.mrf.mxu2  ;;  %v5277_v56 = vor.u32 %v6565_v39, %v5274_v50  ;;  %v6755_v39 = vld [vmem:[%s9877_s1 + $0x654] sm:$0xf0]  ;;  %v6625_v50 = vld [vmem:[%s9877_s1 + $0x24c] sm:$0xf] }
 0x253   : > { %2950 = vmatmul.bf16.gmra.mxu1 %v7314_v54  ;;  %v2805_v49 = vadd.f32 %v2804_v35, %v8526_v60  ;;  %v2853_v63 = vpop.f32.mrf.mxu3  ;;  %3181 = vmatpush.bf16.msrb.mxu2 %v5405_v8 }
 0x254   : > { %v3488_v35 = vmax.f32 %v2756_v55, 0.0  ;;  %3132 = vmatpush.bf16.msrb.mxu1 %v5277_v56  ;;  %v6593_v55 = vld [vmem:[%s9877_s1 + $0x14c] sm:$0xf] }
 0x255   : > { %v8625_v58 = vadd.f32 %v2853_v63, %v2805_v49 }
 0x257   : > { %v2708_v62 = vpop.f32.mrf.mxu0 }
 0x258   : > { %v2709_v29 = vadd.f32 %v2708_v62, %v8341_v0  ;;  %v2757_v24 = vpop.f32.mrf.mxu1 }
 0x25a   : > { %v2758_v7 = vadd.f32 %v2757_v24, %v2709_v29  ;;  %v2806_v25 = vpop.f32.mrf.mxu2  ;;  %v6024_v24 = vld [vmem:[%s9877_s1 + $0x648] sm:$0xf] }
 0x25b   : > { %v2807_v21 = vadd.f32 %v2806_v25, %v8526_v60  ;;  %v2855_v59 = vpop.f32.mrf.mxu3  ;;  %v6025_v56 = vor.u32 %v6755_v39, %v6024_v24 }
 0x25c   : > { %v3492_v8 = vmax.f32 %v2758_v7, 0.0 }
 0x25d   : > { %v8637_v31 = vadd.f32 %v2855_v59, %v2807_v21  ;;  %3084 = vmatpush.bf16.msrb.mxu0 %v6025_v56 }
 0x25e   : > { %v8633_v0 = vpack.c.bf16 %v3492_v8, %v3488_v35  ;;  %v5514_v35 = vld [vmem:[%s9877_s1 + $0x258] sm:$0xf0] }
 0x25f   : > { %v2711_v49 = vpop.f32.mrf.mxu0  ;;  %3004 = vmatmul.bf16.gmra.mxu2 %v7711_v33  ;;  %v5517_v59 = vor.u32 %v6625_v50, %v5514_v35 }
 0x260   : > { %10041 = vst [vmem:[#allocation28_spill] sm:$0xff] %v8633_v0  ;;  %v2712_v63 = vadd.f32 %v2711_v49, %v8367_v13  ;;  %v2760_v62 = vpop.f32.mrf.mxu1  ;;  %3053 = vmatmul.bf16.gmra.mxu3 %v10025_v47  ;;  %v5386_v13 = vld [vmem:[%s9877_s1 + $0x158] sm:$0xf0] }
 0x261   : > { %v5389_v29 = vor.u32 %v6593_v55, %v5386_v13  ;;  %3231 = vmatpush.bf16.msrb.mxu3 %v5517_v59  ;;  %v6561_v55 = vld [vmem:[%s9877_s1 + $0x4c] sm:$0xf]  ;;  %v5258_v13 = vld [vmem:[%s9877_s1 + $0x58] sm:$0xf0] }
 0x262   : > { %v2761_v1 = vadd.f32 %v2760_v62, %v2712_v63  ;;  %2906 = vmatmul.bf16.gmra.mxu0 %v7356_v14  ;;  %v2809_v7 = vpop.f32.mrf.mxu2  ;;  %v5261_v39 = vor.u32 %v6561_v55, %v5258_v13  ;;  %v6751_v55 = vld [vmem:[%s9877_s1 + $0x634] sm:$0xf0]  ;;  %v6621_v13 = vld [vmem:[%s9877_s1 + $0x22c] sm:$0xf] }
 0x263   : > { %2955 = vmatmul.bf16.gmra.mxu1 %v7358_v15  ;;  %v2810_v8 = vadd.f32 %v2809_v7, %v8526_v60  ;;  %v2858_v25 = vpop.f32.mrf.mxu3  ;;  %3182 = vmatpush.bf16.msrb.mxu2 %v5389_v29 }
 0x264   : > { %v3496_v7 = vmax.f32 %v2761_v1, 0.0  ;;  %3133 = vmatpush.bf16.msrb.mxu1 %v5261_v39  ;;  %v6589_v1 = vld [vmem:[%s9877_s1 + $0x12c] sm:$0xf] }
 0x265   : > { %v8663_v62 = vadd.f32 %v2858_v25, %v2810_v8 }
 0x267   : > { %v2713_v21 = vpop.f32.mrf.mxu0 }
 0x268   : > { %v2714_v49 = vadd.f32 %v2713_v21, %v8377_v3  ;;  %v2762_v63 = vpop.f32.mrf.mxu1 }
 0x26a   : > { %v2763_v24 = vadd.f32 %v2762_v63, %v2714_v49  ;;  %v2811_v50 = vpop.f32.mrf.mxu2  ;;  %v6008_v63 = vld [vmem:[%s9877_s1 + $0x628] sm:$0xf] }
 0x26b   : > { %v2812_v56 = vadd.f32 %v2811_v50, %v8526_v60  ;;  %v2860_v35 = vpop.f32.mrf.mxu3  ;;  %v6009_v39 = vor.u32 %v6751_v55, %v6008_v63 }
 0x26c   : > { %v3500_v29 = vmax.f32 %v2763_v24, 0.0 }
 0x26d   : > { %v8675_v59 = vadd.f32 %v2860_v35, %v2812_v56  ;;  %3085 = vmatpush.bf16.msrb.mxu0 %v6009_v39 }
 0x26e   : > { %v8671_v3 = vpack.c.bf16 %v3500_v29, %v3496_v7  ;;  %v5498_v7 = vld [vmem:[%s9877_s1 + $0x238] sm:$0xf0] }
 0x26f   : > { %v2716_v8 = vpop.f32.mrf.mxu0  ;;  %3009 = vmatmul.bf16.gmra.mxu2 %v7757_v34  ;;  %v5501_v35 = vor.u32 %v6621_v13, %v5498_v7 }
 0x270   : > { %10042 = vst [vmem:[#allocation30_spill] sm:$0xff] %v8671_v3  ;;  %v2717_v25 = vadd.f32 %v2716_v8, %v8403_v41  ;;  %v2765_v21 = vpop.f32.mrf.mxu1  ;;  %3058 = vmatmul.bf16.gmra.mxu3 %v10028_v19  ;;  %v5370_v41 = vld [vmem:[%s9877_s1 + $0x138] sm:$0xf0] }
 0x271   : > { %v5373_v49 = vor.u32 %v6589_v1, %v5370_v41  ;;  %3232 = vmatpush.bf16.msrb.mxu3 %v5501_v35  ;;  %v6557_v1 = vld [vmem:[%s9877_s1 + $0x2c] sm:$0xf]  ;;  %v5242_v41 = vld [vmem:[%s9877_s1 + $0x38] sm:$0xf0] }
 0x272   : > { %v2766_v0 = vadd.f32 %v2765_v21, %v2717_v25  ;;  %2911 = vmatmul.bf16.gmra.mxu0 %v7400_v42  ;;  %v2814_v24 = vpop.f32.mrf.mxu2  ;;  %v5245_v55 = vor.u32 %v6557_v1, %v5242_v41  ;;  %v6747_v1 = vld [vmem:[%s9877_s1 + $0x614] sm:$0xf0]  ;;  %v6617_v41 = vld [vmem:[%s9877_s1 + $0x20c] sm:$0xf] }
 0x273   : > { %2960 = vmatmul.bf16.gmra.mxu1 %v7402_v43  ;;  %v2815_v29 = vadd.f32 %v2814_v24, %v8526_v60  ;;  %v2863_v50 = vpop.f32.mrf.mxu3  ;;  %3183 = vmatpush.bf16.msrb.mxu2 %v5373_v49 }
 0x274   : > { %v3504_v24 = vmax.f32 %v2766_v0, 0.0  ;;  %3134 = vmatpush.bf16.msrb.mxu1 %v5245_v55  ;;  %v6585_v0 = vld [vmem:[%s9877_s1 + $0x10c] sm:$0xf] }
 0x275   : > { %v8701_v21 = vadd.f32 %v2863_v50, %v2815_v29 }
 0x277   : > { %v2718_v56 = vpop.f32.mrf.mxu0 }
 0x278   : > { %v2719_v8 = vadd.f32 %v2718_v56, %v8413_v37  ;;  %v2767_v25 = vpop.f32.mrf.mxu1 }
 0x27a   : > { %v2768_v63 = vadd.f32 %v2767_v25, %v2719_v8  ;;  %v2816_v13 = vpop.f32.mrf.mxu2  ;;  %v5992_v25 = vld [vmem:[%s9877_s1 + $0x608] sm:$0xf] }
 0x27b   : > { %v2817_v39 = vadd.f32 %v2816_v13, %v8526_v60  ;;  %v2865_v7 = vpop.f32.mrf.mxu3  ;;  %v5993_v55 = vor.u32 %v6747_v1, %v5992_v25 }
 0x27c   : > { %v3508_v49 = vmax.f32 %v2768_v63, 0.0 }
 0x27d   : > { %v8713_v35 = vadd.f32 %v2865_v7, %v2817_v39  ;;  %3086 = vmatpush.bf16.msrb.mxu0 %v5993_v55 }
 0x27e   : > { %v8709_v37 = vpack.c.bf16 %v3508_v49, %v3504_v24  ;;  %v5482_v24 = vld [vmem:[%s9877_s1 + $0x218] sm:$0xf0] }
 0x27f   : > { %v2721_v29 = vpop.f32.mrf.mxu0  ;;  %3014 = vmatmul.bf16.gmra.mxu2 %v7803_v32  ;;  %v5485_v7 = vor.u32 %v6617_v41, %v5482_v24 }
 0x280   : > { %10043 = vst [vmem:[#allocation32_spill] sm:$0xff] %v8709_v37  ;;  %v2722_v50 = vadd.f32 %v2721_v29, %v8439_v9  ;;  %v2770_v56 = vpop.f32.mrf.mxu1  ;;  %3063 = vmatmul.bf16.gmra.mxu3 %v10031_v30  ;;  %v5354_v9 = vld [vmem:[%s9877_s1 + $0x118] sm:$0xf0] }
 0x281   : > { %v5357_v8 = vor.u32 %v6585_v0, %v5354_v9  ;;  %3233 = vmatpush.bf16.msrb.mxu3 %v5485_v7  ;;  %v6553_v0 = vld [vmem:[%s9877_s1 + $0xc] sm:$0xf]  ;;  %v5226_v9 = vld [vmem:[%s9877_s1 + $0x18] sm:$0xf0] }
 0x282   : > { %v2771_v3 = vadd.f32 %v2770_v56, %v2722_v50  ;;  %2916 = vmatmul.bf16.gmra.mxu0 %v7444_v10  ;;  %v2819_v63 = vpop.f32.mrf.mxu2  ;;  %v5229_v1 = vor.u32 %v6553_v0, %v5226_v9  ;;  %v6677_v9 = vld [vmem:[%s9877_s1 + $0x3ec] sm:$0xf] }
 0x283   : > { %2965 = vmatmul.bf16.gmra.mxu1 %v7446_v11  ;;  %v2820_v49 = vadd.f32 %v2819_v63, %v8526_v60  ;;  %v2868_v13 = vpop.f32.mrf.mxu3  ;;  %3184 = vmatpush.bf16.msrb.mxu2 %v5357_v8 }
 0x284   : > { %v3512_v63 = vmax.f32 %v2771_v3, 0.0  ;;  %3135 = vmatpush.bf16.msrb.mxu1 %v5229_v1  ;;  %v10046_v3 = vld [vmem:[#allocation34_spill] sm:$0xff]  ;;  %v6773_v1 = vld [vmem:[%s9877_s1 + $0x6ec] sm:$0xf] }
 0x285   : > { %v8739_v56 = vadd.f32 %v2868_v13, %v2820_v49 }
 0x287   : > { %v2723_v39 = vpop.f32.mrf.mxu0 }
 0x288   : > { %v2724_v29 = vadd.f32 %v2723_v39, %v8449_v20  ;;  %v2772_v50 = vpop.f32.mrf.mxu1 }
 0x28a   : > { %v2773_v25 = vadd.f32 %v2772_v50, %v2724_v29  ;;  %v2821_v41 = vpop.f32.mrf.mxu2  ;;  %v10045_v29 = vld [vmem:[#allocation16_spill] sm:$0xff]  ;;  %v6741_v50 = vld [vmem:[%s9877_s1 + $0x5ec] sm:$0xf] }
 0x28b   : > { %v2822_v55 = vadd.f32 %v2821_v41, %v8526_v60  ;;  %v2870_v24 = vpop.f32.mrf.mxu3  ;;  %v6106_v41 = vld [vmem:[%s9877_s1 + $0x6f8] sm:$0xf0] }
 0x28c   : > { %v3516_v8 = vmax.f32 %v2773_v25, 0.0  ;;  %v5722_v25 = vld [vmem:[%s9877_s1 + $0x3f8] sm:$0xf0] }
 0x28d   : > { %v8751_v7 = vadd.f32 %v2870_v24, %v2822_v55 }
 0x28e   : > { %v8747_v20 = vpack.c.bf16 %v3516_v8, %v3512_v63  ;;  %v5725_v8 = vor.u32 %v6677_v9, %v5722_v25  ;;  %v6709_v9 = vld [vmem:[%s9877_s1 + $0x4ec] sm:$0xf]  ;;  %v5850_v25 = vld [vmem:[%s9877_s1 + $0x4f8] sm:$0xf0] }
 0x28f   : > { %v2726_v49 = vpop.f32.mrf.mxu0  ;;  %3019 = vmatmul.bf16.gmra.mxu2 %v10046_v3 }
 0x290   : > { %10044 = vst [vmem:[#allocation36_spill] sm:$0xff] %v8747_v20  ;;  %v2727_v13 = vadd.f32 %v2726_v49, %v8475_v45  ;;  %v2775_v39 = vpop.f32.mrf.mxu1  ;;  %3068 = vmatmul.bf16.gmra.mxu3 %v10034_v44  ;;  %v5978_v45 = vld [vmem:[%s9877_s1 + $0x5f8] sm:$0xf0]  ;;  %3275 = vmatpush.bf16.msra.mxu0 %v5725_v8  ;;  %v5853_v20 = vor.u32 %v6709_v9, %v5850_v25  ;;  %v6769_v25 = vld [vmem:[%s9877_s1 + $0x6cc] sm:$0xf] }
 0x291   : > { %v5981_v0 = vor.u32 %v6741_v50, %v5978_v45  ;;  %v5706_v9 = vld [vmem:[%s9877_s1 + $0x3d8] sm:$0xf0] }
 0x292   : > { %v2776_v37 = vadd.f32 %v2775_v39, %v2727_v13  ;;  %2921 = vmatmul.bf16.gmra.mxu0 %v7488_v46  ;;  %v2824_v63 = vpop.f32.mrf.mxu2  ;;  %v6109_v13 = vor.u32 %v6773_v1, %v6106_v41  ;;  %3324 = vmatpush.bf16.msra.mxu1 %v5853_v20 }
 0x293   : > { %2970 = vmatmul.bf16.gmra.mxu1 %v10045_v29  ;;  %v2825_v55 = vadd.f32 %v2824_v63, %v8526_v60  ;;  %v2873_v24 = vpop.f32.mrf.mxu3  ;;  %3373 = vmatpush.bf16.msra.mxu2 %v5981_v0  ;;  %v10048_v29 = vld [vmem:[#allocation19_spill] sm:$0xff] }
 0x294   : > { %3422 = vmatpush.bf16.msra.mxu3 %v6109_v13  ;;  %v3520_v44 = vmax.f32 %v2776_v37, 0.0  ;;  %v10050_v37 = vld [vmem:[#allocation37_spill] sm:$0xff] }
 0x295   : > { %v8777_v45 = vadd.f32 %v2873_v24, %v2825_v55 }
 0x297   : > { %v2728_v49 = vpop.f32.mrf.mxu0 }
 0x298   : > { %v2729_v39 = vadd.f32 %v2728_v49, %v8485_v4  ;;  %v2777_v50 = vpop.f32.mrf.mxu1 }
 0x29a   : > { %v2778_v63 = vadd.f32 %v2777_v50, %v2729_v39  ;;  %v2826_v1 = vpop.f32.mrf.mxu2  ;;  %v10049_v39 = vld [vmem:[#allocation20_spill] sm:$0xff]  ;;  %v6673_v50 = vld [vmem:[%s9877_s1 + $0x3cc] sm:$0xf] }
 0x29b   : > { %v2827_v8 = vadd.f32 %v2826_v1, %v8526_v60  ;;  %v2875_v41 = vpop.f32.mrf.mxu3  ;;  %v6090_v1 = vld [vmem:[%s9877_s1 + $0x6d8] sm:$0xf0] }
 0x29c   : > { %v3524_v0 = vmax.f32 %v2778_v63, 0.0 }
 0x29d   : > { %v8789_v13 = vadd.f32 %v2875_v41, %v2827_v8 }
 0x29e   : > { %v8785_v4 = vpack.c.bf16 %v3524_v0, %v3520_v44  ;;  %v6737_v44 = vld [vmem:[%s9877_s1 + $0x5cc] sm:$0xf]  ;;  %v5709_v0 = vor.u32 %v6673_v50, %v5706_v9  ;;  %v5834_v9 = vld [vmem:[%s9877_s1 + $0x4d8] sm:$0xf0] }
 0x29f   : > { %v2731_v55 = vpop.f32.mrf.mxu0  ;;  %3024 = vmatmul.bf16.gmra.mxu2 %v10050_v37  ;;  %v6705_v50 = vld [vmem:[%s9877_s1 + $0x4cc] sm:$0xf] }
 0x2a0   : > { %10047 = vst [vmem:[#allocation17_spill] sm:$0xff] %v8785_v4  ;;  %v2732_v24 = vadd.f32 %v2731_v55, %v8511_v28  ;;  %v2780_v49 = vpop.f32.mrf.mxu1  ;;  %3073 = vmatmul.bf16.gmra.mxu3 %v7897_v2  ;;  %v5962_v28 = vld [vmem:[%s9877_s1 + $0x5d8] sm:$0xf0]  ;;  %3276 = vmatpush.bf16.msra.mxu0 %v5709_v0  ;;  %v5837_v4 = vor.u32 %v6705_v50, %v5834_v9 }
 0x2a1   : > { %v5965_v20 = vor.u32 %v6737_v44, %v5962_v28  ;;  %v6074_v50 = vld [vmem:[%s9877_s1 + $0x6b8] sm:$0xf0] }
 0x2a2   : > { %v2781_v3 = vadd.f32 %v2780_v49, %v2732_v24  ;;  %2926 = vmatmul.bf16.gmra.mxu0 %v10048_v29  ;;  %v2829_v63 = vpop.f32.mrf.mxu2  ;;  %v6093_v24 = vor.u32 %v6769_v25, %v6090_v1  ;;  %3325 = vmatpush.bf16.msra.mxu1 %v5837_v4 }
 0x2a3   : > { %2975 = vmatmul.bf16.gmra.mxu1 %v10049_v39  ;;  %v2830_v8 = vadd.f32 %v2829_v63, %v8526_v60  ;;  %v2878_v41 = vpop.f32.mrf.mxu3  ;;  %3374 = vmatpush.bf16.msra.mxu2 %v5965_v20 }
 0x2a4   : > { %3423 = vmatpush.bf16.msra.mxu3 %v6093_v24  ;;  %v3528_v2 = vmax.f32 %v2781_v3, 0.0  ;;  %v10052_v3 = vld [vmem:[#allocation3_spill] sm:$0xff] }
 0x2a5   : > { %v8815_v28 = vadd.f32 %v2878_v41, %v2830_v8 }
 0x2a7   : > { %v2733_v55 = vpop.f32.mrf.mxu0 }
 0x2a8   : > { %v2734_v49 = vadd.f32 %v2733_v55, %v8520_v22  ;;  %v2782_v44 = vpop.f32.mrf.mxu1 }
 0x2aa   : > { %v2783_v63 = vadd.f32 %v2782_v44, %v2734_v49  ;;  %v2831_v25 = vpop.f32.mrf.mxu2  ;;  %v10051_v49 = vld [vmem:[#allocation2_spill] sm:$0xff]  ;;  %v5690_v44 = vld [vmem:[%s9877_s1 + $0x3b8] sm:$0xf0] }
 0x2ab   : > { %v2832_v0 = vadd.f32 %v2831_v25, %v8526_v60  ;;  %v2880_v1 = vpop.f32.mrf.mxu3  ;;  %v5946_v60 = vld [vmem:[%s9877_s1 + $0x5b8] sm:$0xf0] }
 0x2ac   : > { %v3532_v20 = vmax.f32 %v2783_v63, 0.0 }
 0x2ad   : > { %v8827_v24 = vadd.f32 %v2880_v1, %v2832_v0 }
 0x2ae   : > { %v8823_v22 = vpack.c.bf16 %v3532_v20, %v3528_v2  ;;  %v6733_v2 = vld [vmem:[%s9877_s1 + $0x5ac] sm:$0xf] }
 0x2af   : > { %v2892_v8 = vpop.f32.mrf.mxu0  ;;  %3185 = vmatmul.bf16.vlgmr.msrb.gmra.mxu2 %v10052_v3  ;;  %v5949_v4 = vor.u32 %v6733_v2, %v5946_v60  ;;  %v5818_v3 = vld [vmem:[%s9877_s1 + $0x4b8] sm:$0xf0] }
 0x2b0   : > { %v2893_v41 = vadd.f32 %v2892_v8, %v8549_v5  ;;  %v2941_v55 = vpop.f32.mrf.mxu1  ;;  %3234 = vmatmul.bf16.vlgmr.msrb.gmra.mxu3 %v7207_v53  ;;  %v6669_v5 = vld [vmem:[%s9877_s1 + $0x3ac] sm:$0xf] }
 0x2b1   : > { %v6765_v53 = vld [vmem:[%s9877_s1 + $0x6ac] sm:$0xf]  ;;  %v5693_v63 = vor.u32 %v6669_v5, %v5690_v44  ;;  %3375 = vmatpush.bf16.msra.mxu2 %v5949_v4 }
 0x2b2   : > { %v2942_v37 = vadd.f32 %v2941_v55, %v2893_v41  ;;  %3087 = vmatmul.bf16.vlgmr.msrb.gmra.mxu0 %v10016_v48  ;;  %v2990_v9 = vpop.f32.mrf.mxu2  ;;  %v6077_v20 = vor.u32 %v6765_v53, %v6074_v50 }
 0x2b3   : > { %3136 = vmatmul.bf16.vlgmr.msrb.gmra.mxu1 %v10051_v49  ;;  %v3039_v0 = vpop.f32.mrf.mxu3  ;;  %3277 = vmatpush.bf16.msra.mxu0 %v5693_v63  ;;  %v6701_v49 = vld [vmem:[%s9877_s1 + $0x4ac] sm:$0xf]  ;;  %v10053_v63 = vld [vmem:[#allocation25_spill] sm:$0xff] }
 0x2b4   : > { %v2991_v25 = vadd.f32 %v2990_v9, %v2942_v37  ;;  %3424 = vmatpush.bf16.msra.mxu3 %v6077_v20  ;;  %v5821_v37 = vor.u32 %v6701_v49, %v5818_v3  ;;  %v10054_v20 = vld [vmem:[#allocation4_spill] sm:$0xff]  ;;  %v6058_v49 = vld [vmem:[%s9877_s1 + $0x698] sm:$0xf0] }
 0x2b6   : > { %v8852_v55 = vadd.f32 %v3039_v0, %v2991_v25  ;;  %3326 = vmatpush.bf16.msra.mxu1 %v5821_v37  ;;  %v10055_v25 = vld [vmem:[#allocation5_spill] sm:$0xff]  ;;  %v6729_v0 = vld [vmem:[%s9877_s1 + $0x58c] sm:$0xf] }
 0x2b7   : > { %v2894_v1 = vpop.f32.mrf.mxu0 }
 0x2b8   : > { %v2895_v8 = vadd.f32 %v2894_v1, %v8561_v38  ;;  %v2943_v41 = vpop.f32.mrf.mxu1  ;;  %v6665_v1 = vld [vmem:[%s9877_s1 + $0x38c] sm:$0xf] }
 0x2ba   : > { %v2944_v2 = vadd.f32 %v2943_v41, %v2895_v8  ;;  %v2992_v60 = vpop.f32.mrf.mxu2  ;;  %v5674_v41 = vld [vmem:[%s9877_s1 + $0x398] sm:$0xf0] }
 0x2bb   : > { %v3041_v4 = vpop.f32.mrf.mxu3 }
 0x2bc   : > { %v2993_v5 = vadd.f32 %v2992_v60, %v2944_v2  ;;  %v5677_v2 = vor.u32 %v6665_v1, %v5674_v41 }
 0x2be   : > { %v8861_v50 = vadd.f32 %v3041_v4, %v2993_v5  ;;  %3278 = vmatpush.bf16.msra.mxu0 %v5677_v2  ;;  %v10056_v2 = vld [vmem:[#allocation27_spill] sm:$0xff] }
 0x2bf   : > { %v2897_v38 = vpop.f32.mrf.mxu0  ;;  %3190 = vmatmul.bf16.gmra.mxu2 %v10055_v25  ;;  %v5802_v25 = vld [vmem:[%s9877_s1 + $0x498] sm:$0xf0] }
 0x2c0   : > { %v2898_v44 = vadd.f32 %v2897_v38, %v8587_v16  ;;  %v2946_v53 = vpop.f32.mrf.mxu1  ;;  %3239 = vmatmul.bf16.gmra.mxu3 %v7268_v26  ;;  %v5930_v16 = vld [vmem:[%s9877_s1 + $0x598] sm:$0xf0]  ;;  %v6761_v26 = vld [vmem:[%s9877_s1 + $0x68c] sm:$0xf] }
 0x2c1   : > { %v5933_v8 = vor.u32 %v6729_v0, %v5930_v16  ;;  %v6061_v37 = vor.u32 %v6761_v26, %v6058_v49 }
 0x2c2   : > { %v2947_v9 = vadd.f32 %v2946_v53, %v2898_v44  ;;  %3092 = vmatmul.bf16.gmra.mxu0 %v10053_v63  ;;  %v2995_v3 = vpop.f32.mrf.mxu2 }
 0x2c3   : > { %3141 = vmatmul.bf16.gmra.mxu1 %v10054_v20  ;;  %v3044_v5 = vpop.f32.mrf.mxu3  ;;  %3376 = vmatpush.bf16.msra.mxu2 %v5933_v8  ;;  %v6697_v20 = vld [vmem:[%s9877_s1 + $0x48c] sm:$0xf] }
 0x2c4   : > { %v2996_v60 = vadd.f32 %v2995_v3, %v2947_v9  ;;  %3425 = vmatpush.bf16.msra.mxu3 %v6061_v37  ;;  %v5805_v9 = vor.u32 %v6697_v20, %v5802_v25  ;;  %v10057_v37 = vld [vmem:[#allocation6_spill] sm:$0xff]  ;;  %v6042_v20 = vld [vmem:[%s9877_s1 + $0x678] sm:$0xf0] }
 0x2c6   : > { %v8886_v53 = vadd.f32 %v3044_v5, %v2996_v60  ;;  %3327 = vmatpush.bf16.msra.mxu1 %v5805_v9  ;;  %v10058_v60 = vld [vmem:[#allocation7_spill] sm:$0xff] }
 0x2c7   : > { %v2899_v4 = vpop.f32.mrf.mxu0  ;;  %v6725_v5 = vld [vmem:[%s9877_s1 + $0x56c] sm:$0xf] }
 0x2c8   : > { %v2900_v38 = vadd.f32 %v2899_v4, %v8599_v40  ;;  %v2948_v44 = vpop.f32.mrf.mxu1  ;;  %v6661_v4 = vld [vmem:[%s9877_s1 + $0x36c] sm:$0xf] }
 0x2ca   : > { %v2949_v0 = vadd.f32 %v2948_v44, %v2900_v38  ;;  %v2997_v16 = vpop.f32.mrf.mxu2  ;;  %v5658_v44 = vld [vmem:[%s9877_s1 + $0x378] sm:$0xf0] }
 0x2cb   : > { %v3046_v8 = vpop.f32.mrf.mxu3 }
 0x2cc   : > { %v2998_v1 = vadd.f32 %v2997_v16, %v2949_v0  ;;  %v5661_v0 = vor.u32 %v6661_v4, %v5658_v44 }
 0x2ce   : > { %v8895_v49 = vadd.f32 %v3046_v8, %v2998_v1  ;;  %3279 = vmatpush.bf16.msra.mxu0 %v5661_v0  ;;  %v10059_v0 = vld [vmem:[#allocation29_spill] sm:$0xff] }
 0x2cf   : > { %v2902_v40 = vpop.f32.mrf.mxu0  ;;  %3195 = vmatmul.bf16.gmra.mxu2 %v10058_v60  ;;  %v5786_v60 = vld [vmem:[%s9877_s1 + $0x478] sm:$0xf0] }
 0x2d0   : > { %v2903_v41 = vadd.f32 %v2902_v40, %v8625_v58  ;;  %v2951_v26 = vpop.f32.mrf.mxu1  ;;  %3244 = vmatmul.bf16.gmra.mxu3 %v7312_v51  ;;  %v5914_v58 = vld [vmem:[%s9877_s1 + $0x578] sm:$0xf0]  ;;  %v6757_v51 = vld [vmem:[%s9877_s1 + $0x66c] sm:$0xf] }
 0x2d1   : > { %v5917_v38 = vor.u32 %v6725_v5, %v5914_v58  ;;  %v6045_v9 = vor.u32 %v6757_v51, %v6042_v20 }
 0x2d2   : > { %v2952_v3 = vadd.f32 %v2951_v26, %v2903_v41  ;;  %3097 = vmatmul.bf16.gmra.mxu0 %v10056_v2  ;;  %v3000_v25 = vpop.f32.mrf.mxu2 }
 0x2d3   : > { %3146 = vmatmul.bf16.gmra.mxu1 %v10057_v37  ;;  %v3049_v1 = vpop.f32.mrf.mxu3  ;;  %3377 = vmatpush.bf16.msra.mxu2 %v5917_v38  ;;  %v6693_v37 = vld [vmem:[%s9877_s1 + $0x46c] sm:$0xf] }
 0x2d4   : > { %v3001_v16 = vadd.f32 %v3000_v25, %v2952_v3  ;;  %3426 = vmatpush.bf16.msra.mxu3 %v6045_v9  ;;  %v5789_v3 = vor.u32 %v6693_v37, %v5786_v60  ;;  %v10060_v9 = vld [vmem:[#allocation8_spill] sm:$0xff]  ;;  %v6026_v37 = vld [vmem:[%s9877_s1 + $0x658] sm:$0xf0] }
 0x2d6   : > { %v8920_v26 = vadd.f32 %v3049_v1, %v3001_v16  ;;  %3328 = vmatpush.bf16.msra.mxu1 %v5789_v3  ;;  %v10061_v16 = vld [vmem:[#allocation9_spill] sm:$0xff]  ;;  %v6721_v1 = vld [vmem:[%s9877_s1 + $0x54c] sm:$0xf] }
 0x2d7   : > { %v2904_v8 = vpop.f32.mrf.mxu0 }
 0x2d8   : > { %v2905_v40 = vadd.f32 %v2904_v8, %v8637_v31  ;;  %v2953_v41 = vpop.f32.mrf.mxu1  ;;  %v6657_v8 = vld [vmem:[%s9877_s1 + $0x34c] sm:$0xf] }
 0x2da   : > { %v2954_v5 = vadd.f32 %v2953_v41, %v2905_v40  ;;  %v3002_v58 = vpop.f32.mrf.mxu2  ;;  %v5642_v41 = vld [vmem:[%s9877_s1 + $0x358] sm:$0xf0] }
 0x2db   : > { %v3051_v38 = vpop.f32.mrf.mxu3 }
 0x2dc   : > { %v3003_v4 = vadd.f32 %v3002_v58, %v2954_v5  ;;  %v5645_v5 = vor.u32 %v6657_v8, %v5642_v41 }
 0x2de   : > { %v8929_v20 = vadd.f32 %v3051_v38, %v3003_v4  ;;  %3280 = vmatpush.bf16.msra.mxu0 %v5645_v5  ;;  %v10062_v5 = vld [vmem:[#allocation31_spill] sm:$0xff] }
 0x2df   : > { %v2907_v31 = vpop.f32.mrf.mxu0  ;;  %3200 = vmatmul.bf16.gmra.mxu2 %v10061_v16  ;;  %v5770_v16 = vld [vmem:[%s9877_s1 + $0x458] sm:$0xf0] }
 0x2e0   : > { %v2908_v44 = vadd.f32 %v2907_v31, %v8663_v62  ;;  %v2956_v51 = vpop.f32.mrf.mxu1  ;;  %3249 = vmatmul.bf16.gmra.mxu3 %v7356_v14  ;;  %v5898_v62 = vld [vmem:[%s9877_s1 + $0x558] sm:$0xf0]  ;;  %v6753_v14 = vld [vmem:[%s9877_s1 + $0x64c] sm:$0xf] }
 0x2e1   : > { %v5901_v40 = vor.u32 %v6721_v1, %v5898_v62  ;;  %v6029_v3 = vor.u32 %v6753_v14, %v6026_v37 }
 0x2e2   : > { %v2957_v25 = vadd.f32 %v2956_v51, %v2908_v44  ;;  %3102 = vmatmul.bf16.gmra.mxu0 %v10059_v0  ;;  %v3005_v60 = vpop.f32.mrf.mxu2 }
 0x2e3   : > { %3151 = vmatmul.bf16.gmra.mxu1 %v10060_v9  ;;  %v3054_v4 = vpop.f32.mrf.mxu3  ;;  %3378 = vmatpush.bf16.msra.mxu2 %v5901_v40  ;;  %v6689_v9 = vld [vmem:[%s9877_s1 + $0x44c] sm:$0xf] }
 0x2e4   : > { %v3006_v58 = vadd.f32 %v3005_v60, %v2957_v25  ;;  %3427 = vmatpush.bf16.msra.mxu3 %v6029_v3  ;;  %v5773_v25 = vor.u32 %v6689_v9, %v5770_v16  ;;  %v10063_v3 = vld [vmem:[#allocation10_spill] sm:$0xff]  ;;  %v6010_v9 = vld [vmem:[%s9877_s1 + $0x638] sm:$0xf0] }
 0x2e6   : > { %v8954_v51 = vadd.f32 %v3054_v4, %v3006_v58  ;;  %3329 = vmatpush.bf16.msra.mxu1 %v5773_v25  ;;  %v10064_v58 = vld [vmem:[#allocation11_spill] sm:$0xff] }
 0x2e7   : > { %v2909_v38 = vpop.f32.mrf.mxu0  ;;  %v6717_v4 = vld [vmem:[%s9877_s1 + $0x52c] sm:$0xf] }
 0x2e8   : > { %v2910_v31 = vadd.f32 %v2909_v38, %v8675_v59  ;;  %v2958_v44 = vpop.f32.mrf.mxu1  ;;  %v6653_v38 = vld [vmem:[%s9877_s1 + $0x32c] sm:$0xf] }
 0x2ea   : > { %v2959_v1 = vadd.f32 %v2958_v44, %v2910_v31  ;;  %v3007_v62 = vpop.f32.mrf.mxu2  ;;  %v5626_v44 = vld [vmem:[%s9877_s1 + $0x338] sm:$0xf0] }
 0x2eb   : > { %v3056_v40 = vpop.f32.mrf.mxu3 }
 0x2ec   : > { %v3008_v8 = vadd.f32 %v3007_v62, %v2959_v1  ;;  %v5629_v1 = vor.u32 %v6653_v38, %v5626_v44 }
 0x2ee   : > { %v8963_v37 = vadd.f32 %v3056_v40, %v3008_v8  ;;  %3281 = vmatpush.bf16.msra.mxu0 %v5629_v1  ;;  %v10065_v1 = vld [vmem:[#allocation33_spill] sm:$0xff] }
 0x2ef   : > { %v2912_v59 = vpop.f32.mrf.mxu0  ;;  %3205 = vmatmul.bf16.gmra.mxu2 %v10064_v58  ;;  %v5754_v58 = vld [vmem:[%s9877_s1 + $0x438] sm:$0xf0] }
 0x2f0   : > { %v2913_v41 = vadd.f32 %v2912_v59, %v8701_v21  ;;  %v2961_v14 = vpop.f32.mrf.mxu1  ;;  %3254 = vmatmul.bf16.gmra.mxu3 %v7400_v42  ;;  %v5882_v21 = vld [vmem:[%s9877_s1 + $0x538] sm:$0xf0]  ;;  %v6749_v42 = vld [vmem:[%s9877_s1 + $0x62c] sm:$0xf] }
 0x2f1   : > { %v5885_v31 = vor.u32 %v6717_v4, %v5882_v21  ;;  %v6013_v25 = vor.u32 %v6749_v42, %v6010_v9 }
 0x2f2   : > { %v2962_v60 = vadd.f32 %v2961_v14, %v2913_v41  ;;  %3107 = vmatmul.bf16.gmra.mxu0 %v10062_v5  ;;  %v3010_v16 = vpop.f32.mrf.mxu2 }
 0x2f3   : > { %3156 = vmatmul.bf16.gmra.mxu1 %v10063_v3  ;;  %v3059_v8 = vpop.f32.mrf.mxu3  ;;  %3379 = vmatpush.bf16.msra.mxu2 %v5885_v31  ;;  %v6685_v3 = vld [vmem:[%s9877_s1 + $0x42c] sm:$0xf] }
 0x2f4   : > { %v3011_v62 = vadd.f32 %v3010_v16, %v2962_v60  ;;  %3428 = vmatpush.bf16.msra.mxu3 %v6013_v25  ;;  %v5757_v60 = vor.u32 %v6685_v3, %v5754_v58  ;;  %v10066_v25 = vld [vmem:[#allocation12_spill] sm:$0xff]  ;;  %v5994_v3 = vld [vmem:[%s9877_s1 + $0x618] sm:$0xf0] }
 0x2f6   : > { %v8988_v14 = vadd.f32 %v3059_v8, %v3011_v62  ;;  %3330 = vmatpush.bf16.msra.mxu1 %v5757_v60  ;;  %v10067_v62 = vld [vmem:[#allocation13_spill] sm:$0xff]  ;;  %v6713_v8 = vld [vmem:[%s9877_s1 + $0x50c] sm:$0xf] }
 0x2f7   : > { %v2914_v40 = vpop.f32.mrf.mxu0 }
 0x2f8   : > { %v2915_v59 = vadd.f32 %v2914_v40, %v8713_v35  ;;  %v2963_v41 = vpop.f32.mrf.mxu1  ;;  %v6649_v40 = vld [vmem:[%s9877_s1 + $0x30c] sm:$0xf] }
 0x2fa   : > { %v2964_v4 = vadd.f32 %v2963_v41, %v2915_v59  ;;  %v3012_v21 = vpop.f32.mrf.mxu2  ;;  %v5610_v41 = vld [vmem:[%s9877_s1 + $0x318] sm:$0xf0] }
 0x2fb   : > { %v3061_v31 = vpop.f32.mrf.mxu3 }
 0x2fc   : > { %v3013_v38 = vadd.f32 %v3012_v21, %v2964_v4  ;;  %v5613_v4 = vor.u32 %v6649_v40, %v5610_v41 }
 0x2fe   : > { %v8997_v9 = vadd.f32 %v3061_v31, %v3013_v38  ;;  %3282 = vmatpush.bf16.msra.mxu0 %v5613_v4  ;;  %v10068_v4 = vld [vmem:[#allocation14_spill] sm:$0xff] }
 0x2ff   : > { %v2917_v35 = vpop.f32.mrf.mxu0  ;;  %3210 = vmatmul.bf16.gmra.mxu2 %v10067_v62  ;;  %v5738_v62 = vld [vmem:[%s9877_s1 + $0x418] sm:$0xf0] }
 0x300   : > { %v2918_v44 = vadd.f32 %v2917_v35, %v8739_v56  ;;  %v2966_v42 = vpop.f32.mrf.mxu1  ;;  %3259 = vmatmul.bf16.gmra.mxu3 %v7444_v10  ;;  %v5866_v56 = vld [vmem:[%s9877_s1 + $0x518] sm:$0xf0]  ;;  %v6745_v10 = vld [vmem:[%s9877_s1 + $0x60c] sm:$0xf] }
 0x301   : > { %v5869_v59 = vor.u32 %v6713_v8, %v5866_v56  ;;  %v5997_v60 = vor.u32 %v6745_v10, %v5994_v3 }
 0x302   : > { %v2967_v16 = vadd.f32 %v2966_v42, %v2918_v44  ;;  %3112 = vmatmul.bf16.gmra.mxu0 %v10065_v1  ;;  %v3015_v58 = vpop.f32.mrf.mxu2 }
 0x303   : > { %3161 = vmatmul.bf16.gmra.mxu1 %v10066_v25  ;;  %v3064_v38 = vpop.f32.mrf.mxu3  ;;  %3380 = vmatpush.bf16.msra.mxu2 %v5869_v59  ;;  %v6681_v25 = vld [vmem:[%s9877_s1 + $0x40c] sm:$0xf] }
 0x304   : > { %v3016_v21 = vadd.f32 %v3015_v58, %v2967_v16  ;;  %3429 = vmatpush.bf16.msra.mxu3 %v5997_v60  ;;  %v5741_v16 = vor.u32 %v6681_v25, %v5738_v62  ;;  %v10069_v60 = vld [vmem:[#allocation15_spill] sm:$0xff] }
 0x306   : > { %v9022_v42 = vadd.f32 %v3064_v38, %v3016_v21  ;;  %3331 = vmatpush.bf16.msra.mxu1 %v5741_v16 }
 0x307   : > { %v2919_v31 = vpop.f32.mrf.mxu0 }
 0x308   : > { %v2920_v35 = vadd.f32 %v2919_v31, %v8751_v7  ;;  %v2968_v44 = vpop.f32.mrf.mxu1 }
 0x30a   : > { %v2969_v8 = vadd.f32 %v2968_v44, %v2920_v35  ;;  %v3017_v56 = vpop.f32.mrf.mxu2 }
 0x30b   : > { %v3066_v59 = vpop.f32.mrf.mxu3 }
 0x30c   : > { %v3018_v40 = vadd.f32 %v3017_v56, %v2969_v8 }
 0x30e   : > { %v9031_v3 = vadd.f32 %v3066_v59, %v3018_v40 }
 0x30f   : > { %v2922_v7 = vpop.f32.mrf.mxu0  ;;  %3215 = vmatmul.bf16.gmra.mxu2 %v10069_v60 }
 0x310   : > { %v2923_v41 = vadd.f32 %v2922_v7, %v8777_v45  ;;  %v2971_v10 = vpop.f32.mrf.mxu1  ;;  %3264 = vmatmul.bf16.gmra.mxu3 %v7488_v46 }
 0x312   : > { %v2972_v58 = vadd.f32 %v2971_v10, %v2923_v41  ;;  %3117 = vmatmul.bf16.gmra.mxu0 %v10035_v52  ;;  %v3020_v21 = vpop.f32.mrf.mxu2  ;;  %v10070_v10 = vld [vmem:[#allocation18_spill] sm:$0xff] }
 0x313   : > { %3166 = vmatmul.bf16.gmra.mxu1 %v10068_v4  ;;  %v3069_v31 = vpop.f32.mrf.mxu3 }
 0x314   : > { %v3021_v38 = vadd.f32 %v3020_v21, %v2972_v58 }
 0x316   : > { %v9038_v45 = vadd.f32 %v3069_v31, %v3021_v38 }
 0x317   : > { %v2924_v35 = vpop.f32.mrf.mxu0 }
 0x318   : > { %v2925_v44 = vadd.f32 %v2924_v35, %v8789_v13  ;;  %v2973_v25 = vpop.f32.mrf.mxu1  ;;  %v6296_v13 = vld [vmem:[%s9879_s3 + $0x170] sm:$0xf] }
 0x31a   : > { %v2974_v62 = vadd.f32 %v2973_v25, %v2925_v44  ;;  %v3022_v8 = vpop.f32.mrf.mxu2  ;;  %v6791_v44 = vld [vmem:[%s9879_s3 + $0x74] sm:$0xf0]  ;;  %v6360_v25 = vld [vmem:[%s9879_s3 + $0x1f0] sm:$0xf] }
 0x31b   : > { %v3071_v56 = vpop.f32.mrf.mxu3 }
 0x31c   : > { %v3023_v16 = vadd.f32 %v3022_v8, %v2974_v62 }
 0x31e   : > { %v9041_v41 = vadd.f32 %v3071_v56, %v3023_v16  ;;  %v6232_v16 = vld [vmem:[%s9879_s3 + $0xf0] sm:$0xf]  ;;  %v6807_v56 = vld [vmem:[%s9879_s3 + $0xf4] sm:$0xf0] }
 0x31f   : > { %v2927_v40 = vpop.f32.mrf.mxu0  ;;  %3220 = vmatmul.bf16.gmra.mxu2 %v10070_v10 }
 0x320   : > { %v2928_v59 = vadd.f32 %v2927_v40, %v8815_v28  ;;  %v2976_v7 = vpop.f32.mrf.mxu1  ;;  %3269 = vmatmul.bf16.gmra.mxu3 %v10048_v29  ;;  %v6823_v28 = vld [vmem:[%s9879_s3 + $0x174] sm:$0xf0]  ;;  %v6168_v29 = vld [vmem:[%s9879_s3 + $0x70] sm:$0xf] }
 0x321   : > { %v6297_v58 = vor.u32 %v6823_v28, %v6296_v13  ;;  %v6169_v8 = vor.u32 %v6791_v44, %v6168_v29  ;;  %v6885_v28 = vld [vmem:[%s9878_s2] sm:$0xf] }
 0x322   : > { %v2977_v46 = vadd.f32 %v2976_v7, %v2928_v59  ;;  %3122 = vmatmul.bf16.gmra.mxu0 %v7899_v23  ;;  %v3025_v4 = vpop.f32.mrf.mxu2  ;;  %v6233_v59 = vor.u32 %v6807_v56, %v6232_v16  ;;  %v6789_v16 = vld [vmem:[%s9879_s3 + $0x64] sm:$0xf0]  ;;  %v6352_v56 = vld [vmem:[%s9879_s3 + $0x1e0] sm:$0xf] }
 0x323   : > { %3171 = vmatmul.bf16.gmra.mxu1 %v10037_v61  ;;  %v3074_v21 = vpop.f32.mrf.mxu3  ;;  %4055 = vmatpush.bf16.msrb.mxu2 %v6297_v58  ;;  %v9077_v58 = vperm.slane %v6885_v28, 3 }
 0x324   : > { %v3026_v60 = vadd.f32 %v3025_v4, %v2977_v46  ;;  %3957 = vmatpush.bf16.msrb.mxu0 %v6169_v8  ;;  %4006 = vmatpush.bf16.msrb.mxu1 %v6233_v59 }
 0x326   : > { %v9054_v35 = vadd.f32 %v3074_v21, %v3026_v60 }
 0x327   : > { %v2929_v38 = vpop.f32.mrf.mxu0 }
 0x328   : > { %v2930_v61 = vadd.f32 %v2929_v38, %v8827_v24  ;;  %v2978_v31 = vpop.f32.mrf.mxu1  ;;  %v6839_v24 = vld [vmem:[%s9879_s3 + $0x1f4] sm:$0xf0] }
 0x329   : > { %v6361_v40 = vor.u32 %v6839_v24, %v6360_v25 }
 0x32a   : > { %v2979_v62 = vadd.f32 %v2978_v31, %v2930_v61  ;;  %v3027_v7 = vpop.f32.mrf.mxu2  ;;  %v10071_v61 = vld [vmem:[#allocation22_spill] sm:$0xff] }
 0x32b   : > { %4104 = vmatpush.bf16.msrb.mxu3 %v6361_v40  ;;  %v3076_v10 = vpop.f32.mrf.mxu3  ;;  %v6288_v31 = vld [vmem:[%s9879_s3 + $0x160] sm:$0xf] }
 0x32c   : > { %v3028_v46 = vadd.f32 %v3027_v7, %v2979_v62 }
 0x32e   : > { %v9080_v21 = vadd.f32 %v3076_v10, %v3028_v46  ;;  %v6224_v46 = vld [vmem:[%s9879_s3 + $0xe0] sm:$0xf] }
 0x32f   : > { %v3088_v13 = vpop.f32.mrf.mxu0  ;;  %3381 = vmatmul.bf16.vlgmr.msra.gmra.mxu2 %v10071_v61 }
 0x330   : > { %v3089_v4 = vadd.f32 %v3088_v13, %v8852_v55  ;;  %v3137_v60 = vpop.f32.mrf.mxu1  ;;  %3430 = vmatmul.bf16.vlgmr.msra.gmra.mxu3 %v10016_v48  ;;  %v6821_v55 = vld [vmem:[%s9879_s3 + $0x164] sm:$0xf0]  ;;  %v6160_v48 = vld [vmem:[%s9879_s3 + $0x60] sm:$0xf] }
 0x331   : > { %v3138_v38 = vadd.f32 %v3137_v60, %v9077_v58  ;;  %v6289_v29 = vor.u32 %v6821_v55, %v6288_v31  ;;  %v6161_v7 = vor.u32 %v6789_v16, %v6160_v48  ;;  %v6805_v13 = vld [vmem:[%s9879_s3 + $0xe4] sm:$0xf0] }
 0x332   : > { %3283 = vmatmul.bf16.vlgmr.msra.gmra.mxu0 %v7214_v57  ;;  %v3186_v44 = vpop.f32.mrf.mxu2  ;;  %v3473_v40 = vmax.f32 %v3089_v4, 0.0  ;;  %v6225_v60 = vor.u32 %v6805_v13, %v6224_v46 }
 0x333   : > { %3332 = vmatmul.bf16.vlgmr.msra.gmra.mxu1 %v10038_v17  ;;  %v3187_v25 = vadd.f32 %v3186_v44, %v3138_v38  ;;  %v3235_v57 = vpop.f32.mrf.mxu3  ;;  %4056 = vmatpush.bf16.msrb.mxu2 %v6289_v29 }
 0x334   : > { %3958 = vmatpush.bf16.msrb.mxu0 %v6161_v7  ;;  %4007 = vmatpush.bf16.msrb.mxu1 %v6225_v60  ;;  %v6803_v60 = vld [vmem:[%s9879_s3 + $0xd4] sm:$0xf0] }
 0x335   : > { %v9094_v24 = vadd.f32 %v3235_v57, %v3187_v25 }
 0x337   : > { %v3090_v62 = vpop.f32.mrf.mxu0 }
 0x338   : > { %v3091_v17 = vadd.f32 %v3090_v62, %v8861_v50  ;;  %v3139_v8 = vpop.f32.mrf.mxu1  ;;  %v6837_v50 = vld [vmem:[%s9879_s3 + $0x1e4] sm:$0xf0]  ;;  %v6280_v62 = vld [vmem:[%s9879_s3 + $0x150] sm:$0xf] }
 0x339   : > { %v6353_v10 = vor.u32 %v6837_v50, %v6352_v56  ;;  %v3140_v4 = vadd.f32 %v3139_v8, %v9077_v58 }
 0x33a   : > { %v3477_v59 = vmax.f32 %v3091_v17, 0.0  ;;  %v3188_v38 = vpop.f32.mrf.mxu2 }
 0x33b   : > { %4105 = vmatpush.bf16.msrb.mxu3 %v6353_v10  ;;  %v3189_v61 = vadd.f32 %v3188_v38, %v3140_v4  ;;  %v3237_v31 = vpop.f32.mrf.mxu3  ;;  %v6216_v10 = vld [vmem:[%s9879_s3 + $0xd0] sm:$0xf] }
 0x33c   : > { %v9114_v28 = vpack.c.bf16 %v3477_v59, %v3473_v40  ;;  %v6787_v40 = vld [vmem:[%s9879_s3 + $0x54] sm:$0xf0]  ;;  %v6344_v59 = vld [vmem:[%s9879_s3 + $0x1d0] sm:$0xf]  ;;  %v6217_v4 = vor.u32 %v6803_v60, %v6216_v10  ;;  %v6801_v10 = vld [vmem:[%s9879_s3 + $0xc4] sm:$0xf0] }
 0x33d   : > { %v9118_v25 = vadd.f32 %v3237_v31, %v3189_v61 }
 0x33e   : > { %4008 = vmatpush.bf16.msrb.mxu1 %v6217_v4 }
 0x33f   : > { %v3093_v55 = vpop.f32.mrf.mxu0  ;;  %3386 = vmatmul.bf16.gmra.mxu2 %v10019_v12 }
 0x340   : > { %v3094_v29 = vadd.f32 %v3093_v55, %v8886_v53  ;;  %v3142_v44 = vpop.f32.mrf.mxu1  ;;  %3435 = vmatmul.bf16.gmra.mxu3 %v10053_v63  ;;  %v6819_v53 = vld [vmem:[%s9879_s3 + $0x154] sm:$0xf0]  ;;  %v6152_v63 = vld [vmem:[%s9879_s3 + $0x50] sm:$0xf] }
 0x341   : > { %v3143_v57 = vadd.f32 %v3142_v44, %v9077_v58  ;;  %v6281_v17 = vor.u32 %v6819_v53, %v6280_v62  ;;  %v6153_v46 = vor.u32 %v6787_v40, %v6152_v63  ;;  %v6785_v63 = vld [vmem:[%s9879_s3 + $0x44] sm:$0xf0]  ;;  %v6336_v40 = vld [vmem:[%s9879_s3 + $0x1c0] sm:$0xf] }
 0x342   : > { %3288 = vmatmul.bf16.gmra.mxu0 %v7270_v27  ;;  %v3191_v8 = vpop.f32.mrf.mxu2  ;;  %v3481_v7 = vmax.f32 %v3094_v29, 0.0 }
 0x343   : > { %3337 = vmatmul.bf16.gmra.mxu1 %v7619_v6  ;;  %v3192_v48 = vadd.f32 %v3191_v8, %v3143_v57  ;;  %v3240_v27 = vpop.f32.mrf.mxu3  ;;  %4057 = vmatpush.bf16.msrb.mxu2 %v6281_v17  ;;  %v6272_v8 = vld [vmem:[%s9879_s3 + $0x140] sm:$0xf] }
 0x344   : > { %3959 = vmatpush.bf16.msrb.mxu0 %v6153_v46  ;;  %v6208_v46 = vld [vmem:[%s9879_s3 + $0xc0] sm:$0xf] }
 0x345   : > { %v9132_v12 = vadd.f32 %v3240_v27, %v3192_v48 }
 0x347   : > { %v3095_v16 = vpop.f32.mrf.mxu0 }
 0x348   : > { %v3096_v6 = vadd.f32 %v3095_v16, %v8895_v49  ;;  %v3144_v56 = vpop.f32.mrf.mxu1  ;;  %v6835_v49 = vld [vmem:[%s9879_s3 + $0x1d4] sm:$0xf0] }
 0x349   : > { %v6345_v13 = vor.u32 %v6835_v49, %v6344_v59  ;;  %v3145_v61 = vadd.f32 %v3144_v56, %v9077_v58 }
 0x34a   : > { %v3485_v50 = vmax.f32 %v3096_v6, 0.0  ;;  %v3193_v31 = vpop.f32.mrf.mxu2 }
 0x34b   : > { %4106 = vmatpush.bf16.msrb.mxu3 %v6345_v13  ;;  %v3194_v55 = vadd.f32 %v3193_v31, %v3145_v61  ;;  %v3242_v29 = vpop.f32.mrf.mxu3  ;;  %v6209_v13 = vor.u32 %v6801_v10, %v6208_v46 }
 0x34c   : > { %v9152_v38 = vpack.c.bf16 %v3485_v50, %v3481_v7 }
 0x34d   : > { %v9156_v53 = vadd.f32 %v3242_v29, %v3194_v55  ;;  %4009 = vmatpush.bf16.msrb.mxu1 %v6209_v13 }
 0x34f   : > { %v3098_v44 = vpop.f32.mrf.mxu0  ;;  %3391 = vmatmul.bf16.gmra.mxu2 %v10022_v18 }
 0x350   : > { %v3099_v57 = vadd.f32 %v3098_v44, %v8920_v26  ;;  %v3147_v62 = vpop.f32.mrf.mxu1  ;;  %3440 = vmatmul.bf16.gmra.mxu3 %v10056_v2  ;;  %v6817_v26 = vld [vmem:[%s9879_s3 + $0x144] sm:$0xf0]  ;;  %v6144_v2 = vld [vmem:[%s9879_s3 + $0x40] sm:$0xf] }
 0x351   : > { %v3148_v17 = vadd.f32 %v3147_v62, %v9077_v58  ;;  %v6273_v48 = vor.u32 %v6817_v26, %v6272_v8  ;;  %v6145_v50 = vor.u32 %v6785_v63, %v6144_v2  ;;  %v6264_v8 = vld [vmem:[%s9879_s3 + $0x130] sm:$0xf] }
 0x352   : > { %3293 = vmatmul.bf16.gmra.mxu0 %v7314_v54  ;;  %v3196_v27 = vpop.f32.mrf.mxu2  ;;  %v3489_v59 = vmax.f32 %v3099_v57, 0.0 }
 0x353   : > { %3342 = vmatmul.bf16.gmra.mxu1 %v7665_v36  ;;  %v3197_v16 = vadd.f32 %v3196_v27, %v3148_v17  ;;  %v3245_v54 = vpop.f32.mrf.mxu3  ;;  %4058 = vmatpush.bf16.msrb.mxu2 %v6273_v48 }
 0x354   : > { %3960 = vmatpush.bf16.msrb.mxu0 %v6145_v50 }
 0x355   : > { %v9170_v18 = vadd.f32 %v3245_v54, %v3197_v16 }
 0x357   : > { %v3100_v6 = vpop.f32.mrf.mxu0 }
 0x358   : > { %v3101_v36 = vadd.f32 %v3100_v6, %v8929_v20  ;;  %v3149_v56 = vpop.f32.mrf.mxu1  ;;  %v6833_v20 = vld [vmem:[%s9879_s3 + $0x1c4] sm:$0xf0]  ;;  %v6783_v6 = vld [vmem:[%s9879_s3 + $0x34] sm:$0xf0] }
 0x359   : > { %v6337_v49 = vor.u32 %v6833_v20, %v6336_v40  ;;  %v3150_v4 = vadd.f32 %v3149_v56, %v9077_v58  ;;  %v6200_v40 = vld [vmem:[%s9879_s3 + $0xb0] sm:$0xf] }
 0x35a   : > { %v3493_v7 = vmax.f32 %v3101_v36, 0.0  ;;  %v3198_v61 = vpop.f32.mrf.mxu2  ;;  %v6328_v36 = vld [vmem:[%s9879_s3 + $0x1b0] sm:$0xf] }
 0x35b   : > { %4107 = vmatpush.bf16.msrb.mxu3 %v6337_v49  ;;  %v3199_v31 = vadd.f32 %v3198_v61, %v3150_v4  ;;  %v3247_v55 = vpop.f32.mrf.mxu3 }
 0x35c   : > { %v9190_v60 = vpack.c.bf16 %v3493_v7, %v3489_v59  ;;  %v6799_v7 = vld [vmem:[%s9879_s3 + $0xb4] sm:$0xf0] }
 0x35d   : > { %v9194_v62 = vadd.f32 %v3247_v55, %v3199_v31  ;;  %v6201_v50 = vor.u32 %v6799_v7, %v6200_v40 }
 0x35f   : > { %v3103_v29 = vpop.f32.mrf.mxu0  ;;  %3396 = vmatmul.bf16.gmra.mxu2 %v10025_v47  ;;  %4010 = vmatpush.bf16.msrb.mxu1 %v6201_v50 }
 0x360   : > { %v3104_v44 = vadd.f32 %v3103_v29, %v8954_v51  ;;  %v3152_v57 = vpop.f32.mrf.mxu1  ;;  %3445 = vmatmul.bf16.gmra.mxu3 %v10059_v0  ;;  %v6815_v51 = vld [vmem:[%s9879_s3 + $0x134] sm:$0xf0]  ;;  %v6136_v0 = vld [vmem:[%s9879_s3 + $0x30] sm:$0xf] }
 0x361   : > { %v3153_v17 = vadd.f32 %v3152_v57, %v9077_v58  ;;  %v6265_v26 = vor.u32 %v6815_v51, %v6264_v8  ;;  %v6137_v63 = vor.u32 %v6783_v6, %v6136_v0  ;;  %v6797_v6 = vld [vmem:[%s9879_s3 + $0xa4] sm:$0xf0] }
 0x362   : > { %3298 = vmatmul.bf16.gmra.mxu0 %v7358_v15  ;;  %v3201_v48 = vpop.f32.mrf.mxu2  ;;  %v3497_v56 = vmax.f32 %v3104_v44, 0.0  ;;  %v6256_v44 = vld [vmem:[%s9879_s3 + $0x120] sm:$0xf] }
 0x363   : > { %3347 = vmatmul.bf16.gmra.mxu1 %v7711_v33  ;;  %v3202_v27 = vadd.f32 %v3201_v48, %v3153_v17  ;;  %v3250_v15 = vpop.f32.mrf.mxu3  ;;  %4059 = vmatpush.bf16.msrb.mxu2 %v6265_v26  ;;  %v6781_v48 = vld [vmem:[%s9879_s3 + $0x24] sm:$0xf0] }
 0x364   : > { %3961 = vmatpush.bf16.msrb.mxu0 %v6137_v63 }
 0x365   : > { %v9208_v47 = vadd.f32 %v3250_v15, %v3202_v27  ;;  %v6320_v27 = vld [vmem:[%s9879_s3 + $0x1a0] sm:$0xf] }
 0x367   : > { %v3105_v16 = vpop.f32.mrf.mxu0 }
 0x368   : > { %v3106_v33 = vadd.f32 %v3105_v16, %v8963_v37  ;;  %v3154_v54 = vpop.f32.mrf.mxu1  ;;  %v6831_v37 = vld [vmem:[%s9879_s3 + $0x1b4] sm:$0xf0] }
 0x369   : > { %v6329_v59 = vor.u32 %v6831_v37, %v6328_v36  ;;  %v3155_v46 = vadd.f32 %v3154_v54, %v9077_v58  ;;  %v6192_v54 = vld [vmem:[%s9879_s3 + $0xa0] sm:$0xf] }
 0x36a   : > { %v3501_v2 = vmax.f32 %v3106_v33, 0.0  ;;  %v3203_v49 = vpop.f32.mrf.mxu2  ;;  %v6193_v36 = vor.u32 %v6797_v6, %v6192_v54  ;;  %v6793_v6 = vld [vmem:[%s9879_s3 + $0x84] sm:$0xf0] }
 0x36b   : > { %4108 = vmatpush.bf16.msrb.mxu3 %v6329_v59  ;;  %v3204_v10 = vadd.f32 %v3203_v49, %v3155_v46  ;;  %v3252_v13 = vpop.f32.mrf.mxu3  ;;  %v6248_v49 = vld [vmem:[%s9879_s3 + $0x110] sm:$0xf] }
 0x36c   : > { %v9228_v20 = vpack.c.bf16 %v3501_v2, %v3497_v56  ;;  %4011 = vmatpush.bf16.msrb.mxu1 %v6193_v36  ;;  %v6240_v36 = vld [vmem:[%s9879_s3 + $0x100] sm:$0xf] }
 0x36d   : > { %v9232_v55 = vadd.f32 %v3252_v13, %v3204_v10  ;;  %v6811_v10 = vld [vmem:[%s9879_s3 + $0x114] sm:$0xf0] }
 0x36f   : > { %v3108_v4 = vpop.f32.mrf.mxu0  ;;  %3401 = vmatmul.bf16.gmra.mxu2 %v10028_v19 }
 0x370   : > { %v3109_v61 = vadd.f32 %v3108_v4, %v8988_v14  ;;  %v3157_v31 = vpop.f32.mrf.mxu1  ;;  %3450 = vmatmul.bf16.gmra.mxu3 %v10062_v5  ;;  %v6813_v14 = vld [vmem:[%s9879_s3 + $0x124] sm:$0xf0]  ;;  %v6128_v5 = vld [vmem:[%s9879_s3 + $0x20] sm:$0xf] }
 0x371   : > { %v3158_v29 = vadd.f32 %v3157_v31, %v9077_v58  ;;  %v6257_v57 = vor.u32 %v6813_v14, %v6256_v44  ;;  %v6129_v33 = vor.u32 %v6781_v48, %v6128_v5  ;;  %v6312_v44 = vld [vmem:[%s9879_s3 + $0x190] sm:$0xf] }
 0x372   : > { %3303 = vmatmul.bf16.gmra.mxu0 %v7402_v43  ;;  %v3206_v17 = vpop.f32.mrf.mxu2  ;;  %v3505_v15 = vmax.f32 %v3109_v61, 0.0 }
 0x373   : > { %3352 = vmatmul.bf16.gmra.mxu1 %v7757_v34  ;;  %v3207_v8 = vadd.f32 %v3206_v17, %v3158_v29  ;;  %v3255_v43 = vpop.f32.mrf.mxu3  ;;  %4060 = vmatpush.bf16.msrb.mxu2 %v6257_v57  ;;  %v6779_v29 = vld [vmem:[%s9879_s3 + $0x14] sm:$0xf0] }
 0x374   : > { %3962 = vmatpush.bf16.msrb.mxu0 %v6129_v33 }
 0x375   : > { %v9246_v19 = vadd.f32 %v3255_v43, %v3207_v8  ;;  %v6184_v8 = vld [vmem:[%s9879_s3 + $0x90] sm:$0xf] }
 0x377   : > { %v3110_v51 = vpop.f32.mrf.mxu0 }
 0x378   : > { %v3111_v34 = vadd.f32 %v3110_v51, %v8997_v9  ;;  %v3159_v26 = vpop.f32.mrf.mxu1  ;;  %v6829_v9 = vld [vmem:[%s9879_s3 + $0x1a4] sm:$0xf0]  ;;  %v6795_v51 = vld [vmem:[%s9879_s3 + $0x94] sm:$0xf0] }
 0x379   : > { %v6321_v0 = vor.u32 %v6829_v9, %v6320_v27  ;;  %v3160_v2 = vadd.f32 %v3159_v26, %v9077_v58  ;;  %v6112_v27 = vld [vmem:[%s9879_s3] sm:$0xf] }
 0x37a   : > { %v3509_v16 = vmax.f32 %v3111_v34, 0.0  ;;  %v3208_v63 = vpop.f32.mrf.mxu2  ;;  %v6185_v34 = vor.u32 %v6795_v51, %v6184_v8 }
 0x37b   : > { %4109 = vmatpush.bf16.msrb.mxu3 %v6321_v0  ;;  %v9269_v37 = vadd.f32 %v3208_v63, %v3160_v2  ;;  %v9271_v40 = vpop.f32.mrf.mxu3  ;;  %v6809_v2 = vld [vmem:[%s9879_s3 + $0x104] sm:$0xf0] }
 0x37c   : > { %v9266_v56 = vpack.c.bf16 %v3509_v16, %v3505_v15  ;;  %4012 = vmatpush.bf16.msrb.mxu1 %v6185_v34  ;;  %v6777_v15 = vld [vmem:[%s9879_s3 + $0x4] sm:$0xf0]  ;;  %v6176_v16 = vld [vmem:[%s9879_s3 + $0x80] sm:$0xf] }
 0x37d   : > { %v6113_v0 = vor.u32 %v6777_v15, %v6112_v27  ;;  %v10076_v27 = vld [vmem:[#allocation38_spill] sm:$0xff]  ;;  %v6822_v15 = vld [vmem:[%s9879_s3 + $0x174] sm:$0xf] }
 0x37f   : > { %v3113_v59 = vpop.f32.mrf.mxu0  ;;  %3406 = vmatmul.bf16.gmra.mxu2 %v10031_v30 }
 0x380   : > { %v3114_v7 = vadd.f32 %v3113_v59, %v9022_v42  ;;  %v3162_v50 = vpop.f32.mrf.mxu1  ;;  %3455 = vmatmul.bf16.gmra.mxu3 %v10065_v1  ;;  %v6249_v42 = vor.u32 %v6811_v10, %v6248_v49  ;;  %v6120_v1 = vld [vmem:[%s9879_s3 + $0x10] sm:$0xf]  ;;  %v10073_v10 = vld [vmem:[#allocation34_spill] sm:$0xff] }
 0x381   : > { %v3163_v46 = vadd.f32 %v3162_v50, %v9077_v58  ;;  %v6121_v17 = vor.u32 %v6779_v29, %v6120_v1  ;;  %v6241_v50 = vor.u32 %v6809_v2, %v6240_v36 }
 0x382   : > { %3308 = vmatmul.bf16.gmra.mxu0 %v7446_v11  ;;  %v3211_v13 = vpop.f32.mrf.mxu2  ;;  %4061 = vmatpush.bf16.msrb.mxu2 %v6249_v42  ;;  %v3513_v14 = vmax.f32 %v3114_v7, 0.0  ;;  %v6177_v7 = vor.u32 %v6793_v6, %v6176_v16  ;;  %v10074_v42 = vld [vmem:[#allocation35_spill] sm:$0xff]  ;;  %v6298_v16 = vld [vmem:[%s9879_s3 + $0x178] sm:$0xf0] }
 0x383   : > { %3357 = vmatmul.bf16.gmra.mxu1 %v7803_v32  ;;  %v3212_v4 = vadd.f32 %v3211_v13, %v3163_v46  ;;  %v3260_v11 = vpop.f32.mrf.mxu3  ;;  %3963 = vmatpush.bf16.msrb.mxu0 %v6121_v17  ;;  %v10072_v46 = vld [vmem:[#allocation16_spill] sm:$0xff] }
 0x384   : > { %4013 = vmatpush.bf16.msrb.mxu1 %v6177_v7  ;;  %v6790_v7 = vld [vmem:[%s9879_s3 + $0x74] sm:$0xf] }
 0x385   : > { %v9286_v30 = vadd.f32 %v3260_v11, %v3212_v4 }
 0x386   : > { %4062 = vmatpush.bf16.msrb.mxu2 %v6241_v50  ;;  %v6170_v50 = vld [vmem:[%s9879_s3 + $0x78] sm:$0xf0] }
 0x387   : > { %v3115_v61 = vpop.f32.mrf.mxu0  ;;  %3964 = vmatpush.bf16.msrb.mxu0 %v6113_v0 }
 0x388   : > { %v3116_v32 = vadd.f32 %v3115_v61, %v9031_v3  ;;  %v3164_v31 = vpop.f32.mrf.mxu1  ;;  %v6827_v3 = vld [vmem:[%s9879_s3 + $0x194] sm:$0xf0] }
 0x389   : > { %v6313_v43 = vor.u32 %v6827_v3, %v6312_v44  ;;  %v3165_v5 = vadd.f32 %v3164_v31, %v9077_v58  ;;  %v6304_v44 = vld [vmem:[%s9879_s3 + $0x180] sm:$0xf] }
 0x38a   : > { %v3517_v57 = vmax.f32 %v3116_v32, 0.0  ;;  %v3213_v48 = vpop.f32.mrf.mxu2 }
 0x38b   : > { %4110 = vmatpush.bf16.msrb.mxu3 %v6313_v43  ;;  %v9318_v33 = vadd.f32 %v3213_v48, %v3165_v5  ;;  %v9320_v9 = vpop.f32.mrf.mxu3  ;;  %v10075_v48 = vld [vmem:[#allocation37_spill] sm:$0xff] }
 0x38c   : > { %v9306_v26 = vpack.c.bf16 %v3517_v57, %v3513_v14 }
 0x38f   : > { %v3118_v54 = vpop.f32.mrf.mxu0  ;;  %3411 = vmatmul.bf16.gmra.mxu2 %v10074_v42  ;;  %v6234_v42 = vld [vmem:[%s9879_s3 + $0xf8] sm:$0xf0] }
 0x390   : > { %v3119_v63 = vadd.f32 %v3118_v54, %v9038_v45  ;;  %v3167_v59 = vpop.f32.mrf.mxu1  ;;  %3460 = vmatmul.bf16.gmra.mxu3 %v10035_v52  ;;  %v6825_v52 = vld [vmem:[%s9879_s3 + $0x184] sm:$0xf0]  ;;  %v6301_v54 = vor.u32 %v6822_v15, %v6298_v16 }
 0x391   : > { %v3168_v49 = vadd.f32 %v3167_v59, %v9077_v58  ;;  %v6305_v14 = vor.u32 %v6825_v52, %v6304_v44  ;;  %v10077_v52 = vld [vmem:[#allocation39_spill] sm:$0xff] }
 0x392   : > { %3313 = vmatmul.bf16.gmra.mxu0 %v10072_v46  ;;  %v3216_v13 = vpop.f32.mrf.mxu2  ;;  %v3521_v1 = vmax.f32 %v3119_v63, 0.0  ;;  %4251 = vmatpush.bf16.msra.mxu2 %v6301_v54  ;;  %v6838_v46 = vld [vmem:[%s9879_s3 + $0x1f4] sm:$0xf]  ;;  %v6162_v54 = vld [vmem:[%s9879_s3 + $0x68] sm:$0xf0] }
 0x393   : > { %3362 = vmatmul.bf16.gmra.mxu1 %v10073_v10  ;;  %v3217_v4 = vadd.f32 %v3216_v13, %v3168_v49  ;;  %v3265_v11 = vpop.f32.mrf.mxu3  ;;  %4111 = vmatpush.bf16.msrb.mxu3 %v6305_v14  ;;  %v6173_v49 = vor.u32 %v6790_v7, %v6170_v50  ;;  %v6806_v10 = vld [vmem:[%s9879_s3 + $0xf4] sm:$0xf] }
 0x394   : > { %v10078_v14 = vld [vmem:[#allocation24_spill] sm:$0xff] }
 0x395   : > { %v9338_v31 = vadd.f32 %v3265_v11, %v3217_v4  ;;  %4153 = vmatpush.bf16.msra.mxu0 %v6173_v49 }
 0x397   : > { %v3120_v45 = vpop.f32.mrf.mxu0 }
 0x398   : > { %v3121_v61 = vadd.f32 %v3120_v45, %v9041_v41  ;;  %v3169_v32 = vpop.f32.mrf.mxu1  ;;  %v6237_v45 = vor.u32 %v6806_v10, %v6234_v42  ;;  %v10079_v42 = vld [vmem:[#allocation40_spill] sm:$0xff] }
 0x399   : > { %v3170_v17 = vadd.f32 %v3169_v32, %v9077_v58 }
 0x39a   : > { %v3525_v29 = vmax.f32 %v3121_v61, 0.0  ;;  %v3218_v3 = vpop.f32.mrf.mxu2  ;;  %4202 = vmatpush.bf16.msra.mxu1 %v6237_v45  ;;  %v10080_v45 = vld [vmem:[#allocation26_spill] sm:$0xff] }
 0x39b   : > { %v9349_v41 = vadd.f32 %v3218_v3, %v3170_v17  ;;  %v9351_v8 = vpop.f32.mrf.mxu3  ;;  %v6290_v17 = vld [vmem:[%s9879_s3 + $0x168] sm:$0xf0] }
 0x39c   : > { %v9346_v57 = vpack.c.bf16 %v3525_v29, %v3521_v1 }
 0x39f   : > { %v3123_v43 = vpop.f32.mrf.mxu0  ;;  %3416 = vmatmul.bf16.gmra.mxu2 %v10076_v27 }
 0x3a0   : > { %v3124_v51 = vadd.f32 %v3123_v43, %v9054_v35  ;;  %v3172_v34 = vpop.f32.mrf.mxu1  ;;  %3465 = vmatmul.bf16.gmra.mxu3 %v7899_v23 }
 0x3a1   : > { %v3173_v5 = vadd.f32 %v3172_v34, %v9077_v58 }
 0x3a2   : > { %3318 = vmatmul.bf16.gmra.mxu0 %v10049_v39  ;;  %v3221_v35 = vpop.f32.mrf.mxu2  ;;  %v3529_v23 = vmax.f32 %v3124_v51, 0.0 }
 0x3a3   : > { %3367 = vmatmul.bf16.gmra.mxu1 %v10075_v48  ;;  %v3222_v0 = vadd.f32 %v3221_v35, %v3173_v5  ;;  %v3270_v39 = vpop.f32.mrf.mxu3  ;;  %v6788_v35 = vld [vmem:[%s9879_s3 + $0x64] sm:$0xf] }
 0x3a5   : > { %v9366_v63 = vadd.f32 %v3270_v39, %v3222_v0  ;;  %v6165_v0 = vor.u32 %v6788_v35, %v6162_v54  ;;  %v6354_v39 = vld [vmem:[%s9879_s3 + $0x1e8] sm:$0xf0]  ;;  %v6834_v35 = vld [vmem:[%s9879_s3 + $0x1d4] sm:$0xf]  ;;  %v6346_v54 = vld [vmem:[%s9879_s3 + $0x1d8] sm:$0xf0] }
 0x3a7   : > { %v3125_v6 = vpop.f32.mrf.mxu0  ;;  %4154 = vmatpush.bf16.msra.mxu0 %v6165_v0 }
 0x3a8   : > { %v3126_v36 = vadd.f32 %v3125_v6, %v9080_v21  ;;  %v3174_v2 = vpop.f32.mrf.mxu1  ;;  %v6362_v21 = vld [vmem:[%s9879_s3 + $0x1f8] sm:$0xf0] }
 0x3a9   : > { %v3175_v4 = vadd.f32 %v3174_v2, %v9077_v58  ;;  %v6365_v11 = vor.u32 %v6838_v46, %v6362_v21  ;;  %v6820_v58 = vld [vmem:[%s9879_s3 + $0x164] sm:$0xf]  ;;  %v6226_v2 = vld [vmem:[%s9879_s3 + $0xe8] sm:$0xf0] }
 0x3aa   : > { %v3533_v59 = vmax.f32 %v3126_v36, 0.0  ;;  %v3223_v61 = vpop.f32.mrf.mxu2  ;;  %v6293_v3 = vor.u32 %v6820_v58, %v6290_v17 }
 0x3ab   : > { %v9389_v32 = vadd.f32 %v3223_v61, %v3175_v4  ;;  %v9391_v1 = vpop.f32.mrf.mxu3  ;;  %4300 = vmatpush.bf16.msra.mxu3 %v6365_v11  ;;  %v6818_v61 = vld [vmem:[%s9879_s3 + $0x154] sm:$0xf] }
 0x3ac   : > { %v9386_v13 = vpack.c.bf16 %v3533_v59, %v3529_v23  ;;  %4252 = vmatpush.bf16.msra.mxu2 %v6293_v3 }
 0x3af   : > { %v3284_v29 = vpop.f32.mrf.mxu0  ;;  %4063 = vmatmul.bf16.vlgmr.msrb.gmra.mxu2 %v9114_v28 }
 0x3b0   : > { %v3333_v44 = vpop.f32.mrf.mxu1  ;;  %v3285_v43 = vadd.f32 %v3284_v29, %v9094_v24  ;;  %v6836_v24 = vld [vmem:[%s9879_s3 + $0x1e4] sm:$0xf]  ;;  %v6282_v29 = vld [vmem:[%s9879_s3 + $0x158] sm:$0xf0] }
 0x3b1   : > { %v6357_v36 = vor.u32 %v6836_v24, %v6354_v39  ;;  %v6349_v24 = vor.u32 %v6834_v35, %v6346_v54  ;;  %v6218_v39 = vld [vmem:[%s9879_s3 + $0xd8] sm:$0xf0] }
 0x3b2   : > { %3965 = vmatmul.bf16.vlgmr.msrb.gmra.mxu0 %v10077_v52  ;;  %v3382_v51 = vpop.f32.mrf.mxu2  ;;  %v3334_v27 = vadd.f32 %v3333_v44, %v3285_v43  ;;  %v6285_v44 = vor.u32 %v6818_v61, %v6282_v29 }
 0x3b3   : > { %4014 = vmatmul.bf16.vlgmr.msrb.gmra.mxu1 %v10078_v14  ;;  %v3431_v34 = vpop.f32.mrf.mxu3  ;;  %4301 = vmatpush.bf16.msra.mxu3 %v6357_v36 }
 0x3b4   : > { %v3383_v16 = vadd.f32 %v3382_v51, %v3334_v27  ;;  %4253 = vmatpush.bf16.msra.mxu2 %v6285_v44 }
 0x3b6   : > { %v3432_v7 = vadd.f32 %v3431_v34, %v3383_v16  ;;  %v6154_v16 = vld [vmem:[%s9879_s3 + $0x58] sm:$0xf0] }
 0x3b7   : > { %v3286_v5 = vpop.f32.mrf.mxu0  ;;  %4302 = vmatpush.bf16.msra.mxu3 %v6349_v24 }
 0x3b8   : > { %v3335_v48 = vpop.f32.mrf.mxu1  ;;  %v3287_v15 = vadd.f32 %v3286_v5, %v9118_v25  ;;  %v6804_v25 = vld [vmem:[%s9879_s3 + $0xe4] sm:$0xf]  ;;  %v3474_v4 = vmax.f32 %v3432_v7, 0.0 }
 0x3b9   : > { %v6229_v59 = vor.u32 %v6804_v25, %v6226_v2 }
 0x3ba   : > { %v3336_v6 = vadd.f32 %v3335_v48, %v3287_v15  ;;  %v3384_v23 = vpop.f32.mrf.mxu2  ;;  %v6786_v15 = vld [vmem:[%s9879_s3 + $0x54] sm:$0xf] }
 0x3bb   : > { %v3433_v46 = vpop.f32.mrf.mxu3  ;;  %4203 = vmatpush.bf16.msra.mxu1 %v6229_v59 }
 0x3bc   : > { %v3385_v50 = vadd.f32 %v3384_v23, %v3336_v6 }
 0x3be   : > { %v3434_v10 = vadd.f32 %v3433_v46, %v3385_v50  ;;  %v10081_v46 = vld [vmem:[#allocation41_spill] sm:$0xff] }
 0x3bf   : > { %v3289_v49 = vpop.f32.mrf.mxu0  ;;  %4068 = vmatmul.bf16.gmra.mxu2 %v9152_v38 }
 0x3c0   : > { %v3338_v21 = vpop.f32.mrf.mxu1  ;;  %v3478_v11 = vmax.f32 %v3434_v10, 0.0  ;;  %v3290_v17 = vadd.f32 %v3289_v49, %v9132_v12  ;;  %v6157_v12 = vor.u32 %v6786_v15, %v6154_v16  ;;  %v10082_v10 = vld [vmem:[#allocation28_spill] sm:$0xff]  ;;  %v6832_v16 = vld [vmem:[%s9879_s3 + $0x1c4] sm:$0xf] }
 0x3c2   : > { %3970 = vmatmul.bf16.gmra.mxu0 %v10079_v42  ;;  %v9431_v58 = vpack.c.bf16 %v3478_v11, %v3474_v4  ;;  %v3387_v3 = vpop.f32.mrf.mxu2  ;;  %v3339_v5 = vadd.f32 %v3338_v21, %v3290_v17  ;;  %v6816_v4 = vld [vmem:[%s9879_s3 + $0x144] sm:$0xf]  ;;  %v6274_v11 = vld [vmem:[%s9879_s3 + $0x148] sm:$0xf0] }
 0x3c3   : > { %4019 = vmatmul.bf16.gmra.mxu1 %v10080_v45  ;;  %v3436_v43 = vpop.f32.mrf.mxu3  ;;  %4155 = vmatpush.bf16.msra.mxu0 %v6157_v12  ;;  %v6277_v61 = vor.u32 %v6816_v4, %v6274_v11  ;;  %v6338_v12 = vld [vmem:[%s9879_s3 + $0x1c8] sm:$0xf0]  ;;  %v6266_v4 = vld [vmem:[%s9879_s3 + $0x138] sm:$0xf0] }
 0x3c4   : > { %4112 = vmatmul.bf16.vlgmr.msrb.gmra.mxu3 %v9431_v58  ;;  %v3388_v27 = vadd.f32 %v3387_v3, %v3339_v5  ;;  %v6341_v54 = vor.u32 %v6832_v16, %v6338_v12  ;;  %v6330_v16 = vld [vmem:[%s9879_s3 + $0x1b8] sm:$0xf0] }
 0x3c5   : > { %4254 = vmatpush.bf16.msra.mxu2 %v6277_v61 }
 0x3c6   : > { %v3437_v36 = vadd.f32 %v3436_v43, %v3388_v27  ;;  %v6784_v27 = vld [vmem:[%s9879_s3 + $0x44] sm:$0xf]  ;;  %4303 = vmatpush.bf16.msra.mxu3 %v6341_v54 }
 0x3c7   : > { %v3291_v51 = vpop.f32.mrf.mxu0 }
 0x3c8   : > { %v3340_v34 = vpop.f32.mrf.mxu1  ;;  %v3292_v48 = vadd.f32 %v3291_v51, %v9156_v53  ;;  %v6802_v53 = vld [vmem:[%s9879_s3 + $0xd4] sm:$0xf]  ;;  %v3482_v49 = vmax.f32 %v3437_v36, 0.0 }
 0x3c9   : > { %v6221_v6 = vor.u32 %v6802_v53, %v6218_v39  ;;  %v6210_v53 = vld [vmem:[%s9879_s3 + $0xc8] sm:$0xf0] }
 0x3ca   : > { %v3341_v0 = vadd.f32 %v3340_v34, %v3292_v48  ;;  %v3389_v25 = vpop.f32.mrf.mxu2 }
 0x3cb   : > { %v3438_v23 = vpop.f32.mrf.mxu3  ;;  %4204 = vmatpush.bf16.msra.mxu1 %v6221_v6 }
 0x3cc   : > { %v3390_v2 = vadd.f32 %v3389_v25, %v3341_v0 }
 0x3ce   : > { %v3439_v50 = vadd.f32 %v3438_v23, %v3390_v2 }
 0x3cf   : > { %v3294_v59 = vpop.f32.mrf.mxu0  ;;  %4073 = vmatmul.bf16.gmra.mxu2 %v9190_v60 }
 0x3d0   : > { %v3343_v7 = vpop.f32.mrf.mxu1  ;;  %v3486_v21 = vmax.f32 %v3439_v50, 0.0  ;;  %v3295_v29 = vadd.f32 %v3294_v59, %v9170_v18  ;;  %v6146_v18 = vld [vmem:[%s9879_s3 + $0x48] sm:$0xf0]  ;;  %v10083_v59 = vld [vmem:[#allocation42_spill] sm:$0xff] }
 0x3d1   : > { %v6149_v15 = vor.u32 %v6784_v27, %v6146_v18  ;;  %v6782_v27 = vld [vmem:[%s9879_s3 + $0x34] sm:$0xf] }
 0x3d2   : > { %3975 = vmatmul.bf16.gmra.mxu0 %v10081_v46  ;;  %v9464_v44 = vpack.c.bf16 %v3486_v21, %v3482_v49  ;;  %v3392_v17 = vpop.f32.mrf.mxu2  ;;  %v3344_v34 = vadd.f32 %v3343_v7, %v3295_v29  ;;  %v10084_v49 = vld [vmem:[#allocation30_spill] sm:$0xff]  ;;  %v6814_v21 = vld [vmem:[%s9879_s3 + $0x134] sm:$0xf] }
 0x3d3   : > { %4024 = vmatmul.bf16.gmra.mxu1 %v10082_v10  ;;  %v3441_v3 = vpop.f32.mrf.mxu3  ;;  %4156 = vmatpush.bf16.msra.mxu0 %v6149_v15  ;;  %v6269_v11 = vor.u32 %v6814_v21, %v6266_v4  ;;  %v6830_v15 = vld [vmem:[%s9879_s3 + $0x1b4] sm:$0xf]  ;;  %v6812_v21 = vld [vmem:[%s9879_s3 + $0x124] sm:$0xf]  ;;  %v6258_v4 = vld [vmem:[%s9879_s3 + $0x128] sm:$0xf0] }
 0x3d4   : > { %4117 = vmatmul.bf16.gmra.mxu3 %v9464_v44  ;;  %v3393_v48 = vadd.f32 %v3392_v17, %v3344_v34 }
 0x3d5   : > { %4255 = vmatpush.bf16.msra.mxu2 %v6269_v11  ;;  %v6261_v11 = vor.u32 %v6812_v21, %v6258_v4  ;;  %v10088_v21 = vld [vmem:[#allocation36_spill] sm:$0xff] }
 0x3d6   : > { %v3442_v39 = vadd.f32 %v3441_v3, %v3393_v48  ;;  %v6810_v4 = vld [vmem:[%s9879_s3 + $0x114] sm:$0xf] }
 0x3d7   : > { %v3296_v43 = vpop.f32.mrf.mxu0 }
 0x3d8   : > { %v3345_v51 = vpop.f32.mrf.mxu1  ;;  %v3297_v5 = vadd.f32 %v3296_v43, %v9194_v62  ;;  %v6800_v62 = vld [vmem:[%s9879_s3 + $0xc4] sm:$0xf]  ;;  %v3490_v7 = vmax.f32 %v3442_v39, 0.0 }
 0x3d9   : > { %v6213_v24 = vor.u32 %v6800_v62, %v6210_v53  ;;  %v6333_v62 = vor.u32 %v6830_v15, %v6330_v16  ;;  %4256 = vmatpush.bf16.msra.mxu2 %v6261_v11  ;;  %v6796_v16 = vld [vmem:[%s9879_s3 + $0xa4] sm:$0xf]  ;;  %v6250_v11 = vld [vmem:[%s9879_s3 + $0x118] sm:$0xf0] }
 0x3da   : > { %v3346_v35 = vadd.f32 %v3345_v51, %v3297_v5  ;;  %v3394_v0 = vpop.f32.mrf.mxu2 }
 0x3db   : > { %v3443_v6 = vpop.f32.mrf.mxu3  ;;  %4205 = vmatpush.bf16.msra.mxu1 %v6213_v24  ;;  %4304 = vmatpush.bf16.msra.mxu3 %v6333_v62  ;;  %v6194_v62 = vld [vmem:[%s9879_s3 + $0xa8] sm:$0xf0] }
 0x3dc   : > { %v3395_v25 = vadd.f32 %v3394_v0, %v3346_v35  ;;  %v6202_v35 = vld [vmem:[%s9879_s3 + $0xb8] sm:$0xf0] }
 0x3de   : > { %v3444_v23 = vadd.f32 %v3443_v6, %v3395_v25 }
 0x3df   : > { %v3299_v36 = vpop.f32.mrf.mxu0  ;;  %4078 = vmatmul.bf16.gmra.mxu2 %v9228_v20 }
 0x3e0   : > { %v3348_v2 = vpop.f32.mrf.mxu1  ;;  %v3494_v50 = vmax.f32 %v3444_v23, 0.0  ;;  %v3300_v61 = vadd.f32 %v3299_v36, %v9208_v47  ;;  %v6138_v47 = vld [vmem:[%s9879_s3 + $0x38] sm:$0xf0] }
 0x3e1   : > { %v6141_v18 = vor.u32 %v6782_v27, %v6138_v47 }
 0x3e2   : > { %3980 = vmatmul.bf16.gmra.mxu0 %v10083_v59  ;;  %v9496_v29 = vpack.c.bf16 %v3494_v50, %v3490_v7  ;;  %v3397_v17 = vpop.f32.mrf.mxu2  ;;  %v3349_v34 = vadd.f32 %v3348_v2, %v3300_v61  ;;  %v10085_v2 = vld [vmem:[#allocation43_spill] sm:$0xff]  ;;  %v10086_v50 = vld [vmem:[#allocation32_spill] sm:$0xff] }
 0x3e3   : > { %4029 = vmatmul.bf16.gmra.mxu1 %v10084_v49  ;;  %v3446_v3 = vpop.f32.mrf.mxu3  ;;  %4157 = vmatpush.bf16.msra.mxu0 %v6141_v18  ;;  %v6780_v18 = vld [vmem:[%s9879_s3 + $0x24] sm:$0xf] }
 0x3e4   : > { %4122 = vmatmul.bf16.gmra.mxu3 %v9496_v29  ;;  %v3398_v48 = vadd.f32 %v3397_v17, %v3349_v34 }
 0x3e6   : > { %v3447_v0 = vadd.f32 %v3446_v3, %v3398_v48 }
 0x3e7   : > { %v3301_v43 = vpop.f32.mrf.mxu0 }
 0x3e8   : > { %v3350_v51 = vpop.f32.mrf.mxu1  ;;  %v3302_v5 = vadd.f32 %v3301_v43, %v9232_v55  ;;  %v6798_v55 = vld [vmem:[%s9879_s3 + $0xb4] sm:$0xf]  ;;  %v3498_v23 = vmax.f32 %v3447_v0, 0.0  ;;  %v3258_v43 = vadd.f32 %v9271_v40, %v9269_v37  ;;  %v6828_v37 = vld [vmem:[%s9879_s3 + $0x1a4] sm:$0xf] }
 0x3e9   : > { %v6205_v53 = vor.u32 %v6798_v55, %v6202_v35  ;;  %v6322_v40 = vld [vmem:[%s9879_s3 + $0x1a8] sm:$0xf0] }
 0x3ea   : > { %v3351_v12 = vadd.f32 %v3350_v51, %v3302_v5  ;;  %v3399_v54 = vpop.f32.mrf.mxu2 }
 0x3eb   : > { %v3448_v39 = vpop.f32.mrf.mxu3  ;;  %4206 = vmatpush.bf16.msra.mxu1 %v6205_v53 }
 0x3ec   : > { %v3400_v24 = vadd.f32 %v3399_v54, %v3351_v12  ;;  %v6325_v12 = vor.u32 %v6828_v37, %v6322_v40  ;;  %v6197_v54 = vor.u32 %v6796_v16, %v6194_v62  ;;  %v6826_v37 = vld [vmem:[%s9879_s3 + $0x194] sm:$0xf]  ;;  %v6314_v40 = vld [vmem:[%s9879_s3 + $0x198] sm:$0xf0] }
 0x3ed   : > { %v6317_v16 = vor.u32 %v6826_v37, %v6314_v40  ;;  %v6824_v37 = vld [vmem:[%s9879_s3 + $0x184] sm:$0xf]  ;;  %v6306_v40 = vld [vmem:[%s9879_s3 + $0x188] sm:$0xf0] }
 0x3ee   : > { %v3449_v36 = vadd.f32 %v3448_v39, %v3400_v24  ;;  %4305 = vmatpush.bf16.msra.mxu3 %v6325_v12 }
 0x3ef   : > { %v3304_v25 = vpop.f32.mrf.mxu0  ;;  %4083 = vmatmul.bf16.gmra.mxu2 %v9266_v56  ;;  %4207 = vmatpush.bf16.msra.mxu1 %v6197_v54  ;;  %v6776_v54 = vld [vmem:[%s9879_s3 + $0x4] sm:$0xf] }
 0x3f0   : > { %v3353_v6 = vpop.f32.mrf.mxu1  ;;  %v3502_v7 = vmax.f32 %v3449_v36, 0.0  ;;  %v3305_v61 = vadd.f32 %v3304_v25, %v9246_v19  ;;  %v6130_v19 = vld [vmem:[%s9879_s3 + $0x28] sm:$0xf0]  ;;  %v10087_v36 = vld [vmem:[#allocation44_spill] sm:$0xff] }
 0x3f1   : > { %v6133_v15 = vor.u32 %v6780_v18, %v6130_v19  ;;  %v6778_v19 = vld [vmem:[%s9879_s3 + $0x14] sm:$0xf] }
 0x3f2   : > { %3985 = vmatmul.bf16.gmra.mxu0 %v10085_v2  ;;  %v9528_v17 = vpack.c.bf16 %v3502_v7, %v3498_v23  ;;  %v3402_v3 = vpop.f32.mrf.mxu2  ;;  %v3354_v48 = vadd.f32 %v3353_v6, %v3305_v61  ;;  %v6253_v61 = vor.u32 %v6810_v4, %v6250_v11  ;;  %4306 = vmatpush.bf16.msra.mxu3 %v6317_v16  ;;  %v6808_v4 = vld [vmem:[%s9879_s3 + $0x104] sm:$0xf] }
 0x3f3   : > { %4034 = vmatmul.bf16.gmra.mxu1 %v10086_v50  ;;  %v3451_v51 = vpop.f32.mrf.mxu3  ;;  %4158 = vmatpush.bf16.msra.mxu0 %v6133_v15  ;;  %v6794_v15 = vld [vmem:[%s9879_s3 + $0x94] sm:$0xf] }
 0x3f4   : > { %4127 = vmatmul.bf16.gmra.mxu3 %v9528_v17  ;;  %v3403_v47 = vadd.f32 %v3402_v3, %v3354_v48  ;;  %4257 = vmatpush.bf16.msra.mxu2 %v6253_v61 }
 0x3f6   : > { %v3452_v53 = vadd.f32 %v3451_v51, %v3403_v47 }
 0x3f7   : > { %v3306_v34 = vpop.f32.mrf.mxu0 }
 0x3f8   : > { %v3355_v5 = vpop.f32.mrf.mxu1  ;;  %v3307_v27 = vadd.f32 %v3306_v34, %v3258_v43  ;;  %v3506_v23 = vmax.f32 %v3452_v53, 0.0  ;;  %v3263_v34 = vadd.f32 %v9320_v9, %v9318_v33  ;;  %v6114_v53 = vld [vmem:[%s9879_s3 + $0x8] sm:$0xf0] }
 0x3fa   : > { %v3356_v55 = vadd.f32 %v3355_v5, %v3307_v27  ;;  %v3404_v35 = vpop.f32.mrf.mxu2 }
 0x3fb   : > { %v3453_v24 = vpop.f32.mrf.mxu3 }
 0x3fc   : > { %v3405_v0 = vadd.f32 %v3404_v35, %v3356_v55  ;;  %v6186_v55 = vld [vmem:[%s9879_s3 + $0x98] sm:$0xf0] }
 0x3fd   : > { %v6189_v62 = vor.u32 %v6794_v15, %v6186_v55  ;;  %v3268_v15 = vadd.f32 %v9351_v8, %v9349_v41 }
 0x3fe   : > { %v3454_v6 = vadd.f32 %v3453_v24, %v3405_v0  ;;  %v6792_v0 = vld [vmem:[%s9879_s3 + $0x84] sm:$0xf] }
 0x3ff   : > { %v3309_v39 = vpop.f32.mrf.mxu0  ;;  %4088 = vmatmul.bf16.gmra.mxu2 %v9306_v26  ;;  %4208 = vmatpush.bf16.msra.mxu1 %v6189_v62 }
 0x400   : > { %v3358_v25 = vpop.f32.mrf.mxu1  ;;  %v3510_v7 = vmax.f32 %v3454_v6, 0.0  ;;  %v3310_v3 = vadd.f32 %v3309_v39, %v9286_v30  ;;  %v6122_v30 = vld [vmem:[%s9879_s3 + $0x18] sm:$0xf0] }
 0x401   : > { %v6125_v9 = vor.u32 %v6778_v19, %v6122_v30 }
 0x402   : > { %3990 = vmatmul.bf16.gmra.mxu0 %v10087_v36  ;;  %v9561_v43 = vpack.c.bf16 %v3510_v7, %v3506_v23  ;;  %v3407_v51 = vpop.f32.mrf.mxu2  ;;  %v3359_v47 = vadd.f32 %v3358_v25, %v3310_v3  ;;  %v6117_v23 = vor.u32 %v6776_v54, %v6114_v53  ;;  %v6178_v7 = vld [vmem:[%s9879_s3 + $0x88] sm:$0xf0] }
 0x403   : > { %4039 = vmatmul.bf16.gmra.mxu1 %v10088_v21  ;;  %v3456_v5 = vpop.f32.mrf.mxu3  ;;  %4159 = vmatpush.bf16.msra.mxu0 %v6125_v9  ;;  %v6181_v61 = vor.u32 %v6792_v0, %v6178_v7  ;;  %v6242_v3 = vld [vmem:[%s9879_s3 + $0x108] sm:$0xf0] }
 0x404   : > { %4132 = vmatmul.bf16.gmra.mxu3 %v9561_v43  ;;  %v3408_v33 = vadd.f32 %v3407_v51, %v3359_v47  ;;  %v10090_v47 = vld [vmem:[#allocation17_spill] sm:$0xff] }
 0x405   : > { %4209 = vmatpush.bf16.msra.mxu1 %v6181_v61  ;;  %v3273_v61 = vadd.f32 %v9391_v1, %v9389_v32 }
 0x406   : > { %v3457_v24 = vadd.f32 %v3456_v5, %v3408_v33  ;;  %v10089_v5 = vld [vmem:[#allocation45_spill] sm:$0xff] }
 0x407   : > { %v3311_v48 = vpop.f32.mrf.mxu0  ;;  %4160 = vmatpush.bf16.msra.mxu0 %v6117_v23 }
 0x408   : > { %v3360_v27 = vpop.f32.mrf.mxu1  ;;  %v3312_v18 = vadd.f32 %v3311_v48, %v3263_v34  ;;  %v6245_v34 = vor.u32 %v6808_v4, %v6242_v3  ;;  %v3514_v48 = vmax.f32 %v3457_v24, 0.0 }
 0x40a   : > { %v3361_v12 = vadd.f32 %v3360_v27, %v3312_v18  ;;  %v3409_v35 = vpop.f32.mrf.mxu2  ;;  %4258 = vmatpush.bf16.msra.mxu2 %v6245_v34 }
 0x40b   : > { %v3458_v25 = vpop.f32.mrf.mxu3 }
 0x40c   : > { %v3410_v39 = vadd.f32 %v3409_v35, %v3361_v12 }
 0x40e   : > { %v3459_v51 = vadd.f32 %v3458_v25, %v3410_v39  ;;  %v10091_v25 = vld [vmem:[#allocation23_spill] sm:$0xff] }
 0x40f   : > { %v3314_v6 = vpop.f32.mrf.mxu0  ;;  %4093 = vmatmul.bf16.gmra.mxu2 %v9346_v57 }
 0x410   : > { %v3363_v11 = vpop.f32.mrf.mxu1  ;;  %v3518_v27 = vmax.f32 %v3459_v51, 0.0  ;;  %v3315_v18 = vadd.f32 %v3314_v6, %v9338_v31  ;;  %v6309_v31 = vor.u32 %v6824_v37, %v6306_v40 }
 0x412   : > { %3995 = vmatmul.bf16.gmra.mxu0 %v10089_v5  ;;  %v9606_v19 = vpack.c.bf16 %v3518_v27, %v3514_v48  ;;  %v3412_v30 = vpop.f32.mrf.mxu2  ;;  %v3364_v55 = vadd.f32 %v3363_v11, %v3315_v18  ;;  %4307 = vmatpush.bf16.msra.mxu3 %v6309_v31  ;;  %v9629_v18 = vld [vmem:[%s9880_s4] sm:$0x3] }
 0x413   : > { %4044 = vmatmul.bf16.gmra.mxu1 %v10090_v47  ;;  %v3461_v33 = vpop.f32.mrf.mxu3 }
 0x414   : > { %4137 = vmatmul.bf16.gmra.mxu3 %v9606_v19  ;;  %v3413_v62 = vadd.f32 %v3412_v30, %v3364_v55 }
 0x416   : > { %v3462_v8 = vadd.f32 %v3461_v33, %v3413_v62 }
 0x417   : > { %v3316_v9 = vpop.f32.mrf.mxu0 }
 0x418   : > { %v3365_v16 = vpop.f32.mrf.mxu1  ;;  %v3317_v12 = vadd.f32 %v3316_v9, %v3268_v15  ;;  %v3522_v6 = vmax.f32 %v3462_v8, 0.0 }
 0x41a   : > { %v3366_v35 = vadd.f32 %v3365_v16, %v3317_v12  ;;  %v3414_v41 = vpop.f32.mrf.mxu2 }
 0x41b   : > { %v3463_v53 = vpop.f32.mrf.mxu3 }
 0x41c   : > { %v3415_v54 = vadd.f32 %v3414_v41, %v3366_v35 }
 0x41e   : > { %v3464_v39 = vadd.f32 %v3463_v53, %v3415_v54  ;;  %v6847_v53 = vld [vmem:[%s9881_s5 + $0x38] sm:$0xff] }
 0x41f   : > { %v3319_v0 = vpop.f32.mrf.mxu0  ;;  %4098 = vmatmul.bf16.gmra.mxu2 %v9386_v13  ;;  %4529 = vmatpush.bf16.msrb.mxu0 %v6847_v53 }
 0x420   : > { %v3368_v24 = vpop.f32.mrf.mxu1  ;;  %v3526_v23 = vmax.f32 %v3464_v39, 0.0  ;;  %v3320_v7 = vadd.f32 %v3319_v0, %v9366_v63  ;;  %v9632_v63 = vperm.slane %v9629_v18, 0 }
 0x422   : > { %4000 = vmatmul.bf16.gmra.mxu0 %v10091_v25  ;;  %v9621_v4 = vpack.c.bf16 %v3526_v23, %v3522_v6  ;;  %v3417_v11 = vpop.f32.mrf.mxu2  ;;  %v3369_v48 = vadd.f32 %v3368_v24, %v3320_v7 }
 0x423   : > { %4049 = vmatmul.bf16.gmra.mxu1 %v8823_v22  ;;  %v3466_v3 = vpop.f32.mrf.mxu3 }
 0x424   : > { %4142 = vmatmul.bf16.gmra.mxu3 %v9621_v4  ;;  %v3418_v30 = vadd.f32 %v3417_v11, %v3369_v48 }
 0x426   : > { %v3467_v9 = vadd.f32 %v3466_v3, %v3418_v30 }
 0x427   : > { %v3321_v51 = vpop.f32.mrf.mxu0 }
 0x428   : > { %v3370_v34 = vpop.f32.mrf.mxu1  ;;  %v3322_v27 = vadd.f32 %v3321_v51, %v3273_v61  ;;  %v3530_v12 = vmax.f32 %v3467_v9, 0.0 }
 0x42a   : > { %v3371_v15 = vadd.f32 %v3370_v34, %v3322_v27  ;;  %v3419_v33 = vpop.f32.mrf.mxu2  ;;  %v6846_v34 = vld [vmem:[%s9881_s5 + $0x30] sm:$0xff] }
 0x42b   : > { %v3468_v37 = vpop.f32.mrf.mxu3  ;;  %4530 = vmatpush.bf16.msrb.mxu0 %v6846_v34  ;;  %v6844_v34 = vld [vmem:[%s9881_s5 + $0x20] sm:$0xff] }
 0x42c   : > { %v3420_v32 = vadd.f32 %v3419_v33, %v3371_v15 }
 0x42e   : > { %v3469_v31 = vadd.f32 %v3468_v37, %v3420_v32 }
 0x42f   : > { %v3966_v1 = vpop.f32.mrf.mxu0  ;;  %4259 = vmatmul.bf16.vlgmr.msra.gmra.mxu2 %v9114_v28  ;;  %v6855_v28 = vld [vmem:[%s9881_s5 + $0x78] sm:$0xff] }
 0x430   : > { %v3967_v40 = vadd.f32 %v3966_v1, %v9632_v63  ;;  %v4015_v16 = vpop.f32.mrf.mxu1  ;;  %v3534_v62 = vmax.f32 %v3469_v31, 0.0  ;;  %4578 = vmatpush.bf16.msrb.mxu1 %v6855_v28 }
 0x432   : > { %v4016_v55 = vadd.f32 %v4015_v16, %v3967_v40  ;;  %4161 = vmatmul.bf16.vlgmr.msra.gmra.mxu0 %v10077_v52  ;;  %v9638_v35 = vpack.c.bf16 %v3534_v62, %v3530_v12  ;;  %v4064_v41 = vpop.f32.mrf.mxu2 }
 0x433   : > { %4210 = vmatmul.bf16.vlgmr.msra.gmra.mxu1 %v10078_v14 }
 0x434   : > { %v4065_v8 = vadd.f32 %v4064_v41, %v4016_v55  ;;  %4147 = vmatmul.bf16.gmra.mxu3 %v9638_v35 }
 0x437   : > { %v3968_v54 = vpop.f32.mrf.mxu0 }
 0x438   : > { %v3969_v0 = vadd.f32 %v3968_v54, %v9632_v63  ;;  %v4017_v52 = vpop.f32.mrf.mxu1 }
 0x43a   : > { %v4018_v24 = vadd.f32 %v4017_v52, %v3969_v0  ;;  %v4066_v14 = vpop.f32.mrf.mxu2 }
 0x43c   : > { %v4067_v39 = vadd.f32 %v4066_v14, %v4018_v24 }
 0x43f   : > { %v3971_v6 = vpop.f32.mrf.mxu0  ;;  %4264 = vmatmul.bf16.gmra.mxu2 %v9152_v38 }
 0x440   : > { %v3972_v23 = vadd.f32 %v3971_v6, %v9632_v63  ;;  %v4020_v7 = vpop.f32.mrf.mxu1 }
 0x442   : > { %v4021_v11 = vadd.f32 %v4020_v7, %v3972_v23  ;;  %4166 = vmatmul.bf16.gmra.mxu0 %v10079_v42  ;;  %v4069_v61 = vpop.f32.mrf.mxu2  ;;  %v6854_v42 = vld [vmem:[%s9881_s5 + $0x70] sm:$0xff] }
 0x443   : > { %4215 = vmatmul.bf16.gmra.mxu1 %v10080_v45 }
 0x444   : > { %v4070_v3 = vadd.f32 %v4069_v61, %v4021_v11  ;;  %4308 = vmatmul.bf16.vlgmr.msra.gmra.mxu3 %v9431_v58  ;;  %4579 = vmatpush.bf16.msrb.mxu1 %v6854_v42 }
 0x447   : > { %v3973_v51 = vpop.f32.mrf.mxu0  ;;  %v4113_v15 = vpop.f32.mrf.mxu3 }
 0x448   : > { %v3974_v48 = vadd.f32 %v3973_v51, %v9632_v63  ;;  %v4022_v27 = vpop.f32.mrf.mxu1  ;;  %v4114_v38 = vadd.f32 %v4113_v15, %v4065_v8  ;;  %v6845_v8 = vld [vmem:[%s9881_s5 + $0x28] sm:$0xff] }
 0x449   : > { %4531 = vmatpush.bf16.msrb.mxu0 %v6845_v8 }
 0x44a   : > { %v4023_v30 = vadd.f32 %v4022_v27, %v3974_v48  ;;  %v4071_v45 = vpop.f32.mrf.mxu2  ;;  %v4349_v16 = vmax.f32 %v4114_v38, 0.0 }
 0x44c   : > { %v4072_v33 = vadd.f32 %v4071_v45, %v4023_v30 }
 0x44d   : > { %4532 = vmatpush.bf16.msrb.mxu0 %v6844_v34 }
 0x44f   : > { %v3976_v58 = vpop.f32.mrf.mxu0  ;;  %v4115_v37 = vpop.f32.mrf.mxu3  ;;  %4269 = vmatmul.bf16.gmra.mxu2 %v9190_v60  ;;  %v6853_v60 = vld [vmem:[%s9881_s5 + $0x68] sm:$0xff] }
 0x450   : > { %v3977_v9 = vadd.f32 %v3976_v58, %v9632_v63  ;;  %v4025_v32 = vpop.f32.mrf.mxu1  ;;  %v4116_v40 = vadd.f32 %v4115_v37, %v4067_v39  ;;  %4580 = vmatpush.bf16.msrb.mxu1 %v6853_v60 }
 0x452   : > { %v4026_v1 = vadd.f32 %v4025_v32, %v3977_v9  ;;  %4171 = vmatmul.bf16.gmra.mxu0 %v10081_v46  ;;  %v4351_v31 = vmax.f32 %v4116_v40, 0.0  ;;  %v4074_v55 = vpop.f32.mrf.mxu2 }
 0x453   : > { %4220 = vmatmul.bf16.gmra.mxu1 %v10082_v10 }
 0x454   : > { %v9664_v12 = vpack.c.bf16 %v4351_v31, %v4349_v16  ;;  %v4075_v62 = vadd.f32 %v4074_v55, %v4026_v1  ;;  %4313 = vmatmul.bf16.gmra.mxu3 %v9464_v44  ;;  %v6843_v55 = vld [vmem:[%s9881_s5 + $0x18] sm:$0xff] }
 0x455   : > { %4533 = vmatpush.bf16.msrb.mxu0 %v6843_v55 }
 0x457   : > { %v3978_v41 = vpop.f32.mrf.mxu0  ;;  %v4118_v53 = vpop.f32.mrf.mxu3 }
 0x458   : > { %v3979_v46 = vadd.f32 %v3978_v41, %v9632_v63  ;;  %v4027_v54 = vpop.f32.mrf.mxu1  ;;  %v4119_v0 = vadd.f32 %v4118_v53, %v4070_v3 }
 0x45a   : > { %v4028_v10 = vadd.f32 %v4027_v54, %v3979_v46  ;;  %v4076_v52 = vpop.f32.mrf.mxu2  ;;  %v4353_v7 = vmax.f32 %v4119_v0, 0.0 }
 0x45c   : > { %v4077_v24 = vadd.f32 %v4076_v52, %v4028_v10 }
 0x45f   : > { %v3981_v44 = vpop.f32.mrf.mxu0  ;;  %v4120_v6 = vpop.f32.mrf.mxu3  ;;  %4274 = vmatmul.bf16.gmra.mxu2 %v9228_v20  ;;  %v6852_v20 = vld [vmem:[%s9881_s5 + $0x60] sm:$0xff] }
 0x460   : > { %v3982_v28 = vadd.f32 %v3981_v44, %v9632_v63  ;;  %v4030_v14 = vpop.f32.mrf.mxu1  ;;  %v4121_v23 = vadd.f32 %v4120_v6, %v4072_v33  ;;  %4581 = vmatpush.bf16.msrb.mxu1 %v6852_v20 }
 0x462   : > { %v4031_v39 = vadd.f32 %v4030_v14, %v3982_v28  ;;  %4176 = vmatmul.bf16.gmra.mxu0 %v10083_v59  ;;  %v4355_v11 = vmax.f32 %v4121_v23, 0.0  ;;  %v4079_v61 = vpop.f32.mrf.mxu2  ;;  %v6842_v14 = vld [vmem:[%s9881_s5 + $0x10] sm:$0xff] }
 0x463   : > { %4225 = vmatmul.bf16.gmra.mxu1 %v10084_v49  ;;  %4534 = vmatpush.bf16.msrb.mxu0 %v6842_v14 }
 0x464   : > { %v4080_v3 = vadd.f32 %v4079_v61, %v4031_v39  ;;  %4318 = vmatmul.bf16.gmra.mxu3 %v9496_v29  ;;  %v9682_v48 = vpack.c.bf16 %v4355_v11, %v4353_v7 }
 0x467   : > { %v3983_v51 = vpop.f32.mrf.mxu0  ;;  %v4123_v30 = vpop.f32.mrf.mxu3 }
 0x468   : > { %v3984_v59 = vadd.f32 %v3983_v51, %v9632_v63  ;;  %v4032_v27 = vpop.f32.mrf.mxu1  ;;  %v4124_v15 = vadd.f32 %v4123_v30, %v4075_v62 }
 0x46a   : > { %v4033_v49 = vadd.f32 %v4032_v27, %v3984_v59  ;;  %v4081_v29 = vpop.f32.mrf.mxu2  ;;  %v4357_v1 = vmax.f32 %v4124_v15, 0.0 }
 0x46c   : > { %v4082_v42 = vadd.f32 %v4081_v29, %v4033_v49 }
 0x46f   : > { %v3986_v38 = vpop.f32.mrf.mxu0  ;;  %v4125_v9 = vpop.f32.mrf.mxu3  ;;  %4279 = vmatmul.bf16.gmra.mxu2 %v9266_v56  ;;  %v6851_v56 = vld [vmem:[%s9881_s5 + $0x58] sm:$0xff] }
 0x470   : > { %v3987_v45 = vadd.f32 %v3986_v38, %v9632_v63  ;;  %v4035_v33 = vpop.f32.mrf.mxu1  ;;  %v4126_v32 = vadd.f32 %v4125_v9, %v4077_v24  ;;  %4582 = vmatpush.bf16.msrb.mxu1 %v6851_v56 }
 0x472   : > { %v4036_v58 = vadd.f32 %v4035_v33, %v3987_v45  ;;  %4181 = vmatmul.bf16.gmra.mxu0 %v10085_v2  ;;  %v4359_v37 = vmax.f32 %v4126_v32, 0.0  ;;  %v4084_v40 = vpop.f32.mrf.mxu2 }
 0x473   : > { %4230 = vmatmul.bf16.gmra.mxu1 %v10086_v50 }
 0x474   : > { %v4085_v16 = vadd.f32 %v4084_v40, %v4036_v58  ;;  %4323 = vmatmul.bf16.gmra.mxu3 %v9528_v17  ;;  %v9696_v62 = vpack.c.bf16 %v4359_v37, %v4357_v1 }
 0x477   : > { %v3988_v31 = vpop.f32.mrf.mxu0  ;;  %v4128_v2 = vpop.f32.mrf.mxu3 }
 0x478   : > { %v4037_v41 = vpop.f32.mrf.mxu1  ;;  %v4129_v50 = vadd.f32 %v4128_v2, %v4080_v3  ;;  %v6840_v3 = vld [vmem:[%s9881_s5] sm:$0xff] }
 0x47a   : > { %v4086_v8 = vpop.f32.mrf.mxu2  ;;  %v4361_v0 = vmax.f32 %v4129_v50, 0.0 }
 0x47f   : > { %v3991_v46 = vpop.f32.mrf.mxu0  ;;  %v4130_v53 = vpop.f32.mrf.mxu3  ;;  %4284 = vmatmul.bf16.gmra.mxu2 %v9306_v26  ;;  %v6850_v26 = vld [vmem:[%s9881_s5 + $0x50] sm:$0xff] }
 0x480   : > { %v3992_v17 = vadd.f32 %v3991_v46, %v9632_v63  ;;  %v4040_v54 = vpop.f32.mrf.mxu1  ;;  %v4131_v60 = vadd.f32 %v4130_v53, %v4082_v42  ;;  %4583 = vmatpush.bf16.msrb.mxu1 %v6850_v26 }
 0x482   : > { %v4041_v10 = vadd.f32 %v4040_v54, %v3992_v17  ;;  %4186 = vmatmul.bf16.gmra.mxu0 %v10087_v36  ;;  %v4363_v52 = vmax.f32 %v4131_v60, 0.0  ;;  %v4089_v24 = vpop.f32.mrf.mxu2 }
 0x483   : > { %4235 = vmatmul.bf16.gmra.mxu1 %v10088_v21  ;;  %v3989_v21 = vadd.f32 %v3988_v31, %v9632_v63 }
 0x484   : > { %v4090_v44 = vadd.f32 %v4089_v24, %v4041_v10  ;;  %4328 = vmatmul.bf16.gmra.mxu3 %v9561_v43  ;;  %v9709_v39 = vpack.c.bf16 %v4363_v52, %v4361_v0  ;;  %v6841_v43 = vld [vmem:[%s9881_s5 + $0x8] sm:$0xff] }
 0x485   : > { %4535 = vmatpush.bf16.msrb.mxu0 %v6841_v43  ;;  %v4038_v11 = vadd.f32 %v4037_v41, %v3989_v21 }
 0x487   : > { %v3993_v28 = vpop.f32.mrf.mxu0  ;;  %v4133_v36 = vpop.f32.mrf.mxu3  ;;  %v4087_v59 = vadd.f32 %v4086_v8, %v4038_v11 }
 0x488   : > { %v4042_v6 = vpop.f32.mrf.mxu1  ;;  %v4134_v23 = vadd.f32 %v4133_v36, %v4085_v16  ;;  %v3994_v9 = vadd.f32 %v3993_v28, %v9632_v63 }
 0x489   : > { %4536 = vmatpush.bf16.msrb.mxu0 %v6840_v3 }
 0x48a   : > { %v4091_v7 = vpop.f32.mrf.mxu2  ;;  %v4365_v20 = vmax.f32 %v4134_v23, 0.0  ;;  %v4043_v32 = vadd.f32 %v4042_v6, %v3994_v9 }
 0x48f   : > { %v3996_v61 = vpop.f32.mrf.mxu0  ;;  %v4135_v49 = vpop.f32.mrf.mxu3  ;;  %4289 = vmatmul.bf16.gmra.mxu2 %v9346_v57 }
 0x490   : > { %v3997_v51 = vadd.f32 %v3996_v61, %v9632_v63  ;;  %v4045_v34 = vpop.f32.mrf.mxu1  ;;  %v4136_v30 = vadd.f32 %v4135_v49, %v4087_v59  ;;  %v9750_v59 = vperm.slane %v9629_v18, 1  ;;  %v6863_v49 = vld [vmem:[%s9883_s7 + $0x38] sm:$0xff] }
 0x491   : > { %4719 = vmatpush.bf16.msrb.mxu2 %v6863_v49 }
 0x492   : > { %v4046_v27 = vadd.f32 %v4045_v34, %v3997_v51  ;;  %4191 = vmatmul.bf16.gmra.mxu0 %v10089_v5  ;;  %v4367_v15 = vmax.f32 %v4136_v30, 0.0  ;;  %v4094_v29 = vpop.f32.mrf.mxu2  ;;  %v6849_v5 = vld [vmem:[%s9881_s5 + $0x48] sm:$0xff] }
 0x493   : > { %4240 = vmatmul.bf16.gmra.mxu1 %v10090_v47 }
 0x494   : > { %v4095_v42 = vadd.f32 %v4094_v29, %v4046_v27  ;;  %4333 = vmatmul.bf16.gmra.mxu3 %v9606_v19  ;;  %v9726_v45 = vpack.c.bf16 %v4367_v15, %v4365_v20  ;;  %4584 = vmatpush.bf16.msrb.mxu1 %v6849_v5  ;;  %v4092_v19 = vadd.f32 %v4091_v7, %v4043_v32 }
 0x497   : > { %v3998_v38 = vpop.f32.mrf.mxu0  ;;  %v4138_v58 = vpop.f32.mrf.mxu3 }
 0x498   : > { %v4047_v33 = vpop.f32.mrf.mxu1  ;;  %v4139_v47 = vadd.f32 %v4138_v58, %v4090_v44  ;;  %v3999_v10 = vadd.f32 %v3998_v38, %v9632_v63 }
 0x49a   : > { %v4096_v57 = vpop.f32.mrf.mxu2  ;;  %v4369_v41 = vmax.f32 %v4139_v47, 0.0  ;;  %v4048_v53 = vadd.f32 %v4047_v33, %v3999_v10 }
 0x49c   : > { %v4097_v52 = vadd.f32 %v4096_v57, %v4048_v53 }
 0x49f   : > { %v4001_v1 = vpop.f32.mrf.mxu0  ;;  %v4140_v31 = vpop.f32.mrf.mxu3  ;;  %4294 = vmatmul.bf16.gmra.mxu2 %v9386_v13 }
 0x4a0   : > { %v4002_v37 = vadd.f32 %v4001_v1, %v9632_v63  ;;  %v4050_v40 = vpop.f32.mrf.mxu1  ;;  %v4141_v55 = vadd.f32 %v4140_v31, %v4092_v19  ;;  %v6862_v19 = vld [vmem:[%s9883_s7 + $0x30] sm:$0xff] }
 0x4a1   : > { %4720 = vmatpush.bf16.msrb.mxu2 %v6862_v19 }
 0x4a2   : > { %v4051_v16 = vadd.f32 %v4050_v40, %v4002_v37  ;;  %4196 = vmatmul.bf16.gmra.mxu0 %v10091_v25  ;;  %v4371_v2 = vmax.f32 %v4141_v55, 0.0  ;;  %v4099_v56 = vpop.f32.mrf.mxu2  ;;  %v6848_v25 = vld [vmem:[%s9881_s5 + $0x40] sm:$0xff] }
 0x4a3   : > { %4245 = vmatmul.bf16.gmra.mxu1 %v8823_v22 }
 0x4a4   : > { %v4100_v50 = vadd.f32 %v4099_v56, %v4051_v16  ;;  %4338 = vmatmul.bf16.gmra.mxu3 %v9621_v4  ;;  %v9737_v46 = vpack.c.bf16 %v4371_v2, %v4369_v41  ;;  %4585 = vmatpush.bf16.msrb.mxu1 %v6848_v25 }
 0x4a7   : > { %v4003_v8 = vpop.f32.mrf.mxu0  ;;  %v4143_v54 = vpop.f32.mrf.mxu3 }
 0x4a8   : > { %v4052_v17 = vpop.f32.mrf.mxu1  ;;  %v4144_v22 = vadd.f32 %v4143_v54, %v4095_v42  ;;  %v4004_v23 = vadd.f32 %v4003_v8, %v9632_v63 }
 0x4aa   : > { %v4101_v13 = vpop.f32.mrf.mxu2  ;;  %v4373_v44 = vmax.f32 %v4144_v22, 0.0  ;;  %v4053_v11 = vadd.f32 %v4052_v17, %v4004_v23 }
 0x4ac   : > { %v4102_v51 = vadd.f32 %v4101_v13, %v4053_v11 }
 0x4af   : > { %v4162_v60 = vpop.f32.mrf.mxu0  ;;  %v4145_v24 = vpop.f32.mrf.mxu3 }
 0x4b0   : > { %v4211_v0 = vpop.f32.mrf.mxu1  ;;  %v4146_v4 = vadd.f32 %v4145_v24, %v4097_v52  ;;  %v4163_v29 = vadd.f32 %v4162_v60, %v9750_v59  ;;  %v6861_v24 = vld [vmem:[%s9883_s7 + $0x28] sm:$0xff] }
 0x4b1   : > { %4721 = vmatpush.bf16.msrb.mxu2 %v6861_v24  ;;  %v6858_v24 = vld [vmem:[%s9883_s7 + $0x10] sm:$0xff] }
 0x4b2   : > { %4537 = vmatmul.bf16.vlgmr.msrb.gmra.mxu0 %v9664_v12  ;;  %v4375_v28 = vmax.f32 %v4146_v4, 0.0  ;;  %v4260_v14 = vpop.f32.mrf.mxu2  ;;  %v4212_v38 = vadd.f32 %v4211_v0, %v4163_v29 }
 0x4b4   : > { %4343 = vmatmul.bf16.gmra.mxu3 %v9638_v35  ;;  %v9745_v36 = vpack.c.bf16 %v4375_v28, %v4373_v44  ;;  %v4261_v33 = vadd.f32 %v4260_v14, %v4212_v38 }
 0x4b7   : > { %v4164_v6 = vpop.f32.mrf.mxu0  ;;  %v4148_v21 = vpop.f32.mrf.mxu3 }
 0x4b8   : > { %v4213_v26 = vpop.f32.mrf.mxu1  ;;  %v4149_v43 = vadd.f32 %v4148_v21, %v4100_v50 }
 0x4ba   : > { %v4262_v7 = vpop.f32.mrf.mxu2  ;;  %v4377_v35 = vmax.f32 %v4149_v43, 0.0 }
 0x4bf   : > { %v4167_v61 = vpop.f32.mrf.mxu0  ;;  %v4150_v12 = vpop.f32.mrf.mxu3 }
 0x4c0   : > { %v4216_v3 = vpop.f32.mrf.mxu1  ;;  %v4151_v34 = vadd.f32 %v4150_v12, %v4102_v51  ;;  %v4168_v2 = vadd.f32 %v4167_v61, %v9750_v59 }
 0x4c2   : > { %4542 = vmatmul.bf16.gmra.mxu0 %v9682_v48  ;;  %v4379_v27 = vmax.f32 %v4151_v34, 0.0  ;;  %v4265_v63 = vpop.f32.mrf.mxu2  ;;  %v4165_v48 = vadd.f32 %v4164_v6, %v9750_v59  ;;  %v4217_v8 = vadd.f32 %v4216_v3, %v4168_v2 }
 0x4c4   : > { %v9755_v20 = vpack.c.bf16 %v4379_v27, %v4377_v35  ;;  %v4214_v58 = vadd.f32 %v4213_v26, %v4165_v48  ;;  %v4266_v17 = vadd.f32 %v4265_v63, %v4217_v8 }
 0x4c6   : > { %v4263_v47 = vadd.f32 %v4262_v7, %v4214_v58 }
 0x4c7   : > { %v4169_v30 = vpop.f32.mrf.mxu0  ;;  %v4309_v42 = vpop.f32.mrf.mxu3 }
 0x4c8   : > { %v4218_v15 = vpop.f32.mrf.mxu1  ;;  %v4310_v57 = vadd.f32 %v4309_v42, %v4261_v33  ;;  %v4170_v50 = vadd.f32 %v4169_v30, %v9750_v59 }
 0x4ca   : > { %v4267_v18 = vpop.f32.mrf.mxu2  ;;  %v4350_v37 = vmax.f32 %v4310_v57, 0.0  ;;  %v4219_v54 = vadd.f32 %v4218_v15, %v4170_v50  ;;  %v6860_v15 = vld [vmem:[%s9883_s7 + $0x20] sm:$0xff] }
 0x4cb   : > { %4722 = vmatpush.bf16.msrb.mxu2 %v6860_v15 }
 0x4cc   : > { %v4268_v10 = vadd.f32 %v4267_v18, %v4219_v54 }
 0x4cf   : > { %v4172_v5 = vpop.f32.mrf.mxu0  ;;  %v4311_v32 = vpop.f32.mrf.mxu3 }
 0x4d0   : > { %v4221_v9 = vpop.f32.mrf.mxu1  ;;  %v4312_v1 = vadd.f32 %v4311_v32, %v4263_v47  ;;  %v4173_v14 = vadd.f32 %v4172_v5, %v9750_v59 }
 0x4d2   : > { %4547 = vmatmul.bf16.gmra.mxu0 %v9696_v62  ;;  %v4352_v40 = vmax.f32 %v4312_v1, 0.0  ;;  %v4270_v16 = vpop.f32.mrf.mxu2  ;;  %v4222_v23 = vadd.f32 %v4221_v9, %v4173_v14 }
 0x4d4   : > { %v4382_v31 = vpack.c.bf16 %v4352_v40, %v4350_v37  ;;  %v4271_v43 = vadd.f32 %v4270_v16, %v4222_v23  ;;  %v6859_v16 = vld [vmem:[%s9883_s7 + $0x18] sm:$0xff] }
 0x4d5   : > { %4723 = vmatpush.bf16.msrb.mxu2 %v6859_v16 }
 0x4d6   : > { %4586 = vmatmul.bf16.vlgmr.msrb.gmra.mxu1 %v4382_v31 }
 0x4d7   : > { %v4174_v55 = vpop.f32.mrf.mxu0  ;;  %v4314_v56 = vpop.f32.mrf.mxu3 }
 0x4d8   : > { %v4223_v41 = vpop.f32.mrf.mxu1  ;;  %v4315_v22 = vadd.f32 %v4314_v56, %v4266_v17  ;;  %v4175_v26 = vadd.f32 %v4174_v55, %v9750_v59 }
 0x4d9   : > { %4724 = vmatpush.bf16.msrb.mxu2 %v6858_v24 }
 0x4da   : > { %v4272_v62 = vpop.f32.mrf.mxu2  ;;  %v4354_v0 = vmax.f32 %v4315_v22, 0.0  ;;  %v4224_v7 = vadd.f32 %v4223_v41, %v4175_v26 }
 0x4dc   : > { %v4273_v61 = vadd.f32 %v4272_v62, %v4224_v7 }
 0x4df   : > { %v4177_v25 = vpop.f32.mrf.mxu0  ;;  %v4316_v53 = vpop.f32.mrf.mxu3 }
 0x4e0   : > { %v4226_v13 = vpop.f32.mrf.mxu1  ;;  %v4317_v60 = vadd.f32 %v4316_v53, %v4268_v10  ;;  %v4178_v29 = vadd.f32 %v4177_v25, %v9750_v59 }
 0x4e2   : > { %4552 = vmatmul.bf16.gmra.mxu0 %v9709_v39  ;;  %v4356_v52 = vmax.f32 %v4317_v60, 0.0  ;;  %v4275_v4 = vpop.f32.mrf.mxu2  ;;  %v4227_v38 = vadd.f32 %v4226_v13, %v4178_v29 }
 0x4e4   : > { %v4384_v28 = vpack.c.bf16 %v4356_v52, %v4354_v0 }
 0x4e6   : > { %4591 = vmatmul.bf16.gmra.mxu1 %v4384_v28 }
 0x4e7   : > { %v4179_v44 = vpop.f32.mrf.mxu0  ;;  %v4319_v6 = vpop.f32.mrf.mxu3 }
 0x4e8   : > { %v4228_v21 = vpop.f32.mrf.mxu1  ;;  %v4320_v3 = vadd.f32 %v4319_v6, %v4271_v43  ;;  %v4180_v48 = vadd.f32 %v4179_v44, %v9750_v59 }
 0x4ea   : > { %v4277_v39 = vpop.f32.mrf.mxu2  ;;  %v4358_v34 = vmax.f32 %v4320_v3, 0.0  ;;  %v4229_v18 = vadd.f32 %v4228_v21, %v4180_v48 }
 0x4ec   : > { %v4278_v58 = vadd.f32 %v4277_v39, %v4229_v18 }
 0x4ef   : > { %v4182_v11 = vpop.f32.mrf.mxu0  ;;  %v4321_v51 = vpop.f32.mrf.mxu3 }
 0x4f0   : > { %v4322_v12 = vadd.f32 %v4321_v51, %v4273_v61  ;;  %v4231_v27 = vpop.f32.mrf.mxu1  ;;  %v4183_v31 = vadd.f32 %v4182_v11, %v9750_v59 }
 0x4f2   : > { %4557 = vmatmul.bf16.gmra.mxu0 %v9726_v45  ;;  %v4360_v35 = vmax.f32 %v4322_v12, 0.0  ;;  %v4280_v49 = vpop.f32.mrf.mxu2  ;;  %v4276_v45 = vadd.f32 %v4275_v4, %v4227_v38  ;;  %v4232_v50 = vadd.f32 %v4231_v27, %v4183_v31  ;;  %v6857_v12 = vld [vmem:[%s9883_s7 + $0x8] sm:$0xff] }
 0x4f3   : > { %4725 = vmatpush.bf16.msrb.mxu2 %v6857_v12  ;;  %v6869_v12 = vld [vmem:[%s9885_s9 + $0x28] sm:$0xff] }
 0x4f4   : > { %v4386_v30 = vpack.c.bf16 %v4360_v35, %v4358_v34 }
 0x4f6   : > { %4596 = vmatmul.bf16.gmra.mxu1 %v4386_v30 }
 0x4f7   : > { %v4184_v63 = vpop.f32.mrf.mxu0  ;;  %v4324_v42 = vpop.f32.mrf.mxu3 }
 0x4f8   : > { %v4233_v5 = vpop.f32.mrf.mxu1  ;;  %v4325_v9 = vadd.f32 %v4324_v42, %v4276_v45  ;;  %v4185_v41 = vadd.f32 %v4184_v63, %v9750_v59  ;;  %v6856_v42 = vld [vmem:[%s9883_s7] sm:$0xff] }
 0x4f9   : > { %4726 = vmatpush.bf16.msrb.mxu2 %v6856_v42 }
 0x4fa   : > { %v4282_v47 = vpop.f32.mrf.mxu2  ;;  %v4362_v1 = vmax.f32 %v4325_v9, 0.0  ;;  %v4234_v8 = vadd.f32 %v4233_v5, %v4185_v41 }
 0x4fc   : > { %v4283_v17 = vadd.f32 %v4282_v47, %v4234_v8 }
 0x4ff   : > { %v4187_v33 = vpop.f32.mrf.mxu0  ;;  %v4326_v57 = vpop.f32.mrf.mxu3 }
 0x500   : > { %v4327_v32 = vadd.f32 %v4326_v57, %v4278_v58  ;;  %v4236_v2 = vpop.f32.mrf.mxu1  ;;  %v4188_v4 = vadd.f32 %v4187_v33, %v9750_v59 }
 0x502   : > { %4562 = vmatmul.bf16.gmra.mxu0 %v9737_v46  ;;  %v4364_v37 = vmax.f32 %v4327_v32, 0.0  ;;  %v4285_v56 = vpop.f32.mrf.mxu2  ;;  %v4281_v46 = vadd.f32 %v4280_v49, %v4232_v50  ;;  %v4237_v14 = vadd.f32 %v4236_v2, %v4188_v4 }
 0x504   : > { %v4388_v19 = vpack.c.bf16 %v4364_v37, %v4362_v1 }
 0x506   : > { %4601 = vmatmul.bf16.gmra.mxu1 %v4388_v19 }
 0x507   : > { %v4189_v40 = vpop.f32.mrf.mxu0  ;;  %v4329_v55 = vpop.f32.mrf.mxu3 }
 0x508   : > { %v4330_v54 = vadd.f32 %v4329_v55, %v4281_v46  ;;  %v4238_v22 = vpop.f32.mrf.mxu1  ;;  %v4190_v28 = vadd.f32 %v4189_v40, %v9750_v59 }
 0x50a   : > { %v4366_v13 = vmax.f32 %v4330_v54, 0.0  ;;  %v4287_v53 = vpop.f32.mrf.mxu2  ;;  %v4239_v6 = vadd.f32 %v4238_v22, %v4190_v28  ;;  %v6871_v22 = vld [vmem:[%s9885_s9 + $0x38] sm:$0xff] }
 0x50b   : > { %4860 = vmatpush.bf16.msrb.mxu3 %v6871_v22 }
 0x50c   : > { %v4288_v39 = vadd.f32 %v4287_v53, %v4239_v6  ;;  %v6870_v6 = vld [vmem:[%s9885_s9 + $0x30] sm:$0xff] }
 0x50f   : > { %v4192_v62 = vpop.f32.mrf.mxu0  ;;  %v4331_v25 = vpop.f32.mrf.mxu3  ;;  %4861 = vmatpush.bf16.msrb.mxu3 %v6870_v6 }
 0x510   : > { %v4332_v10 = vadd.f32 %v4331_v25, %v4283_v17  ;;  %v4241_v26 = vpop.f32.mrf.mxu1  ;;  %v4193_v34 = vadd.f32 %v4192_v62, %v9750_v59 }
 0x512   : > { %4567 = vmatmul.bf16.gmra.mxu0 %v9745_v36  ;;  %v4368_v60 = vmax.f32 %v4332_v10, 0.0  ;;  %v4286_v36 = vadd.f32 %v4285_v56, %v4237_v14  ;;  %v4290_v21 = vpop.f32.mrf.mxu2  ;;  %v4242_v15 = vadd.f32 %v4241_v26, %v4193_v34 }
 0x513   : > { %4862 = vmatpush.bf16.msrb.mxu3 %v6869_v12 }
 0x514   : > { %v4390_v0 = vpack.c.bf16 %v4368_v60, %v4366_v13 }
 0x516   : > { %4606 = vmatmul.bf16.gmra.mxu1 %v4390_v0 }
 0x517   : > { %v4194_v52 = vpop.f32.mrf.mxu0  ;;  %v4334_v44 = vpop.f32.mrf.mxu3 }
 0x518   : > { %v4335_v43 = vadd.f32 %v4334_v44, %v4286_v36  ;;  %v4243_v35 = vpop.f32.mrf.mxu1  ;;  %v4195_v30 = vadd.f32 %v4194_v52, %v9750_v59 }
 0x51a   : > { %v4370_v61 = vmax.f32 %v4335_v43, 0.0  ;;  %v4292_v27 = vpop.f32.mrf.mxu2  ;;  %v4244_v29 = vadd.f32 %v4243_v35, %v4195_v30 }
 0x51c   : > { %v4293_v48 = vadd.f32 %v4292_v27, %v4244_v29 }
 0x51f   : > { %v4197_v23 = vpop.f32.mrf.mxu0  ;;  %v4336_v7 = vpop.f32.mrf.mxu3 }
 0x520   : > { %v4337_v11 = vadd.f32 %v4336_v7, %v4288_v39  ;;  %v4246_v18 = vpop.f32.mrf.mxu1  ;;  %v4198_v32 = vadd.f32 %v4197_v23, %v9750_v59 }
 0x522   : > { %4572 = vmatmul.bf16.gmra.mxu0 %v9755_v20  ;;  %v4372_v3 = vmax.f32 %v4337_v11, 0.0  ;;  %v4291_v20 = vadd.f32 %v4290_v21, %v4242_v15  ;;  %v4295_v58 = vpop.f32.mrf.mxu2  ;;  %v4247_v40 = vadd.f32 %v4246_v18, %v4198_v32 }
 0x524   : > { %v4392_v51 = vpack.c.bf16 %v4372_v3, %v4370_v61  ;;  %v4296_v55 = vadd.f32 %v4295_v58, %v4247_v40  ;;  %v6867_v40 = vld [vmem:[%s9885_s9 + $0x18] sm:$0xff] }
 0x526   : > { %4611 = vmatmul.bf16.gmra.mxu1 %v4392_v51 }
 0x527   : > { %v4199_v49 = vpop.f32.mrf.mxu0  ;;  %v4339_v63 = vpop.f32.mrf.mxu3 }
 0x528   : > { %v4340_v38 = vadd.f32 %v4339_v63, %v4291_v20  ;;  %v4200_v37 = vadd.f32 %v4199_v49, %v9750_v59  ;;  %v4248_v19 = vpop.f32.mrf.mxu1  ;;  %v9803_v59 = vld [vmem:[%s9882_s6] ss:$0 sm:$0xff] }
 0x52a   : > { %v4374_v9 = vmax.f32 %v4340_v38, 0.0  ;;  %v4297_v16 = vpop.f32.mrf.mxu2  ;;  %v4249_v41 = vadd.f32 %v4248_v19, %v4200_v37  ;;  %v6868_v38 = vld [vmem:[%s9885_s9 + $0x20] sm:$0xff] }
 0x52b   : > { %4863 = vmatpush.bf16.msrb.mxu3 %v6868_v38 }
 0x52c   : > { %v4298_v2 = vadd.f32 %v4297_v16, %v4249_v41 }
 0x52f   : > { %v4341_v45 = vpop.f32.mrf.mxu3  ;;  %v4538_v5 = vpop.f32.mrf.mxu0  ;;  %4864 = vmatpush.bf16.msrb.mxu3 %v6867_v40 }
 0x530   : > { %v4342_v33 = vadd.f32 %v4341_v45, %v4293_v48  ;;  %v4539_v13 = vadd.f32 %v9803_v59, %v4538_v5 }
 0x532   : > { %v4376_v47 = vmax.f32 %v4342_v33, 0.0 }
 0x534   : > { %v4394_v57 = vpack.c.bf16 %v4376_v47, %v4374_v9 }
 0x536   : > { %4616 = vmatmul.bf16.gmra.mxu1 %v4394_v57 }
 0x537   : > { %v4344_v1 = vpop.f32.mrf.mxu3  ;;  %v4540_v31 = vpop.f32.mrf.mxu0 }
 0x538   : > { %v4345_v56 = vadd.f32 %v4344_v1, %v4296_v55  ;;  %v4541_v60 = vadd.f32 %v9803_v59, %v4540_v31 }
 0x53a   : > { %v4378_v8 = vmax.f32 %v4345_v56, 0.0 }
 0x53f   : > { %v4346_v50 = vpop.f32.mrf.mxu3  ;;  %v4543_v54 = vpop.f32.mrf.mxu0 }
 0x540   : > { %v4347_v46 = vadd.f32 %v4346_v50, %v4298_v2  ;;  %v4544_v26 = vadd.f32 %v9803_v59, %v4543_v54 }
 0x542   : > { %v4380_v62 = vmax.f32 %v4347_v46, 0.0 }
 0x544   : > { %v4396_v17 = vpack.c.bf16 %v4380_v62, %v4378_v8  ;;  %v6866_v62 = vld [vmem:[%s9885_s9 + $0x10] sm:$0xff] }
 0x545   : > { %4865 = vmatpush.bf16.msrb.mxu3 %v6866_v62 }
 0x546   : > { %4621 = vmatmul.bf16.gmra.mxu1 %v4396_v17 }
 0x547   : > { %v4545_v25 = vpop.f32.mrf.mxu0 }
 0x548   : > { %v4546_v21 = vadd.f32 %v9803_v59, %v4545_v25 }
 0x54f   : > { %v4548_v53 = vpop.f32.mrf.mxu0 }
 0x550   : > { %v4549_v35 = vadd.f32 %v9803_v59, %v4548_v53 }
 0x553   : > { %v4587_v10 = vpop.f32.mrf.mxu1 }
 0x554   : > { %v4588_v0 = vadd.f32 %v4587_v10, %v4539_v13 }
 0x556   : > { %v4627_v4 = vmax.f32 %v4588_v0, 0.0 }
 0x557   : > { %v4550_v14 = vpop.f32.mrf.mxu0 }
 0x558   : > { %v4551_v27 = vadd.f32 %v9803_v59, %v4550_v14 }
 0x55b   : > { %v4589_v52 = vpop.f32.mrf.mxu1 }
 0x55c   : > { %v4590_v24 = vadd.f32 %v4589_v52, %v4541_v60  ;;  %v6865_v52 = vld [vmem:[%s9885_s9 + $0x8] sm:$0xff] }
 0x55d   : > { %4866 = vmatpush.bf16.msrb.mxu3 %v6865_v52 }
 0x55e   : > { %v4628_v44 = vmax.f32 %v4590_v24, 0.0 }
 0x55f   : > { %v4553_v7 = vpop.f32.mrf.mxu0 }
 0x560   : > { %v4643_v28 = vpack.c.bf16 %v4628_v44, %v4627_v4  ;;  %v4554_v45 = vadd.f32 %v9803_v59, %v4553_v7  ;;  %v6864_v44 = vld [vmem:[%s9885_s9] sm:$0xff] }
 0x561   : > { %4867 = vmatpush.bf16.msrb.mxu3 %v6864_v44 }
 0x562   : > { %4727 = vmatmul.bf16.vlgmr.msrb.gmra.mxu2 %v4643_v28 }
 0x563   : > { %v4592_v36 = vpop.f32.mrf.mxu1 }
 0x564   : > { %v4593_v23 = vadd.f32 %v4592_v36, %v4544_v26 }
 0x566   : > { %v4629_v11 = vmax.f32 %v4593_v23, 0.0 }
 0x567   : > { %v4555_v34 = vpop.f32.mrf.mxu0 }
 0x568   : > { %v4556_v18 = vadd.f32 %v9803_v59, %v4555_v34 }
 0x56b   : > { %v4594_v39 = vpop.f32.mrf.mxu1 }
 0x56c   : > { %v4595_v43 = vadd.f32 %v4594_v39, %v4546_v21 }
 0x56e   : > { %v4630_v61 = vmax.f32 %v4595_v43, 0.0 }
 0x56f   : > { %v4558_v42 = vpop.f32.mrf.mxu0 }
 0x570   : > { %v4644_v3 = vpack.c.bf16 %v4630_v61, %v4629_v11  ;;  %v4559_v19 = vadd.f32 %v9803_v59, %v4558_v42 }
 0x572   : > { %4732 = vmatmul.bf16.gmra.mxu2 %v4644_v3 }
 0x573   : > { %v4597_v51 = vpop.f32.mrf.mxu1 }
 0x574   : > { %v4598_v49 = vadd.f32 %v4597_v51, %v4549_v35 }
 0x576   : > { %v4631_v15 = vmax.f32 %v4598_v49, 0.0 }
 0x577   : > { %v4560_v58 = vpop.f32.mrf.mxu0 }
 0x578   : > { %v4561_v16 = vadd.f32 %v9803_v59, %v4560_v58 }
 0x57b   : > { %v4599_v63 = vpop.f32.mrf.mxu1 }
 0x57c   : > { %v4600_v30 = vadd.f32 %v4599_v63, %v4551_v27 }
 0x57e   : > { %v4632_v20 = vmax.f32 %v4600_v30, 0.0  ;;  %v6882_v30 = vld [vmem:[%s9884_s8] ss:$0 sm:$0xff] }
 0x57f   : > { %v4563_v37 = vpop.f32.mrf.mxu0 }
 0x580   : > { %v4645_v29 = vpack.c.bf16 %v4632_v20, %v4631_v15  ;;  %v4564_v17 = vadd.f32 %v9803_v59, %v4563_v37 }
 0x582   : > { %4737 = vmatmul.bf16.gmra.mxu2 %v4645_v29 }
 0x583   : > { %v4602_v48 = vpop.f32.mrf.mxu1 }
 0x584   : > { %v4603_v33 = vadd.f32 %v4602_v48, %v4554_v45 }
 0x586   : > { %v4633_v47 = vmax.f32 %v4603_v33, 0.0 }
 0x587   : > { %v4565_v50 = vpop.f32.mrf.mxu0 }
 0x588   : > { %v4566_v25 = vadd.f32 %v9803_v59, %v4565_v50 }
 0x58b   : > { %v4604_v5 = vpop.f32.mrf.mxu1 }
 0x58c   : > { %v4605_v9 = vadd.f32 %v4604_v5, %v4556_v18 }
 0x58e   : > { %v4634_v57 = vmax.f32 %v4605_v9, 0.0 }
 0x58f   : > { %v4568_v54 = vpop.f32.mrf.mxu0 }
 0x590   : > { %v4646_v32 = vpack.c.bf16 %v4634_v57, %v4633_v47  ;;  %v4569_v28 = vadd.f32 %v9803_v59, %v4568_v54 }
 0x592   : > { %4742 = vmatmul.bf16.gmra.mxu2 %v4646_v32 }
 0x593   : > { %v4607_v1 = vpop.f32.mrf.mxu1 }
 0x594   : > { %v4608_v31 = vadd.f32 %v4607_v1, %v4559_v19 }
 0x596   : > { %v4635_v2 = vmax.f32 %v4608_v31, 0.0 }
 0x597   : > { %v4570_v24 = vpop.f32.mrf.mxu0 }
 0x598   : > { %v4571_v14 = vadd.f32 %v9803_v59, %v4570_v24 }
 0x59b   : > { %v4609_v55 = vpop.f32.mrf.mxu1 }
 0x59c   : > { %v4610_v41 = vadd.f32 %v4609_v55, %v4561_v16 }
 0x59e   : > { %v4636_v56 = vmax.f32 %v4610_v41, 0.0 }
 0x59f   : > { %v4573_v21 = vpop.f32.mrf.mxu0 }
 0x5a0   : > { %v4647_v46 = vpack.c.bf16 %v4636_v56, %v4635_v2  ;;  %v4574_v61 = vadd.f32 %v9803_v59, %v4573_v21 }
 0x5a2   : > { %4747 = vmatmul.bf16.gmra.mxu2 %v4647_v46 }
 0x5a3   : > { %v4612_v8 = vpop.f32.mrf.mxu1 }
 0x5a4   : > { %v4613_v10 = vadd.f32 %v4612_v8, %v4564_v17 }
 0x5a6   : > { %v4637_v53 = vmax.f32 %v4613_v10, 0.0 }
 0x5a7   : > { %v4575_v11 = vpop.f32.mrf.mxu0 }
 0x5a8   : > { %v4576_v3 = vadd.f32 %v9803_v59, %v4575_v11 }
 0x5ab   : > { %v4614_v22 = vpop.f32.mrf.mxu1 }
 0x5ac   : > { %v4615_v13 = vadd.f32 %v4614_v22, %v4566_v25 }
 0x5ae   : > { %v4638_v60 = vmax.f32 %v4615_v13, 0.0 }
 0x5b0   : > { %v4648_v0 = vpack.c.bf16 %v4638_v60, %v4637_v53 }
 0x5b2   : > { %4752 = vmatmul.bf16.gmra.mxu2 %v4648_v0 }
 0x5b3   : > { %v4617_v4 = vpop.f32.mrf.mxu1 }
 0x5b4   : > { %v4618_v36 = vadd.f32 %v4617_v4, %v4569_v28 }
 0x5b6   : > { %v4639_v23 = vmax.f32 %v4618_v36, 0.0 }
 0x5bb   : > { %v4619_v6 = vpop.f32.mrf.mxu1 }
 0x5bc   : > { %v4620_v26 = vadd.f32 %v4619_v6, %v4571_v14 }
 0x5be   : > { %v4640_v39 = vmax.f32 %v4620_v26, 0.0 }
 0x5c0   : > { %v4649_v43 = vpack.c.bf16 %v4640_v39, %v4639_v23 }
 0x5c2   : > { %4757 = vmatmul.bf16.gmra.mxu2 %v4649_v43 }
 0x5c3   : > { %v4622_v7 = vpop.f32.mrf.mxu1 }
 0x5c4   : > { %v4623_v51 = vadd.f32 %v4622_v7, %v4574_v61 }
 0x5c6   : > { %v4641_v35 = vmax.f32 %v4623_v51, 0.0 }
 0x5cb   : > { %v4624_v12 = vpop.f32.mrf.mxu1 }
 0x5cc   : > { %v4625_v34 = vadd.f32 %v4624_v12, %v4576_v3  ;;  %v6883_v3 = vld [vmem:[%s9886_s10] ss:$0 sm:$0xff] }
 0x5ce   : > { %v4642_v27 = vmax.f32 %v4625_v34, 0.0 }
 0x5d0   : > { %v4650_v49 = vpack.c.bf16 %v4642_v27, %v4641_v35 }
 0x5d2   : > { %4762 = vmatmul.bf16.gmra.mxu2 %v4650_v49 }
 0x5e5   : > { %v4728_v63 = vpop.f32.mrf.mxu2 }
 0x5e6   : > { %v4729_v15 = vadd.f32 %v6882_v30, %v4728_v63 }
 0x5e8   : > { %v4768_v42 = vmax.f32 %v4729_v15, 0.0 }
 0x5ed   : > { %v4730_v20 = vpop.f32.mrf.mxu2 }
 0x5ee   : > { %v4731_v29 = vadd.f32 %v6882_v30, %v4730_v20 }
 0x5f0   : > { %v4769_v48 = vmax.f32 %v4731_v29, 0.0 }
 0x5f2   : > { %v4784_v38 = vpack.c.bf16 %v4769_v48, %v4768_v42 }
 0x5f4   : > { %4868 = vmatmul.bf16.vlgmr.msrb.gmra.mxu3 %v4784_v38 }
 0x5f5   : > { %v4733_v59 = vpop.f32.mrf.mxu2 }
 0x5f6   : > { %v4734_v45 = vadd.f32 %v6882_v30, %v4733_v59 }
 0x5f8   : > { %v4770_v58 = vmax.f32 %v4734_v45, 0.0 }
 0x5fd   : > { %v4735_v18 = vpop.f32.mrf.mxu2 }
 0x5fe   : > { %v4736_v33 = vadd.f32 %v6882_v30, %v4735_v18 }
 0x600   : > { %v4771_v5 = vmax.f32 %v4736_v33, 0.0 }
 0x602   : > { %v4785_v9 = vpack.c.bf16 %v4771_v5, %v4770_v58 }
 0x604   : > { %4873 = vmatmul.bf16.gmra.mxu3 %v4785_v9 }
 0x605   : > { %v4738_v47 = vpop.f32.mrf.mxu2 }
 0x606   : > { %v4739_v57 = vadd.f32 %v6882_v30, %v4738_v47 }
 0x608   : > { %v4772_v37 = vmax.f32 %v4739_v57, 0.0 }
 0x60d   : > { %v4740_v32 = vpop.f32.mrf.mxu2 }
 0x60e   : > { %v4741_v1 = vadd.f32 %v6882_v30, %v4740_v32 }
 0x610   : > { %v4773_v40 = vmax.f32 %v4741_v1, 0.0 }
 0x612   : > { %v4786_v19 = vpack.c.bf16 %v4773_v40, %v4772_v37 }
 0x614   : > { %4878 = vmatmul.bf16.gmra.mxu3 %v4786_v19 }
 0x615   : > { %v4743_v16 = vpop.f32.mrf.mxu2 }
 0x616   : > { %v4744_v31 = vadd.f32 %v6882_v30, %v4743_v16 }
 0x618   : > { %v4774_v2 = vmax.f32 %v4744_v31, 0.0 }
 0x61d   : > { %v4745_v55 = vpop.f32.mrf.mxu2 }
 0x61e   : > { %v4746_v41 = vadd.f32 %v6882_v30, %v4745_v55 }
 0x620   : > { %v4775_v56 = vmax.f32 %v4746_v41, 0.0 }
 0x622   : > { %v4787_v50 = vpack.c.bf16 %v4775_v56, %v4774_v2 }
 0x624   : > { %4883 = vmatmul.bf16.gmra.mxu3 %v4787_v50 }
 0x625   : > { %v4748_v46 = vpop.f32.mrf.mxu2 }
 0x626   : > { %v4749_v8 = vadd.f32 %v6882_v30, %v4748_v46 }
 0x628   : > { %v4776_v54 = vmax.f32 %v4749_v8, 0.0 }
 0x62d   : > { %v4750_v62 = vpop.f32.mrf.mxu2 }
 0x62e   : > { %v4751_v17 = vadd.f32 %v6882_v30, %v4750_v62 }
 0x630   : > { %v4777_v25 = vmax.f32 %v4751_v17, 0.0 }
 0x632   : > { %v4788_v10 = vpack.c.bf16 %v4777_v25, %v4776_v54 }
 0x634   : > { %4888 = vmatmul.bf16.gmra.mxu3 %v4788_v10 }
 0x635   : > { %v4753_v22 = vpop.f32.mrf.mxu2 }
 0x636   : > { %v4754_v13 = vadd.f32 %v6882_v30, %v4753_v22 }
 0x638   : > { %v4778_v0 = vmax.f32 %v4754_v13, 0.0 }
 0x63d   : > { %v4755_v53 = vpop.f32.mrf.mxu2 }
 0x63e   : > { %v4756_v60 = vadd.f32 %v6882_v30, %v4755_v53 }
 0x640   : > { %v4779_v52 = vmax.f32 %v4756_v60, 0.0 }
 0x642   : > { %v4789_v24 = vpack.c.bf16 %v4779_v52, %v4778_v0 }
 0x644   : > { %4893 = vmatmul.bf16.gmra.mxu3 %v4789_v24 }
 0x645   : > { %v4758_v4 = vpop.f32.mrf.mxu2 }
 0x646   : > { %v4759_v44 = vadd.f32 %v6882_v30, %v4758_v4 }
 0x648   : > { %v4780_v36 = vmax.f32 %v4759_v44, 0.0 }
 0x64d   : > { %v4760_v28 = vpop.f32.mrf.mxu2 }
 0x64e   : > { %v4761_v14 = vadd.f32 %v6882_v30, %v4760_v28 }
 0x650   : > { %v4781_v6 = vmax.f32 %v4761_v14, 0.0 }
 0x652   : > { %v4790_v26 = vpack.c.bf16 %v4781_v6, %v4780_v36 }
 0x654   : > { %4898 = vmatmul.bf16.gmra.mxu3 %v4790_v26 }
 0x655   : > { %v4763_v21 = vpop.f32.mrf.mxu2 }
 0x656   : > { %v4764_v23 = vadd.f32 %v6882_v30, %v4763_v21 }
 0x658   : > { %v4782_v7 = vmax.f32 %v4764_v23, 0.0 }
 0x65d   : > { %v4765_v39 = vpop.f32.mrf.mxu2 }
 0x65e   : > { %v4766_v43 = vadd.f32 %v6882_v30, %v4765_v39 }
 0x660   : > { %v4783_v11 = vmax.f32 %v4766_v43, 0.0 }
 0x662   : > { %v4791_v61 = vpack.c.bf16 %v4783_v11, %v4782_v7 }
 0x664   : > { %4903 = vmatmul.bf16.gmra.mxu3 %v4791_v61 }
 0x677   : > { %v4869_v51 = vpop.f32.mrf.mxu3 }
 0x678   : > { %v4870_v12 = vadd.f32 %v6883_v3, %v4869_v51 }
 0x67a   : > { %4909 = vst [vmem:[%s9855_s14] sm:$0xff] %v4870_v12 }
 0x67f   : > { %v4871_v34 = vpop.f32.mrf.mxu3 }
 0x680   : > { %v4872_v35 = vadd.f32 %v6883_v3, %v4871_v34 }
 0x682   : > { %4910 = vst [vmem:[%s9855_s14 + $0x8] sm:$0xff] %v4872_v35 }
 0x687   : > { %v4874_v27 = vpop.f32.mrf.mxu3 }
 0x688   : > { %v4875_v49 = vadd.f32 %v6883_v3, %v4874_v27 }
 0x68a   : > { %4911 = vst [vmem:[%s9855_s14 + $0x10] sm:$0xff] %v4875_v49 }
 0x68f   : > { %v4876_v63 = vpop.f32.mrf.mxu3 }
 0x690   : > { %v4877_v30 = vadd.f32 %v6883_v3, %v4876_v63 }
 0x692   : > { %4912 = vst [vmem:[%s9855_s14 + $0x18] sm:$0xff] %v4877_v30 }
 0x697   : > { %v4879_v15 = vpop.f32.mrf.mxu3 }
 0x698   : > { %v4880_v20 = vadd.f32 %v6883_v3, %v4879_v15 }
 0x69a   : > { %4913 = vst [vmem:[%s9855_s14 + $0x20] sm:$0xff] %v4880_v20 }
 0x69f   : > { %v4881_v29 = vpop.f32.mrf.mxu3 }
 0x6a0   : > { %v4882_v42 = vadd.f32 %v6883_v3, %v4881_v29 }
 0x6a2   : > { %4914 = vst [vmem:[%s9855_s14 + $0x28] sm:$0xff] %v4882_v42 }
 0x6a7   : > { %v4884_v48 = vpop.f32.mrf.mxu3 }
 0x6a8   : > { %v4885_v38 = vadd.f32 %v6883_v3, %v4884_v48 }
 0x6aa   : > { %4915 = vst [vmem:[%s9855_s14 + $0x30] sm:$0xff] %v4885_v38 }
 0x6af   : > { %v4886_v59 = vpop.f32.mrf.mxu3 }
 0x6b0   : > { %v4887_v45 = vadd.f32 %v6883_v3, %v4886_v59 }
 0x6b2   : > { %4916 = vst [vmem:[%s9855_s14 + $0x38] sm:$0xff] %v4887_v45 }
 0x6b7   : > { %v4889_v18 = vpop.f32.mrf.mxu3 }
 0x6b8   : > { %v4890_v33 = vadd.f32 %v6883_v3, %v4889_v18 }
 0x6ba   : > { %4917 = vst [vmem:[%s9855_s14 + $0x40] sm:$0xff] %v4890_v33 }
 0x6bf   : > { %v4891_v58 = vpop.f32.mrf.mxu3 }
 0x6c0   : > { %v4892_v5 = vadd.f32 %v6883_v3, %v4891_v58 }
 0x6c2   : > { %4918 = vst [vmem:[%s9855_s14 + $0x48] sm:$0xff] %v4892_v5 }
 0x6c7   : > { %v4894_v9 = vpop.f32.mrf.mxu3 }
 0x6c8   : > { %v4895_v47 = vadd.f32 %v6883_v3, %v4894_v9 }
 0x6ca   : > { %4919 = vst [vmem:[%s9855_s14 + $0x50] sm:$0xff] %v4895_v47 }
 0x6cf   : > { %v4896_v57 = vpop.f32.mrf.mxu3 }
 0x6d0   : > { %v4897_v32 = vadd.f32 %v6883_v3, %v4896_v57 }
 0x6d2   : > { %4920 = vst [vmem:[%s9855_s14 + $0x58] sm:$0xff] %v4897_v32 }
 0x6d7   : > { %v4899_v1 = vpop.f32.mrf.mxu3 }
 0x6d8   : > { %v4900_v37 = vadd.f32 %v6883_v3, %v4899_v1 }
 0x6da   : > { %4921 = vst [vmem:[%s9855_s14 + $0x60] sm:$0xff] %v4900_v37 }
 0x6df   : > { %v4901_v40 = vpop.f32.mrf.mxu3 }
 0x6e0   : > { %v4902_v19 = vadd.f32 %v6883_v3, %v4901_v40 }
 0x6e2   : > { %4922 = vst [vmem:[%s9855_s14 + $0x68] sm:$0xff] %v4902_v19 }
 0x6e7   : > { %v4904_v16 = vpop.f32.mrf.mxu3 }
 0x6e8   : > { %v4905_v31 = vadd.f32 %v6883_v3, %v4904_v16 }
 0x6ea   : > { %4923 = vst [vmem:[%s9855_s14 + $0x70] sm:$0xff] %v4905_v31 }
 0x6ef   : > { %v4906_v55 = vpop.f32.mrf.mxu3 }
 0x6f0   : > { %v4907_v41 = vadd.f32 %v6883_v3, %v4906_v55 }
 0x6f2   : > { %4924 = vst [vmem:[%s9855_s14 + $0x78] sm:$0xff] %v4907_v41 }
 0x6f3 PF: > { %s21_s17 = sadd.s32 1, %s6892_s17  }
 0x6f4   : > { %p18_p4 = scmp.ge.s32.totalorder %s21_s17, 4  }
 0x6f6   :  { %20 = sbr.rel (!%p18_p4) target bundleno = 1 (0x1), region = 94 }

</bundles_post_ra>
